<compile_context>
chip_gen: v5e
topology: v5e:2x2
jax: 0.10.0
libtpu: 0.0.40
codegen_flags: <defaults>
</compile_context>

<pallas_src>
import math

import jax
import jax.numpy as jnp
from jax.experimental import pallas as pl
from jax.experimental.pallas import tpu as pltpu

# ----------------------------- model hyper-parameters -----------------------------
B = 2            # batch
L = 8            # seqs_len
D = 32           # num_units
H = 4            # num_heads
M = 3            # num_marks
NUM_BLOCKS = 2
N_CLASSES = 20
V = N_CLASSES + 1
MASK_LEN = 2
MASK_CONST = N_CLASSES      # mask token id (valid embedding row)
TIME_SCALOR = 1.0
DH = D // H
BL = B * L
VPAD = 128
NEG_INF = float(-2.0 ** 32 + 1)

# packed-data column layout (width 128)
C_TS = 3 * D            # 96   timespans
C_MK = C_TS + 1         # 97   event marks (M cols)
C_AM = C_MK + M         # 100  attention-allow mask (BL cols)

# per-layer weight-slab row layout (width 128)
R_QKVT = 0              # rows   0: 96  fused q|k|v|t projection (head-major cols)
R_WB = 96               # rows  96:128  fc_before   (D, D)
R_WIM = 128             # rows 128:160  fc_interm.  (D, 2D)
R_WA = 160              # rows 160:224  fc_after    (2D, D)
R_WIE = 224             # rows 224:232  fc_i event part (DH, M*DH)
R_WBLK = 232            # rows 232:256  block-diag(weight_i) (M*DH, M)
R_VEC = 256             # rows 256:266  vectors: wi_t, bi, scale_i, bb, g1, b1, bim, ba, g2, b2
R_LAYER = 272

# head-slab row layout (width 128)
HR_MSGW = 0             # rows   0:32   msg_fc weight (D, D)
HR_EMB = 32             # rows  32:160  embedding padded to 128 vocab rows (cols 0:D)
HR_VEC = 160            # rows 160:164  msg_b, msg_g, msg_beta, bias(padded to 128)
R_HEAD = 168


# ----------------------------- in-kernel helpers -----------------------------
def _gelu_exact(x):
    # torch.nn.GELU() default = exact erf formulation
    return 0.5 * x * (1.0 + jax.lax.erf(x * (1.0 / math.sqrt(2.0))))


def _softplus(x):
    # numerically safe log(1 + exp(x))
    return jnp.maximum(x, 0.0) + jnp.log(1.0 + jnp.exp(-jnp.abs(x)))


def _layer_norm(y, gamma, beta, eps=1e-5):
    mu = jnp.mean(y, axis=-1, keepdims=True)
    var = jnp.mean((y - mu) ** 2, axis=-1, keepdims=True)
    return (y - mu) * jax.lax.rsqrt(var + eps) * gamma + beta


def _dot(a, b):
    return jnp.dot(a, b, preferred_element_type=jnp.float32)


# ----------------------------- fused CTSMA transformer block -----------------------------
def _ctsma_block(x, lw, li, ts_h, allow, marks):
    """One CTSMATransformer block on the batch-folded (B*L, Din) activations."""
    din = x.shape[1]

    # fused lane-dense projection; columns are head-major: [q_h|k_h|v_h|t_h] per head
    wqkvt = lw[li, R_QKVT:R_QKVT + din, :]                       # (din, 128)
    qkvt = _dot(x, wqkvt)                                        # (BL, 128)
    qkvt_h = jnp.stack([qkvt[:, h * 4 * DH:(h + 1) * 4 * DH] for h in range(H)],
                       axis=0)                                   # (H, BL, 4*DH)
    q = qkvt_h[:, :, 0 * DH:1 * DH]                              # (H, BL, DH)
    k = qkvt_h[:, :, 1 * DH:2 * DH]
    v = qkvt_h[:, :, 2 * DH:3 * DH]
    t = qkvt_h[:, :, 3 * DH:4 * DH]

    # head-batched attention over the folded batch*seq axis (block-diagonal mask)
    s = jnp.einsum("hqd,hkd->hqk", q, k,
                   preferred_element_type=jnp.float32) * jnp.float32(1.0 / math.sqrt(D))
    s = jnp.where(allow, s, jnp.float32(NEG_INF))                # key-pad + cross-batch mask
    mmax = jnp.max(s, axis=-1, keepdims=True)
    pexp = jnp.exp(s - mmax)
    probs = pexp / jnp.sum(pexp, axis=-1, keepdims=True)         # (H, BL, BL)

    e = jnp.einsum("hqk,hkd->hqd", probs, t,
                   preferred_element_type=jnp.float32)           # (H, BL, DH)

    # intensities(): fc_i (timespan column folded in) + block-diag weight_i matmul
    wi_e = lw[li, R_WIE:R_WIE + DH, 0:M * DH]                    # (DH, M*DH)
    w_blk = lw[li, R_WBLK:R_WBLK + M * DH, 0:M]                  # (M*DH, M) block-diag
    wi_t = lw[li, R_VEC + 0:R_VEC + 1, 0:M * DH]                 # (1, M*DH)
    bi = lw[li, R_VEC + 1:R_VEC + 2, 0:M * DH]                   # (1, M*DH)
    scale_i = lw[li, R_VEC + 2:R_VEC + 3, 0:M]                   # (1, M)

    proj = _dot(e.reshape(H * BL, DH), wi_e)                     # (H*BL, M*DH)
    mu = jax.nn.sigmoid(proj + ts_h * wi_t + bi)                 # (H*BL, M*DH)
    im = _dot(mu, w_blk)                                         # (H*BL, M)
    sc = jnp.exp(scale_i)
    isc = jnp.exp(-scale_i)
    inty = sc * _softplus(im * isc)                              # (H*BL, M)
    mark_inty = jax.lax.dot_general(inty, marks, (((1,), (1,)), ((), ())),
                                    preferred_element_type=jnp.float32)   # (H*BL, BL)
    mark_inty = mark_inty.reshape(H, BL, BL)

    o = jnp.einsum("hqk,hkd->hqd", probs * mark_inty, v,
                   preferred_element_type=jnp.float32)           # (H, BL, DH)
    attn = jnp.concatenate([o[h] for h in range(H)], axis=1)     # (BL, D), cols h*DH+d

    x_res = x[:, 0:D]                                            # hoisted residual slice
    attn = attn + x_res                                          # AIAConv residual

    # CTSMATransformer post-attention block
    wb = lw[li, R_WB:R_WB + D, 0:D]
    bb = lw[li, R_VEC + 3:R_VEC + 4, 0:D]
    g1 = lw[li, R_VEC + 4:R_VEC + 5, 0:D]
    b1 = lw[li, R_VEC + 5:R_VEC + 6, 0:D]
    wim = lw[li, R_WIM:R_WIM + D, 0:2 * D]
    bim = lw[li, R_VEC + 6:R_VEC + 7, 0:2 * D]
    wa = lw[li, R_WA:R_WA + 2 * D, 0:D]
    ba = lw[li, R_VEC + 7:R_VEC + 8, 0:D]
    g2 = lw[li, R_VEC + 8:R_VEC + 9, 0:D]
    b2 = lw[li, R_VEC + 9:R_VEC + 10, 0:D]

    y = _dot(attn, wb) + bb                                      # fc_before
    y = y + x_res                                                # residual = layer input[:, :D]
    y = _layer_norm(y, g1, b1)
    inter = _gelu_exact(_dot(y, wim) + bim)                      # fc_intermediate
    z = _dot(inter, wa) + ba + y                                 # fc_after + residual
    return _layer_norm(z, g2, b2)


# ----------------------------- fused forward kernel -----------------------------
def fused_kernel(data_ref, lw_ref, hw_ref, out_ref):
    # packed per-example data (batch folded into rows)
    x = data_ref[:, 0:3 * D]                    # (BL, 3D) layer-0 input
    ts = data_ref[:, C_TS:C_TS + 1]             # (BL, 1)  timespans
    marks = data_ref[:, C_MK:C_MK + M]          # (BL, M)  event marks (per key row)
    allow = data_ref[:, C_AM:C_AM + BL] != 0.0  # (BL, BL) key-pad & same-batch mask

    # hoisted once: timespans tiled over heads, matching e's (h*BL + bl) row order
    ts_h = jnp.broadcast_to(ts.reshape(1, BL, 1), (H, BL, 1)).reshape(H * BL, 1)

    for li in range(NUM_BLOCKS):
        x = _ctsma_block(x, lw_ref, li, ts_h, allow, marks)

    # output head: msg_fc -> GELU -> LayerNorm
    msg_w = hw_ref[HR_MSGW:HR_MSGW + D, 0:D]
    msg_b = hw_ref[HR_VEC + 0:HR_VEC + 1, 0:D]
    msg_g = hw_ref[HR_VEC + 1:HR_VEC + 2, 0:D]
    msg_be = hw_ref[HR_VEC + 2:HR_VEC + 3, 0:D]
    emb = hw_ref[HR_EMB:HR_EMB + VPAD, 0:D]     # (128, D) vocab-padded embedding
    bias = hw_ref[HR_VEC + 3:HR_VEC + 4, 0:VPAD]

    y = _gelu_exact(_dot(x, msg_w) + msg_b)
    y = _layer_norm(y, msg_g, msg_be)                            # (BL, D)

    # logits for ALL rows against the vocab-padded embedding -> lane-dense store;
    # masked-position gather happens in the wrapper.
    logits = jax.lax.dot_general(y, emb, (((1,), (1,)), ((), ())),
                                 preferred_element_type=jnp.float32) + bias
    out_ref[...] = logits


# ----------------------------- glue: codings, params, packing, forward -----------------------------
def time_sinusoid(t, d):
    half = d // 2
    inv_freq = 1.0 / (10000.0 ** (jnp.arange(half, dtype=jnp.float32) * 2.0 / d))
    ang = t[..., None] * inv_freq                                # (B, L, half)
    pe = jnp.stack([jnp.sin(ang), jnp.cos(ang)], axis=-1)        # (B, L, half, 2)
    return pe.reshape(t.shape[0], t.shape[1], d)


def init_params(key):
    keys = iter(jax.random.split(key, 64))

    def nrm(shape, std=0.02):
        return jax.random.normal(next(keys), shape, jnp.float32) * std

    params = {}
    emb = nrm((V, D), 0.05)
    params["embedding"] = emb.at[0].set(0.0)          # padding_idx=0
    eco = nrm((M, D), 0.05)
    params["ecoding"] = eco.at[0].set(0.0)            # padding_idx=0
    params["pcoding"] = nrm((L, D))                   # learned position table

    idx = jnp.arange(V)
    params["mark_lookup"] = (jax.nn.one_hot(idx % M, M)
                             * (idx > 0)[:, None]).astype(jnp.int32)

    layers = []
    in_feats = 3 * D
    for _ in range(NUM_BLOCKS):
        lp = {
            "wq": nrm((in_feats, D)), "wk": nrm((in_feats, D)),
            "wv": nrm((in_feats, D)), "wt": nrm((in_feats, D)),
            "wi": nrm((DH + 1, DH * M)),              # fc_i weight (event|timespan rows)
            "bi": nrm((DH * M,), 0.01),
            "weight_i": nrm((M, DH), 0.1),
            "scale_i": jnp.zeros((M,), jnp.float32),
            "wb": nrm((D, D)), "bb": jnp.zeros((D,), jnp.float32),
            "g1": jnp.ones((D,), jnp.float32), "b1": jnp.zeros((D,), jnp.float32),
            "wim": nrm((D, 2 * D)), "bim": jnp.zeros((2 * D,), jnp.float32),
            "wa": nrm((2 * D, D)), "ba": jnp.zeros((D,), jnp.float32),
            "g2": jnp.ones((D,), jnp.float32), "b2": jnp.zeros((D,), jnp.float32),
        }
        layers.append(lp)
        in_feats = D
    params["layers"] = layers

    params["msg_w"] = nrm((D, D))
    params["msg_b"] = jnp.zeros((D,), jnp.float32)
    params["msg_g"] = jnp.ones((D,), jnp.float32)
    params["msg_be"] = jnp.zeros((D,), jnp.float32)
    params["bias"] = jnp.zeros((V,), jnp.float32)
    return params


def pack_params(params):
    """Pack all weights into 2 lane-dense slabs (done once, outside the hot path)."""
    slabs = []
    for lp in params["layers"]:
        slab = jnp.zeros((R_LAYER, 128), jnp.float32)
        wq, wk, wv, wt = lp["wq"], lp["wk"], lp["wv"], lp["wt"]
        din = wq.shape[0]
        # head-major fused projection columns: [q_h|k_h|v_h|t_h] per head
        wqkvt = jnp.concatenate(
            [jnp.concatenate([wq[:, h * DH:(h + 1) * DH], wk[:, h * DH:(h + 1) * DH],
                              wv[:, h * DH:(h + 1) * DH], wt[:, h * DH:(h + 1) * DH]],
                             axis=1) for h in range(H)], axis=1)             # (din, 128)
        slab = slab.at[R_QKVT:R_QKVT + din, :].set(wqkvt)
        slab = slab.at[R_WB:R_WB + D, 0:D].set(lp["wb"])
        slab = slab.at[R_WIM:R_WIM + D, 0:2 * D].set(lp["wim"])
        slab = slab.at[R_WA:R_WA + 2 * D, 0:D].set(lp["wa"])
        slab = slab.at[R_WIE:R_WIE + DH, 0:M * DH].set(lp["wi"][:DH])
        w_blk = jnp.zeros((M * DH, M), jnp.float32)
        for m in range(M):
            w_blk = w_blk.at[m * DH:(m + 1) * DH, m].set(lp["weight_i"][m])
        slab = slab.at[R_WBLK:R_WBLK + M * DH, 0:M].set(w_blk)
        vecs = [lp["wi"][DH], lp["bi"], lp["scale_i"], lp["bb"], lp["g1"],
                lp["b1"], lp["bim"], lp["ba"], lp["g2"], lp["b2"]]
        for off, vec in enumerate(vecs):
            vflat = vec.reshape(-1)
            slab = slab.at[R_VEC + off, 0:vflat.shape[0]].set(vflat)
        slabs.append(slab)
    layer_slab = jnp.stack(slabs, axis=0)                        # (NUM_BLOCKS, R_LAYER, 128)

    head = jnp.zeros((R_HEAD, 128), jnp.float32)
    head = head.at[HR_MSGW:HR_MSGW + D, 0:D].set(params["msg_w"])
    head = head.at[HR_EMB:HR_EMB + V, 0:D].set(params["embedding"])
    head = head.at[HR_VEC + 0, 0:D].set(params["msg_b"])
    head = head.at[HR_VEC + 1, 0:D].set(params["msg_g"])
    head = head.at[HR_VEC + 2, 0:D].set(params["msg_be"])
    head = head.at[HR_VEC + 3, 0:V].set(params["bias"])

    return {"layer_slab": layer_slab, "head_slab": head,
            "embedding": params["embedding"], "ecoding": params["ecoding"],
            "pcoding": params["pcoding"], "mark_lookup": params["mark_lookup"]}


def recommender_forward(packed, nfeat, tfeat, positions):
    bsz, l = nfeat.shape
    assert bsz == B and l == L
    bl = bsz * l

    tf = tfeat.astype(jnp.float32) / TIME_SCALOR
    spans = jnp.clip(tf[:, 1:] - tf[:, :-1], 0.0, 100.0)
    timespans = jnp.concatenate([spans[:, :1], spans], axis=1)            # (B, L)

    event_idx = jnp.where(nfeat == MASK_CONST, 0, nfeat)
    marks_id = packed["mark_lookup"][event_idx].astype(jnp.float32)       # (B, L, M)
    mask = jnp.sign(nfeat).astype(jnp.float32)                            # (B, L)

    q_emb = packed["embedding"][nfeat] * math.sqrt(D)                     # (B, L, D)
    ecodings = jnp.einsum("blm,md->bld", marks_id, packed["ecoding"])
    tcodings = time_sinusoid(tf, D)
    pcodings = jnp.broadcast_to(packed["pcoding"][None], (bsz, l, D))
    x0 = jnp.concatenate([q_emb + tcodings, pcodings, ecodings],
                         axis=2).reshape(bl, 3 * D)                       # (BL, 3D)

    ts_col = timespans.reshape(bl, 1)
    marks_f = marks_id.reshape(bl, M)
    # attention-allow mask: same batch AND key not padded (precomputed once)
    bid = jnp.arange(bl, dtype=jnp.int32) // l
    same_batch = bid[:, None] == bid[None, :]
    key_ok = mask.reshape(bl) != 0.0
    allow = (same_batch & key_ok[None, :]).astype(jnp.float32)            # (BL, BL)

    pad_cols = 128 - (3 * D + 1 + M + bl)
    data = jnp.concatenate(
        [x0, ts_col, marks_f, allow, jnp.zeros((bl, pad_cols), jnp.float32)],
        axis=1)                                                           # (BL, 128)

    out = pl.pallas_call(
        fused_kernel,
        out_shape=jax.ShapeDtypeStruct((bl, VPAD), jnp.float32),
        in_specs=[pl.BlockSpec(memory_space=pltpu.MemorySpace.VMEM)] * 3,
        out_specs=pl.BlockSpec(memory_space=pltpu.MemorySpace.VMEM),
    )(data, packed["layer_slab"], packed["head_slab"])

    # wrapper-side gather of masked positions + vocab un-padding
    logits_full = out.reshape(bsz, l, VPAD)
    idx = jnp.broadcast_to(positions[:, :, None].astype(jnp.int32),
                           (bsz, positions.shape[1], VPAD))
    gathered = jnp.take_along_axis(logits_full, idx, axis=1)              # (B, P, 128)
    return gathered[:, :, :V]


if __name__ == "__main__":
    key = jax.random.PRNGKey(0)
    kp, kn, kt = jax.random.split(key, 3)
    params = init_params(kp)
    packed = pack_params(params)

    nfeat = jax.random.randint(kn, (B, L), 1, N_CLASSES + 1).astype(jnp.int32)
    nfeat = nfeat.at[0, 0].set(0)                       # a padding position
    nfeat = nfeat.at[:, -MASK_LEN:].set(MASK_CONST)     # masked positions
    tfeat = jnp.sort(jax.random.uniform(kt, (B, L), minval=0.0, maxval=50.0), axis=1)
    positions = jnp.tile(jnp.arange(L - MASK_LEN, L, dtype=jnp.int32)[None], (B, 1))

    logits = jax.jit(recommender_forward)(packed, nfeat, tfeat, positions)
    jax.block_until_ready(logits)
    assert logits.shape == (B, MASK_LEN, V) and logits.dtype == jnp.float32
    assert bool(jnp.all(jnp.isfinite(logits)))
    print("KERNEL_OK")
</pallas_src>

<mosaic_0001>
module attributes {stable_mosaic.version = 11 : i64} {
  func.func @fused_kernel(%arg0: memref<16x128xf32, #tpu.memory_space<vmem>>, %arg1: memref<2x272x128xf32, #tpu.memory_space<vmem>>, %arg2: memref<168x128xf32, #tpu.memory_space<vmem>>, %arg3: memref<16x128xf32, #tpu.memory_space<vmem>>) attributes {dimension_semantics = [], scalar_prefetch = 0 : i64, scratch_operands = 0 : i64, tpu.core_type = #tpu.core_type<tc>} {
    %c0 = arith.constant 0 : index
    %c0_0 = arith.constant 0 : index
    %0 = vector.load %arg0[%c0, %c0_0] : memref<16x128xf32, #tpu.memory_space<vmem>>, vector<16x96xf32>
    %c0_1 = arith.constant 0 : index
    %c96 = arith.constant 96 : index
    %1 = vector.load %arg0[%c0_1, %c96] : memref<16x128xf32, #tpu.memory_space<vmem>>, vector<16x1xf32>
    %c0_2 = arith.constant 0 : index
    %c97 = arith.constant 97 : index
    %2 = vector.load %arg0[%c0_2, %c97] : memref<16x128xf32, #tpu.memory_space<vmem>>, vector<16x3xf32>
    %c0_3 = arith.constant 0 : index
    %c100 = arith.constant 100 : index
    %3 = vector.load %arg0[%c0_3, %c100] : memref<16x128xf32, #tpu.memory_space<vmem>>, vector<16x16xf32>
    %cst = arith.constant 0.000000e+00 : f32
    %4 = vector.broadcast %cst : f32 to vector<16x16xf32>
    %5 = arith.cmpf one, %3, %4 : vector<16x16xf32>
    %6 = vector.shape_cast %1 : vector<16x1xf32> to vector<1x16x1xf32>
    %7 = vector.shape_cast %6 : vector<1x16x1xf32> to vector<1x16x1xf32>
    %8 = vector.broadcast %7 : vector<1x16x1xf32> to vector<4x16x1xf32>
    %9 = vector.shape_cast %8 : vector<4x16x1xf32> to vector<64x1xf32>
    %c0_4 = arith.constant 0 : index
    %c0_5 = arith.constant 0 : index
    %c0_6 = arith.constant 0 : index
    %10 = vector.load %arg1[%c0_4, %c0_5, %c0_6] : memref<2x272x128xf32, #tpu.memory_space<vmem>>, vector<1x96x128xf32>
    %11 = vector.shape_cast %10 : vector<1x96x128xf32> to vector<96x128xf32>
    %cst_7 = arith.constant dense<0.000000e+00> : vector<16x128xf32>
    %12 = tpu.matmul %0, %11, %cst_7 {dimension_numbers = #tpu.dot_dimension_numbers<[1], [0], [0], [1], [0, 0, 1, 1], [], []>} : vector<16x96xf32>, vector<96x128xf32>, vector<16x128xf32> -> vector<16x128xf32>
    %13 = vector.extract_strided_slice %12 {offsets = [0, 0], sizes = [16, 32], strides = [1, 1]} : vector<16x128xf32> to vector<16x32xf32>
    %14 = vector.extract_strided_slice %12 {offsets = [0, 32], sizes = [16, 32], strides = [1, 1]} : vector<16x128xf32> to vector<16x32xf32>
    %15 = vector.extract_strided_slice %12 {offsets = [0, 64], sizes = [16, 32], strides = [1, 1]} : vector<16x128xf32> to vector<16x32xf32>
    %16 = vector.extract_strided_slice %12 {offsets = [0, 96], sizes = [16, 32], strides = [1, 1]} : vector<16x128xf32> to vector<16x32xf32>
    %17 = vector.shape_cast %13 : vector<16x32xf32> to vector<1x16x32xf32>
    %18 = vector.shape_cast %14 : vector<16x32xf32> to vector<1x16x32xf32>
    %19 = vector.shape_cast %15 : vector<16x32xf32> to vector<1x16x32xf32>
    %20 = vector.shape_cast %16 : vector<16x32xf32> to vector<1x16x32xf32>
    %21 = tpu.concatenate %17, %18, %19, %20 in 0 : vector<1x16x32xf32>, vector<1x16x32xf32>, vector<1x16x32xf32>, vector<1x16x32xf32> -> vector<4x16x32xf32>
    %22 = vector.extract_strided_slice %21 {offsets = [0, 0, 0], sizes = [4, 16, 8], strides = [1, 1, 1]} : vector<4x16x32xf32> to vector<4x16x8xf32>
    %23 = vector.extract_strided_slice %21 {offsets = [0, 0, 8], sizes = [4, 16, 8], strides = [1, 1, 1]} : vector<4x16x32xf32> to vector<4x16x8xf32>
    %24 = vector.extract_strided_slice %21 {offsets = [0, 0, 16], sizes = [4, 16, 8], strides = [1, 1, 1]} : vector<4x16x32xf32> to vector<4x16x8xf32>
    %25 = vector.extract_strided_slice %21 {offsets = [0, 0, 24], sizes = [4, 16, 8], strides = [1, 1, 1]} : vector<4x16x32xf32> to vector<4x16x8xf32>
    "tpu.trace_start"() <{level = 10 : i32, message = "hqd,hkd->hqk"}> : () -> ()
    %cst_8 = arith.constant dense<0.000000e+00> : vector<4x16x16xf32>
    %26 = tpu.matmul %22, %23, %cst_8 {dimension_numbers = #tpu.dot_dimension_numbers<[2], [2], [1], [1], [0, 0, 0, 1, 1, 1], [0], [0]>} : vector<4x16x8xf32>, vector<4x16x8xf32>, vector<4x16x16xf32> -> vector<4x16x16xf32>
    "tpu.trace_stop"() : () -> ()
    %cst_9 = arith.constant 0.176776692 : f32
    %27 = vector.broadcast %cst_9 : f32 to vector<4x16x16xf32>
    %28 = arith.mulf %26, %27 : vector<4x16x16xf32>
    %cst_10 = arith.constant -4.2949673E+9 : f32
    %29 = vector.shape_cast %5 : vector<16x16xi1> to vector<1x16x16xi1>
    %30 = vector.broadcast %29 : vector<1x16x16xi1> to vector<4x16x16xi1>
    %31 = vector.broadcast %cst_10 : f32 to vector<4x16x16xf32>
    %32 = arith.select %30, %28, %31 : vector<4x16x16xi1>, vector<4x16x16xf32>
    %cst_11 = arith.constant dense<0xFF800000> : vector<4x16xf32>
    %33 = vector.multi_reduction <maximumf>, %32, %cst_11 [2] : vector<4x16x16xf32> to vector<4x16xf32>
    %34 = vector.shape_cast %33 : vector<4x16xf32> to vector<4x16x1xf32>
    %35 = vector.broadcast %34 : vector<4x16x1xf32> to vector<4x16x16xf32>
    %36 = arith.subf %32, %35 : vector<4x16x16xf32>
    %37 = math.exp %36 : vector<4x16x16xf32>
    %cst_12 = arith.constant dense<0.000000e+00> : vector<4x16xf32>
    %38 = vector.multi_reduction <add>, %37, %cst_12 [2] : vector<4x16x16xf32> to vector<4x16xf32>
    %39 = vector.shape_cast %38 : vector<4x16xf32> to vector<4x16x1xf32>
    %40 = vector.broadcast %39 : vector<4x16x1xf32> to vector<4x16x16xf32>
    %41 = arith.divf %37, %40 : vector<4x16x16xf32>
    "tpu.trace_start"() <{level = 10 : i32, message = "hqk,hkd->hqd"}> : () -> ()
    %cst_13 = arith.constant dense<0.000000e+00> : vector<4x16x8xf32>
    %42 = tpu.matmul %41, %25, %cst_13 {dimension_numbers = #tpu.dot_dimension_numbers<[2], [1], [1], [2], [0, 0, 0, 1, 1, 2], [0], [0]>} : vector<4x16x16xf32>, vector<4x16x8xf32>, vector<4x16x8xf32> -> vector<4x16x8xf32>
    "tpu.trace_stop"() : () -> ()
    %c0_14 = arith.constant 0 : index
    %c224 = arith.constant 224 : index
    %c0_15 = arith.constant 0 : index
    %43 = vector.load %arg1[%c0_14, %c224, %c0_15] : memref<2x272x128xf32, #tpu.memory_space<vmem>>, vector<1x8x24xf32>
    %44 = vector.shape_cast %43 : vector<1x8x24xf32> to vector<8x24xf32>
    %c0_16 = arith.constant 0 : index
    %c232 = arith.constant 232 : index
    %c0_17 = arith.constant 0 : index
    %45 = vector.load %arg1[%c0_16, %c232, %c0_17] : memref<2x272x128xf32, #tpu.memory_space<vmem>>, vector<1x24x3xf32>
    %46 = vector.shape_cast %45 : vector<1x24x3xf32> to vector<24x3xf32>
    %c0_18 = arith.constant 0 : index
    %c256 = arith.constant 256 : index
    %c0_19 = arith.constant 0 : index
    %47 = vector.load %arg1[%c0_18, %c256, %c0_19] : memref<2x272x128xf32, #tpu.memory_space<vmem>>, vector<1x1x24xf32>
    %48 = vector.shape_cast %47 : vector<1x1x24xf32> to vector<1x24xf32>
    %c0_20 = arith.constant 0 : index
    %c257 = arith.constant 257 : index
    %c0_21 = arith.constant 0 : index
    %49 = vector.load %arg1[%c0_20, %c257, %c0_21] : memref<2x272x128xf32, #tpu.memory_space<vmem>>, vector<1x1x24xf32>
    %50 = vector.shape_cast %49 : vector<1x1x24xf32> to vector<1x24xf32>
    %c0_22 = arith.constant 0 : index
    %c258 = arith.constant 258 : index
    %c0_23 = arith.constant 0 : index
    %51 = vector.load %arg1[%c0_22, %c258, %c0_23] : memref<2x272x128xf32, #tpu.memory_space<vmem>>, vector<1x1x3xf32>
    %52 = vector.shape_cast %51 : vector<1x1x3xf32> to vector<1x3xf32>
    %53 = vector.shape_cast %42 : vector<4x16x8xf32> to vector<64x8xf32>
    %cst_24 = arith.constant dense<0.000000e+00> : vector<64x24xf32>
    %54 = tpu.matmul %53, %44, %cst_24 {dimension_numbers = #tpu.dot_dimension_numbers<[1], [0], [0], [1], [0, 0, 1, 1], [], []>} : vector<64x8xf32>, vector<8x24xf32>, vector<64x24xf32> -> vector<64x24xf32>
    %55 = vector.broadcast %9 : vector<64x1xf32> to vector<64x24xf32>
    %56 = vector.broadcast %48 : vector<1x24xf32> to vector<64x24xf32>
    %57 = arith.mulf %55, %56 : vector<64x24xf32>
    %58 = arith.addf %54, %57 : vector<64x24xf32>
    %59 = vector.broadcast %50 : vector<1x24xf32> to vector<64x24xf32>
    %60 = arith.addf %58, %59 : vector<64x24xf32>
    %61 = arith.negf %60 : vector<64x24xf32>
    %62 = math.exp %61 : vector<64x24xf32>
    %cst_25 = arith.constant 1.000000e+00 : f32
    %63 = vector.broadcast %cst_25 : f32 to vector<64x24xf32>
    %64 = arith.addf %63, %62 : vector<64x24xf32>
    %65 = arith.divf %63, %64 : vector<64x24xf32>
    %cst_26 = arith.constant dense<0.000000e+00> : vector<64x3xf32>
    %66 = tpu.matmul %65, %46, %cst_26 {dimension_numbers = #tpu.dot_dimension_numbers<[1], [0], [0], [1], [0, 0, 1, 1], [], []>} : vector<64x24xf32>, vector<24x3xf32>, vector<64x3xf32> -> vector<64x3xf32>
    %67 = math.exp %52 : vector<1x3xf32>
    %cst_27 = arith.constant 0.000000e+00 : f32
    %68 = vector.broadcast %cst_27 : f32 to vector<1x3xf32>
    %69 = arith.subf %68, %52 : vector<1x3xf32>
    %70 = math.exp %69 : vector<1x3xf32>
    %71 = vector.broadcast %70 : vector<1x3xf32> to vector<64x3xf32>
    %72 = arith.mulf %66, %71 : vector<64x3xf32>
    %cst_28 = arith.constant 0.000000e+00 : f32
    %73 = vector.broadcast %cst_28 : f32 to vector<64x3xf32>
    %74 = arith.maximumf %72, %73 : vector<64x3xf32>
    %75 = math.absf %72 : vector<64x3xf32>
    %cst_29 = arith.constant 0.000000e+00 : f32
    %76 = vector.broadcast %cst_29 : f32 to vector<64x3xf32>
    %77 = arith.subf %76, %75 : vector<64x3xf32>
    %78 = math.exp %77 : vector<64x3xf32>
    %cst_30 = arith.constant 1.000000e+00 : f32
    %79 = vector.broadcast %cst_30 : f32 to vector<64x3xf32>
    %80 = arith.addf %79, %78 : vector<64x3xf32>
    %81 = math.log %80 : vector<64x3xf32>
    %82 = arith.addf %74, %81 : vector<64x3xf32>
    %83 = vector.broadcast %67 : vector<1x3xf32> to vector<64x3xf32>
    %84 = arith.mulf %83, %82 : vector<64x3xf32>
    %cst_31 = arith.constant dense<0.000000e+00> : vector<64x16xf32>
    %85 = tpu.matmul %84, %2, %cst_31 {dimension_numbers = #tpu.dot_dimension_numbers<[1], [1], [0], [0], [0, 0, 1, 0], [], []>} : vector<64x3xf32>, vector<16x3xf32>, vector<64x16xf32> -> vector<64x16xf32>
    %86 = vector.shape_cast %85 : vector<64x16xf32> to vector<4x16x16xf32>
    %87 = arith.mulf %41, %86 : vector<4x16x16xf32>
    "tpu.trace_start"() <{level = 10 : i32, message = "hqk,hkd->hqd"}> : () -> ()
    %cst_32 = arith.constant dense<0.000000e+00> : vector<4x16x8xf32>
    %88 = tpu.matmul %87, %24, %cst_32 {dimension_numbers = #tpu.dot_dimension_numbers<[2], [1], [1], [2], [0, 0, 0, 1, 1, 2], [0], [0]>} : vector<4x16x16xf32>, vector<4x16x8xf32>, vector<4x16x8xf32> -> vector<4x16x8xf32>
    "tpu.trace_stop"() : () -> ()
    %89 = vector.extract_strided_slice %88 {offsets = [0, 0, 0], sizes = [1, 16, 8], strides = [1, 1, 1]} : vector<4x16x8xf32> to vector<1x16x8xf32>
    %90 = vector.shape_cast %89 : vector<1x16x8xf32> to vector<16x8xf32>
    %91 = vector.extract_strided_slice %88 {offsets = [1, 0, 0], sizes = [1, 16, 8], strides = [1, 1, 1]} : vector<4x16x8xf32> to vector<1x16x8xf32>
    %92 = vector.shape_cast %91 : vector<1x16x8xf32> to vector<16x8xf32>
    %93 = vector.extract_strided_slice %88 {offsets = [2, 0, 0], sizes = [1, 16, 8], strides = [1, 1, 1]} : vector<4x16x8xf32> to vector<1x16x8xf32>
    %94 = vector.shape_cast %93 : vector<1x16x8xf32> to vector<16x8xf32>
    %95 = vector.extract_strided_slice %88 {offsets = [3, 0, 0], sizes = [1, 16, 8], strides = [1, 1, 1]} : vector<4x16x8xf32> to vector<1x16x8xf32>
    %96 = vector.shape_cast %95 : vector<1x16x8xf32> to vector<16x8xf32>
    %97 = tpu.concatenate %90, %92, %94, %96 in 1 : vector<16x8xf32>, vector<16x8xf32>, vector<16x8xf32>, vector<16x8xf32> -> vector<16x32xf32>
    %98 = vector.extract_strided_slice %0 {offsets = [0, 0], sizes = [16, 32], strides = [1, 1]} : vector<16x96xf32> to vector<16x32xf32>
    %99 = arith.addf %97, %98 : vector<16x32xf32>
    %c0_33 = arith.constant 0 : index
    %c96_34 = arith.constant 96 : index
    %c0_35 = arith.constant 0 : index
    %100 = vector.load %arg1[%c0_33, %c96_34, %c0_35] : memref<2x272x128xf32, #tpu.memory_space<vmem>>, vector<1x32x32xf32>
    %101 = vector.shape_cast %100 : vector<1x32x32xf32> to vector<32x32xf32>
    %c0_36 = arith.constant 0 : index
    %c259 = arith.constant 259 : index
    %c0_37 = arith.constant 0 : index
    %102 = vector.load %arg1[%c0_36, %c259, %c0_37] : memref<2x272x128xf32, #tpu.memory_space<vmem>>, vector<1x1x32xf32>
    %103 = vector.shape_cast %102 : vector<1x1x32xf32> to vector<1x32xf32>
    %c0_38 = arith.constant 0 : index
    %c260 = arith.constant 260 : index
    %c0_39 = arith.constant 0 : index
    %104 = vector.load %arg1[%c0_38, %c260, %c0_39] : memref<2x272x128xf32, #tpu.memory_space<vmem>>, vector<1x1x32xf32>
    %105 = vector.shape_cast %104 : vector<1x1x32xf32> to vector<1x32xf32>
    %c0_40 = arith.constant 0 : index
    %c261 = arith.constant 261 : index
    %c0_41 = arith.constant 0 : index
    %106 = vector.load %arg1[%c0_40, %c261, %c0_41] : memref<2x272x128xf32, #tpu.memory_space<vmem>>, vector<1x1x32xf32>
    %107 = vector.shape_cast %106 : vector<1x1x32xf32> to vector<1x32xf32>
    %c0_42 = arith.constant 0 : index
    %c128 = arith.constant 128 : index
    %c0_43 = arith.constant 0 : index
    %108 = vector.load %arg1[%c0_42, %c128, %c0_43] : memref<2x272x128xf32, #tpu.memory_space<vmem>>, vector<1x32x64xf32>
    %109 = vector.shape_cast %108 : vector<1x32x64xf32> to vector<32x64xf32>
    %c0_44 = arith.constant 0 : index
    %c262 = arith.constant 262 : index
    %c0_45 = arith.constant 0 : index
    %110 = vector.load %arg1[%c0_44, %c262, %c0_45] : memref<2x272x128xf32, #tpu.memory_space<vmem>>, vector<1x1x64xf32>
    %111 = vector.shape_cast %110 : vector<1x1x64xf32> to vector<1x64xf32>
    %c0_46 = arith.constant 0 : index
    %c160 = arith.constant 160 : index
    %c0_47 = arith.constant 0 : index
    %112 = vector.load %arg1[%c0_46, %c160, %c0_47] : memref<2x272x128xf32, #tpu.memory_space<vmem>>, vector<1x64x32xf32>
    %113 = vector.shape_cast %112 : vector<1x64x32xf32> to vector<64x32xf32>
    %c0_48 = arith.constant 0 : index
    %c263 = arith.constant 263 : index
    %c0_49 = arith.constant 0 : index
    %114 = vector.load %arg1[%c0_48, %c263, %c0_49] : memref<2x272x128xf32, #tpu.memory_space<vmem>>, vector<1x1x32xf32>
    %115 = vector.shape_cast %114 : vector<1x1x32xf32> to vector<1x32xf32>
    %c0_50 = arith.constant 0 : index
    %c264 = arith.constant 264 : index
    %c0_51 = arith.constant 0 : index
    %116 = vector.load %arg1[%c0_50, %c264, %c0_51] : memref<2x272x128xf32, #tpu.memory_space<vmem>>, vector<1x1x32xf32>
    %117 = vector.shape_cast %116 : vector<1x1x32xf32> to vector<1x32xf32>
    %c0_52 = arith.constant 0 : index
    %c265 = arith.constant 265 : index
    %c0_53 = arith.constant 0 : index
    %118 = vector.load %arg1[%c0_52, %c265, %c0_53] : memref<2x272x128xf32, #tpu.memory_space<vmem>>, vector<1x1x32xf32>
    %119 = vector.shape_cast %118 : vector<1x1x32xf32> to vector<1x32xf32>
    %cst_54 = arith.constant dense<0.000000e+00> : vector<16x32xf32>
    %120 = tpu.matmul %99, %101, %cst_54 {dimension_numbers = #tpu.dot_dimension_numbers<[1], [0], [0], [1], [0, 0, 1, 1], [], []>} : vector<16x32xf32>, vector<32x32xf32>, vector<16x32xf32> -> vector<16x32xf32>
    %121 = vector.broadcast %103 : vector<1x32xf32> to vector<16x32xf32>
    %122 = arith.addf %120, %121 : vector<16x32xf32>
    %123 = arith.addf %122, %98 : vector<16x32xf32>
    %cst_55 = arith.constant dense<0.000000e+00> : vector<16xf32>
    %124 = vector.multi_reduction <add>, %123, %cst_55 [1] : vector<16x32xf32> to vector<16xf32>
    %125 = vector.shape_cast %124 : vector<16xf32> to vector<16x1xf32>
    %cst_56 = arith.constant 3.200000e+01 : f32
    %126 = vector.broadcast %cst_56 : f32 to vector<16x1xf32>
    %127 = arith.divf %125, %126 : vector<16x1xf32>
    %128 = vector.broadcast %127 : vector<16x1xf32> to vector<16x32xf32>
    %129 = arith.subf %123, %128 : vector<16x32xf32>
    %130 = arith.mulf %129, %129 : vector<16x32xf32>
    %cst_57 = arith.constant dense<0.000000e+00> : vector<16xf32>
    %131 = vector.multi_reduction <add>, %130, %cst_57 [1] : vector<16x32xf32> to vector<16xf32>
    %132 = vector.shape_cast %131 : vector<16xf32> to vector<16x1xf32>
    %cst_58 = arith.constant 3.200000e+01 : f32
    %133 = vector.broadcast %cst_58 : f32 to vector<16x1xf32>
    %134 = arith.divf %132, %133 : vector<16x1xf32>
    %135 = vector.broadcast %127 : vector<16x1xf32> to vector<16x32xf32>
    %136 = arith.subf %123, %135 : vector<16x32xf32>
    %cst_59 = arith.constant 9.99999974E-6 : f32
    %137 = vector.broadcast %cst_59 : f32 to vector<16x1xf32>
    %138 = arith.addf %134, %137 : vector<16x1xf32>
    %139 = math.rsqrt %138 : vector<16x1xf32>
    %140 = vector.broadcast %139 : vector<16x1xf32> to vector<16x32xf32>
    %141 = arith.mulf %136, %140 : vector<16x32xf32>
    %142 = vector.broadcast %105 : vector<1x32xf32> to vector<16x32xf32>
    %143 = arith.mulf %141, %142 : vector<16x32xf32>
    %144 = vector.broadcast %107 : vector<1x32xf32> to vector<16x32xf32>
    %145 = arith.addf %143, %144 : vector<16x32xf32>
    %cst_60 = arith.constant dense<0.000000e+00> : vector<16x64xf32>
    %146 = tpu.matmul %145, %109, %cst_60 {dimension_numbers = #tpu.dot_dimension_numbers<[1], [0], [0], [1], [0, 0, 1, 1], [], []>} : vector<16x32xf32>, vector<32x64xf32>, vector<16x64xf32> -> vector<16x64xf32>
    %147 = vector.broadcast %111 : vector<1x64xf32> to vector<16x64xf32>
    %148 = arith.addf %146, %147 : vector<16x64xf32>
    %cst_61 = arith.constant 5.000000e-01 : f32
    %149 = vector.broadcast %cst_61 : f32 to vector<16x64xf32>
    %150 = arith.mulf %149, %148 : vector<16x64xf32>
    %cst_62 = arith.constant 0.707106769 : f32
    %151 = vector.broadcast %cst_62 : f32 to vector<16x64xf32>
    %152 = arith.mulf %148, %151 : vector<16x64xf32>
    %153 = math.erf %152 : vector<16x64xf32>
    %cst_63 = arith.constant 1.000000e+00 : f32
    %154 = vector.broadcast %cst_63 : f32 to vector<16x64xf32>
    %155 = arith.addf %154, %153 : vector<16x64xf32>
    %156 = arith.mulf %150, %155 : vector<16x64xf32>
    %cst_64 = arith.constant dense<0.000000e+00> : vector<16x32xf32>
    %157 = tpu.matmul %156, %113, %cst_64 {dimension_numbers = #tpu.dot_dimension_numbers<[1], [0], [0], [1], [0, 0, 1, 1], [], []>} : vector<16x64xf32>, vector<64x32xf32>, vector<16x32xf32> -> vector<16x32xf32>
    %158 = vector.broadcast %115 : vector<1x32xf32> to vector<16x32xf32>
    %159 = arith.addf %157, %158 : vector<16x32xf32>
    %160 = arith.addf %159, %145 : vector<16x32xf32>
    %cst_65 = arith.constant dense<0.000000e+00> : vector<16xf32>
    %161 = vector.multi_reduction <add>, %160, %cst_65 [1] : vector<16x32xf32> to vector<16xf32>
    %162 = vector.shape_cast %161 : vector<16xf32> to vector<16x1xf32>
    %cst_66 = arith.constant 3.200000e+01 : f32
    %163 = vector.broadcast %cst_66 : f32 to vector<16x1xf32>
    %164 = arith.divf %162, %163 : vector<16x1xf32>
    %165 = vector.broadcast %164 : vector<16x1xf32> to vector<16x32xf32>
    %166 = arith.subf %160, %165 : vector<16x32xf32>
    %167 = arith.mulf %166, %166 : vector<16x32xf32>
    %cst_67 = arith.constant dense<0.000000e+00> : vector<16xf32>
    %168 = vector.multi_reduction <add>, %167, %cst_67 [1] : vector<16x32xf32> to vector<16xf32>
    %169 = vector.shape_cast %168 : vector<16xf32> to vector<16x1xf32>
    %cst_68 = arith.constant 3.200000e+01 : f32
    %170 = vector.broadcast %cst_68 : f32 to vector<16x1xf32>
    %171 = arith.divf %169, %170 : vector<16x1xf32>
    %172 = vector.broadcast %164 : vector<16x1xf32> to vector<16x32xf32>
    %173 = arith.subf %160, %172 : vector<16x32xf32>
    %cst_69 = arith.constant 9.99999974E-6 : f32
    %174 = vector.broadcast %cst_69 : f32 to vector<16x1xf32>
    %175 = arith.addf %171, %174 : vector<16x1xf32>
    %176 = math.rsqrt %175 : vector<16x1xf32>
    %177 = vector.broadcast %176 : vector<16x1xf32> to vector<16x32xf32>
    %178 = arith.mulf %173, %177 : vector<16x32xf32>
    %179 = vector.broadcast %117 : vector<1x32xf32> to vector<16x32xf32>
    %180 = arith.mulf %178, %179 : vector<16x32xf32>
    %181 = vector.broadcast %119 : vector<1x32xf32> to vector<16x32xf32>
    %182 = arith.addf %180, %181 : vector<16x32xf32>
    %c1 = arith.constant 1 : index
    %c0_70 = arith.constant 0 : index
    %c0_71 = arith.constant 0 : index
    %183 = vector.load %arg1[%c1, %c0_70, %c0_71] : memref<2x272x128xf32, #tpu.memory_space<vmem>>, vector<1x32x128xf32>
    %184 = vector.shape_cast %183 : vector<1x32x128xf32> to vector<32x128xf32>
    %cst_72 = arith.constant dense<0.000000e+00> : vector<16x128xf32>
    %185 = tpu.matmul %182, %184, %cst_72 {dimension_numbers = #tpu.dot_dimension_numbers<[1], [0], [0], [1], [0, 0, 1, 1], [], []>} : vector<16x32xf32>, vector<32x128xf32>, vector<16x128xf32> -> vector<16x128xf32>
    %186 = vector.extract_strided_slice %185 {offsets = [0, 0], sizes = [16, 32], strides = [1, 1]} : vector<16x128xf32> to vector<16x32xf32>
    %187 = vector.extract_strided_slice %185 {offsets = [0, 32], sizes = [16, 32], strides = [1, 1]} : vector<16x128xf32> to vector<16x32xf32>
    %188 = vector.extract_strided_slice %185 {offsets = [0, 64], sizes = [16, 32], strides = [1, 1]} : vector<16x128xf32> to vector<16x32xf32>
    %189 = vector.extract_strided_slice %185 {offsets = [0, 96], sizes = [16, 32], strides = [1, 1]} : vector<16x128xf32> to vector<16x32xf32>
    %190 = vector.shape_cast %186 : vector<16x32xf32> to vector<1x16x32xf32>
    %191 = vector.shape_cast %187 : vector<16x32xf32> to vector<1x16x32xf32>
    %192 = vector.shape_cast %188 : vector<16x32xf32> to vector<1x16x32xf32>
    %193 = vector.shape_cast %189 : vector<16x32xf32> to vector<1x16x32xf32>
    %194 = tpu.concatenate %190, %191, %192, %193 in 0 : vector<1x16x32xf32>, vector<1x16x32xf32>, vector<1x16x32xf32>, vector<1x16x32xf32> -> vector<4x16x32xf32>
    %195 = vector.extract_strided_slice %194 {offsets = [0, 0, 0], sizes = [4, 16, 8], strides = [1, 1, 1]} : vector<4x16x32xf32> to vector<4x16x8xf32>
    %196 = vector.extract_strided_slice %194 {offsets = [0, 0, 8], sizes = [4, 16, 8], strides = [1, 1, 1]} : vector<4x16x32xf32> to vector<4x16x8xf32>
    %197 = vector.extract_strided_slice %194 {offsets = [0, 0, 16], sizes = [4, 16, 8], strides = [1, 1, 1]} : vector<4x16x32xf32> to vector<4x16x8xf32>
    %198 = vector.extract_strided_slice %194 {offsets = [0, 0, 24], sizes = [4, 16, 8], strides = [1, 1, 1]} : vector<4x16x32xf32> to vector<4x16x8xf32>
    "tpu.trace_start"() <{level = 10 : i32, message = "hqd,hkd->hqk"}> : () -> ()
    %cst_73 = arith.constant dense<0.000000e+00> : vector<4x16x16xf32>
    %199 = tpu.matmul %195, %196, %cst_73 {dimension_numbers = #tpu.dot_dimension_numbers<[2], [2], [1], [1], [0, 0, 0, 1, 1, 1], [0], [0]>} : vector<4x16x8xf32>, vector<4x16x8xf32>, vector<4x16x16xf32> -> vector<4x16x16xf32>
    "tpu.trace_stop"() : () -> ()
    %cst_74 = arith.constant 0.176776692 : f32
    %200 = vector.broadcast %cst_74 : f32 to vector<4x16x16xf32>
    %201 = arith.mulf %199, %200 : vector<4x16x16xf32>
    %cst_75 = arith.constant -4.2949673E+9 : f32
    %202 = vector.shape_cast %5 : vector<16x16xi1> to vector<1x16x16xi1>
    %203 = vector.broadcast %202 : vector<1x16x16xi1> to vector<4x16x16xi1>
    %204 = vector.broadcast %cst_75 : f32 to vector<4x16x16xf32>
    %205 = arith.select %203, %201, %204 : vector<4x16x16xi1>, vector<4x16x16xf32>
    %cst_76 = arith.constant dense<0xFF800000> : vector<4x16xf32>
    %206 = vector.multi_reduction <maximumf>, %205, %cst_76 [2] : vector<4x16x16xf32> to vector<4x16xf32>
    %207 = vector.shape_cast %206 : vector<4x16xf32> to vector<4x16x1xf32>
    %208 = vector.broadcast %207 : vector<4x16x1xf32> to vector<4x16x16xf32>
    %209 = arith.subf %205, %208 : vector<4x16x16xf32>
    %210 = math.exp %209 : vector<4x16x16xf32>
    %cst_77 = arith.constant dense<0.000000e+00> : vector<4x16xf32>
    %211 = vector.multi_reduction <add>, %210, %cst_77 [2] : vector<4x16x16xf32> to vector<4x16xf32>
    %212 = vector.shape_cast %211 : vector<4x16xf32> to vector<4x16x1xf32>
    %213 = vector.broadcast %212 : vector<4x16x1xf32> to vector<4x16x16xf32>
    %214 = arith.divf %210, %213 : vector<4x16x16xf32>
    "tpu.trace_start"() <{level = 10 : i32, message = "hqk,hkd->hqd"}> : () -> ()
    %cst_78 = arith.constant dense<0.000000e+00> : vector<4x16x8xf32>
    %215 = tpu.matmul %214, %198, %cst_78 {dimension_numbers = #tpu.dot_dimension_numbers<[2], [1], [1], [2], [0, 0, 0, 1, 1, 2], [0], [0]>} : vector<4x16x16xf32>, vector<4x16x8xf32>, vector<4x16x8xf32> -> vector<4x16x8xf32>
    "tpu.trace_stop"() : () -> ()
    %c1_79 = arith.constant 1 : index
    %c224_80 = arith.constant 224 : index
    %c0_81 = arith.constant 0 : index
    %216 = vector.load %arg1[%c1_79, %c224_80, %c0_81] : memref<2x272x128xf32, #tpu.memory_space<vmem>>, vector<1x8x24xf32>
    %217 = vector.shape_cast %216 : vector<1x8x24xf32> to vector<8x24xf32>
    %c1_82 = arith.constant 1 : index
    %c232_83 = arith.constant 232 : index
    %c0_84 = arith.constant 0 : index
    %218 = vector.load %arg1[%c1_82, %c232_83, %c0_84] : memref<2x272x128xf32, #tpu.memory_space<vmem>>, vector<1x24x3xf32>
    %219 = vector.shape_cast %218 : vector<1x24x3xf32> to vector<24x3xf32>
    %c1_85 = arith.constant 1 : index
    %c256_86 = arith.constant 256 : index
    %c0_87 = arith.constant 0 : index
    %220 = vector.load %arg1[%c1_85, %c256_86, %c0_87] : memref<2x272x128xf32, #tpu.memory_space<vmem>>, vector<1x1x24xf32>
    %221 = vector.shape_cast %220 : vector<1x1x24xf32> to vector<1x24xf32>
    %c1_88 = arith.constant 1 : index
    %c257_89 = arith.constant 257 : index
    %c0_90 = arith.constant 0 : index
    %222 = vector.load %arg1[%c1_88, %c257_89, %c0_90] : memref<2x272x128xf32, #tpu.memory_space<vmem>>, vector<1x1x24xf32>
    %223 = vector.shape_cast %222 : vector<1x1x24xf32> to vector<1x24xf32>
    %c1_91 = arith.constant 1 : index
    %c258_92 = arith.constant 258 : index
    %c0_93 = arith.constant 0 : index
    %224 = vector.load %arg1[%c1_91, %c258_92, %c0_93] : memref<2x272x128xf32, #tpu.memory_space<vmem>>, vector<1x1x3xf32>
    %225 = vector.shape_cast %224 : vector<1x1x3xf32> to vector<1x3xf32>
    %226 = vector.shape_cast %215 : vector<4x16x8xf32> to vector<64x8xf32>
    %cst_94 = arith.constant dense<0.000000e+00> : vector<64x24xf32>
    %227 = tpu.matmul %226, %217, %cst_94 {dimension_numbers = #tpu.dot_dimension_numbers<[1], [0], [0], [1], [0, 0, 1, 1], [], []>} : vector<64x8xf32>, vector<8x24xf32>, vector<64x24xf32> -> vector<64x24xf32>
    %228 = vector.broadcast %9 : vector<64x1xf32> to vector<64x24xf32>
    %229 = vector.broadcast %221 : vector<1x24xf32> to vector<64x24xf32>
    %230 = arith.mulf %228, %229 : vector<64x24xf32>
    %231 = arith.addf %227, %230 : vector<64x24xf32>
    %232 = vector.broadcast %223 : vector<1x24xf32> to vector<64x24xf32>
    %233 = arith.addf %231, %232 : vector<64x24xf32>
    %234 = arith.negf %233 : vector<64x24xf32>
    %235 = math.exp %234 : vector<64x24xf32>
    %cst_95 = arith.constant 1.000000e+00 : f32
    %236 = vector.broadcast %cst_95 : f32 to vector<64x24xf32>
    %237 = arith.addf %236, %235 : vector<64x24xf32>
    %238 = arith.divf %236, %237 : vector<64x24xf32>
    %cst_96 = arith.constant dense<0.000000e+00> : vector<64x3xf32>
    %239 = tpu.matmul %238, %219, %cst_96 {dimension_numbers = #tpu.dot_dimension_numbers<[1], [0], [0], [1], [0, 0, 1, 1], [], []>} : vector<64x24xf32>, vector<24x3xf32>, vector<64x3xf32> -> vector<64x3xf32>
    %240 = math.exp %225 : vector<1x3xf32>
    %cst_97 = arith.constant 0.000000e+00 : f32
    %241 = vector.broadcast %cst_97 : f32 to vector<1x3xf32>
    %242 = arith.subf %241, %225 : vector<1x3xf32>
    %243 = math.exp %242 : vector<1x3xf32>
    %244 = vector.broadcast %243 : vector<1x3xf32> to vector<64x3xf32>
    %245 = arith.mulf %239, %244 : vector<64x3xf32>
    %cst_98 = arith.constant 0.000000e+00 : f32
    %246 = vector.broadcast %cst_98 : f32 to vector<64x3xf32>
    %247 = arith.maximumf %245, %246 : vector<64x3xf32>
    %248 = math.absf %245 : vector<64x3xf32>
    %cst_99 = arith.constant 0.000000e+00 : f32
    %249 = vector.broadcast %cst_99 : f32 to vector<64x3xf32>
    %250 = arith.subf %249, %248 : vector<64x3xf32>
    %251 = math.exp %250 : vector<64x3xf32>
    %cst_100 = arith.constant 1.000000e+00 : f32
    %252 = vector.broadcast %cst_100 : f32 to vector<64x3xf32>
    %253 = arith.addf %252, %251 : vector<64x3xf32>
    %254 = math.log %253 : vector<64x3xf32>
    %255 = arith.addf %247, %254 : vector<64x3xf32>
    %256 = vector.broadcast %240 : vector<1x3xf32> to vector<64x3xf32>
    %257 = arith.mulf %256, %255 : vector<64x3xf32>
    %cst_101 = arith.constant dense<0.000000e+00> : vector<64x16xf32>
    %258 = tpu.matmul %257, %2, %cst_101 {dimension_numbers = #tpu.dot_dimension_numbers<[1], [1], [0], [0], [0, 0, 1, 0], [], []>} : vector<64x3xf32>, vector<16x3xf32>, vector<64x16xf32> -> vector<64x16xf32>
    %259 = vector.shape_cast %258 : vector<64x16xf32> to vector<4x16x16xf32>
    %260 = arith.mulf %214, %259 : vector<4x16x16xf32>
    "tpu.trace_start"() <{level = 10 : i32, message = "hqk,hkd->hqd"}> : () -> ()
    %cst_102 = arith.constant dense<0.000000e+00> : vector<4x16x8xf32>
    %261 = tpu.matmul %260, %197, %cst_102 {dimension_numbers = #tpu.dot_dimension_numbers<[2], [1], [1], [2], [0, 0, 0, 1, 1, 2], [0], [0]>} : vector<4x16x16xf32>, vector<4x16x8xf32>, vector<4x16x8xf32> -> vector<4x16x8xf32>
    "tpu.trace_stop"() : () -> ()
    %262 = vector.extract_strided_slice %261 {offsets = [0, 0, 0], sizes = [1, 16, 8], strides = [1, 1, 1]} : vector<4x16x8xf32> to vector<1x16x8xf32>
    %263 = vector.shape_cast %262 : vector<1x16x8xf32> to vector<16x8xf32>
    %264 = vector.extract_strided_slice %261 {offsets = [1, 0, 0], sizes = [1, 16, 8], strides = [1, 1, 1]} : vector<4x16x8xf32> to vector<1x16x8xf32>
    %265 = vector.shape_cast %264 : vector<1x16x8xf32> to vector<16x8xf32>
    %266 = vector.extract_strided_slice %261 {offsets = [2, 0, 0], sizes = [1, 16, 8], strides = [1, 1, 1]} : vector<4x16x8xf32> to vector<1x16x8xf32>
    %267 = vector.shape_cast %266 : vector<1x16x8xf32> to vector<16x8xf32>
    %268 = vector.extract_strided_slice %261 {offsets = [3, 0, 0], sizes = [1, 16, 8], strides = [1, 1, 1]} : vector<4x16x8xf32> to vector<1x16x8xf32>
    %269 = vector.shape_cast %268 : vector<1x16x8xf32> to vector<16x8xf32>
    %270 = tpu.concatenate %263, %265, %267, %269 in 1 : vector<16x8xf32>, vector<16x8xf32>, vector<16x8xf32>, vector<16x8xf32> -> vector<16x32xf32>
    %271 = arith.addf %270, %182 : vector<16x32xf32>
    %c1_103 = arith.constant 1 : index
    %c96_104 = arith.constant 96 : index
    %c0_105 = arith.constant 0 : index
    %272 = vector.load %arg1[%c1_103, %c96_104, %c0_105] : memref<2x272x128xf32, #tpu.memory_space<vmem>>, vector<1x32x32xf32>
    %273 = vector.shape_cast %272 : vector<1x32x32xf32> to vector<32x32xf32>
    %c1_106 = arith.constant 1 : index
    %c259_107 = arith.constant 259 : index
    %c0_108 = arith.constant 0 : index
    %274 = vector.load %arg1[%c1_106, %c259_107, %c0_108] : memref<2x272x128xf32, #tpu.memory_space<vmem>>, vector<1x1x32xf32>
    %275 = vector.shape_cast %274 : vector<1x1x32xf32> to vector<1x32xf32>
    %c1_109 = arith.constant 1 : index
    %c260_110 = arith.constant 260 : index
    %c0_111 = arith.constant 0 : index
    %276 = vector.load %arg1[%c1_109, %c260_110, %c0_111] : memref<2x272x128xf32, #tpu.memory_space<vmem>>, vector<1x1x32xf32>
    %277 = vector.shape_cast %276 : vector<1x1x32xf32> to vector<1x32xf32>
    %c1_112 = arith.constant 1 : index
    %c261_113 = arith.constant 261 : index
    %c0_114 = arith.constant 0 : index
    %278 = vector.load %arg1[%c1_112, %c261_113, %c0_114] : memref<2x272x128xf32, #tpu.memory_space<vmem>>, vector<1x1x32xf32>
    %279 = vector.shape_cast %278 : vector<1x1x32xf32> to vector<1x32xf32>
    %c1_115 = arith.constant 1 : index
    %c128_116 = arith.constant 128 : index
    %c0_117 = arith.constant 0 : index
    %280 = vector.load %arg1[%c1_115, %c128_116, %c0_117] : memref<2x272x128xf32, #tpu.memory_space<vmem>>, vector<1x32x64xf32>
    %281 = vector.shape_cast %280 : vector<1x32x64xf32> to vector<32x64xf32>
    %c1_118 = arith.constant 1 : index
    %c262_119 = arith.constant 262 : index
    %c0_120 = arith.constant 0 : index
    %282 = vector.load %arg1[%c1_118, %c262_119, %c0_120] : memref<2x272x128xf32, #tpu.memory_space<vmem>>, vector<1x1x64xf32>
    %283 = vector.shape_cast %282 : vector<1x1x64xf32> to vector<1x64xf32>
    %c1_121 = arith.constant 1 : index
    %c160_122 = arith.constant 160 : index
    %c0_123 = arith.constant 0 : index
    %284 = vector.load %arg1[%c1_121, %c160_122, %c0_123] : memref<2x272x128xf32, #tpu.memory_space<vmem>>, vector<1x64x32xf32>
    %285 = vector.shape_cast %284 : vector<1x64x32xf32> to vector<64x32xf32>
    %c1_124 = arith.constant 1 : index
    %c263_125 = arith.constant 263 : index
    %c0_126 = arith.constant 0 : index
    %286 = vector.load %arg1[%c1_124, %c263_125, %c0_126] : memref<2x272x128xf32, #tpu.memory_space<vmem>>, vector<1x1x32xf32>
    %287 = vector.shape_cast %286 : vector<1x1x32xf32> to vector<1x32xf32>
    %c1_127 = arith.constant 1 : index
    %c264_128 = arith.constant 264 : index
    %c0_129 = arith.constant 0 : index
    %288 = vector.load %arg1[%c1_127, %c264_128, %c0_129] : memref<2x272x128xf32, #tpu.memory_space<vmem>>, vector<1x1x32xf32>
    %289 = vector.shape_cast %288 : vector<1x1x32xf32> to vector<1x32xf32>
    %c1_130 = arith.constant 1 : index
    %c265_131 = arith.constant 265 : index
    %c0_132 = arith.constant 0 : index
    %290 = vector.load %arg1[%c1_130, %c265_131, %c0_132] : memref<2x272x128xf32, #tpu.memory_space<vmem>>, vector<1x1x32xf32>
    %291 = vector.shape_cast %290 : vector<1x1x32xf32> to vector<1x32xf32>
    %cst_133 = arith.constant dense<0.000000e+00> : vector<16x32xf32>
    %292 = tpu.matmul %271, %273, %cst_133 {dimension_numbers = #tpu.dot_dimension_numbers<[1], [0], [0], [1], [0, 0, 1, 1], [], []>} : vector<16x32xf32>, vector<32x32xf32>, vector<16x32xf32> -> vector<16x32xf32>
    %293 = vector.broadcast %275 : vector<1x32xf32> to vector<16x32xf32>
    %294 = arith.addf %292, %293 : vector<16x32xf32>
    %295 = arith.addf %294, %182 : vector<16x32xf32>
    %cst_134 = arith.constant dense<0.000000e+00> : vector<16xf32>
    %296 = vector.multi_reduction <add>, %295, %cst_134 [1] : vector<16x32xf32> to vector<16xf32>
    %297 = vector.shape_cast %296 : vector<16xf32> to vector<16x1xf32>
    %cst_135 = arith.constant 3.200000e+01 : f32
    %298 = vector.broadcast %cst_135 : f32 to vector<16x1xf32>
    %299 = arith.divf %297, %298 : vector<16x1xf32>
    %300 = vector.broadcast %299 : vector<16x1xf32> to vector<16x32xf32>
    %301 = arith.subf %295, %300 : vector<16x32xf32>
    %302 = arith.mulf %301, %301 : vector<16x32xf32>
    %cst_136 = arith.constant dense<0.000000e+00> : vector<16xf32>
    %303 = vector.multi_reduction <add>, %302, %cst_136 [1] : vector<16x32xf32> to vector<16xf32>
    %304 = vector.shape_cast %303 : vector<16xf32> to vector<16x1xf32>
    %cst_137 = arith.constant 3.200000e+01 : f32
    %305 = vector.broadcast %cst_137 : f32 to vector<16x1xf32>
    %306 = arith.divf %304, %305 : vector<16x1xf32>
    %307 = vector.broadcast %299 : vector<16x1xf32> to vector<16x32xf32>
    %308 = arith.subf %295, %307 : vector<16x32xf32>
    %cst_138 = arith.constant 9.99999974E-6 : f32
    %309 = vector.broadcast %cst_138 : f32 to vector<16x1xf32>
    %310 = arith.addf %306, %309 : vector<16x1xf32>
    %311 = math.rsqrt %310 : vector<16x1xf32>
    %312 = vector.broadcast %311 : vector<16x1xf32> to vector<16x32xf32>
    %313 = arith.mulf %308, %312 : vector<16x32xf32>
    %314 = vector.broadcast %277 : vector<1x32xf32> to vector<16x32xf32>
    %315 = arith.mulf %313, %314 : vector<16x32xf32>
    %316 = vector.broadcast %279 : vector<1x32xf32> to vector<16x32xf32>
    %317 = arith.addf %315, %316 : vector<16x32xf32>
    %cst_139 = arith.constant dense<0.000000e+00> : vector<16x64xf32>
    %318 = tpu.matmul %317, %281, %cst_139 {dimension_numbers = #tpu.dot_dimension_numbers<[1], [0], [0], [1], [0, 0, 1, 1], [], []>} : vector<16x32xf32>, vector<32x64xf32>, vector<16x64xf32> -> vector<16x64xf32>
    %319 = vector.broadcast %283 : vector<1x64xf32> to vector<16x64xf32>
    %320 = arith.addf %318, %319 : vector<16x64xf32>
    %cst_140 = arith.constant 5.000000e-01 : f32
    %321 = vector.broadcast %cst_140 : f32 to vector<16x64xf32>
    %322 = arith.mulf %321, %320 : vector<16x64xf32>
    %cst_141 = arith.constant 0.707106769 : f32
    %323 = vector.broadcast %cst_141 : f32 to vector<16x64xf32>
    %324 = arith.mulf %320, %323 : vector<16x64xf32>
    %325 = math.erf %324 : vector<16x64xf32>
    %cst_142 = arith.constant 1.000000e+00 : f32
    %326 = vector.broadcast %cst_142 : f32 to vector<16x64xf32>
    %327 = arith.addf %326, %325 : vector<16x64xf32>
    %328 = arith.mulf %322, %327 : vector<16x64xf32>
    %cst_143 = arith.constant dense<0.000000e+00> : vector<16x32xf32>
    %329 = tpu.matmul %328, %285, %cst_143 {dimension_numbers = #tpu.dot_dimension_numbers<[1], [0], [0], [1], [0, 0, 1, 1], [], []>} : vector<16x64xf32>, vector<64x32xf32>, vector<16x32xf32> -> vector<16x32xf32>
    %330 = vector.broadcast %287 : vector<1x32xf32> to vector<16x32xf32>
    %331 = arith.addf %329, %330 : vector<16x32xf32>
    %332 = arith.addf %331, %317 : vector<16x32xf32>
    %cst_144 = arith.constant dense<0.000000e+00> : vector<16xf32>
    %333 = vector.multi_reduction <add>, %332, %cst_144 [1] : vector<16x32xf32> to vector<16xf32>
    %334 = vector.shape_cast %333 : vector<16xf32> to vector<16x1xf32>
    %cst_145 = arith.constant 3.200000e+01 : f32
    %335 = vector.broadcast %cst_145 : f32 to vector<16x1xf32>
    %336 = arith.divf %334, %335 : vector<16x1xf32>
    %337 = vector.broadcast %336 : vector<16x1xf32> to vector<16x32xf32>
    %338 = arith.subf %332, %337 : vector<16x32xf32>
    %339 = arith.mulf %338, %338 : vector<16x32xf32>
    %cst_146 = arith.constant dense<0.000000e+00> : vector<16xf32>
    %340 = vector.multi_reduction <add>, %339, %cst_146 [1] : vector<16x32xf32> to vector<16xf32>
    %341 = vector.shape_cast %340 : vector<16xf32> to vector<16x1xf32>
    %cst_147 = arith.constant 3.200000e+01 : f32
    %342 = vector.broadcast %cst_147 : f32 to vector<16x1xf32>
    %343 = arith.divf %341, %342 : vector<16x1xf32>
    %344 = vector.broadcast %336 : vector<16x1xf32> to vector<16x32xf32>
    %345 = arith.subf %332, %344 : vector<16x32xf32>
    %cst_148 = arith.constant 9.99999974E-6 : f32
    %346 = vector.broadcast %cst_148 : f32 to vector<16x1xf32>
    %347 = arith.addf %343, %346 : vector<16x1xf32>
    %348 = math.rsqrt %347 : vector<16x1xf32>
    %349 = vector.broadcast %348 : vector<16x1xf32> to vector<16x32xf32>
    %350 = arith.mulf %345, %349 : vector<16x32xf32>
    %351 = vector.broadcast %289 : vector<1x32xf32> to vector<16x32xf32>
    %352 = arith.mulf %350, %351 : vector<16x32xf32>
    %353 = vector.broadcast %291 : vector<1x32xf32> to vector<16x32xf32>
    %354 = arith.addf %352, %353 : vector<16x32xf32>
    %c0_149 = arith.constant 0 : index
    %c0_150 = arith.constant 0 : index
    %355 = vector.load %arg2[%c0_149, %c0_150] : memref<168x128xf32, #tpu.memory_space<vmem>>, vector<32x32xf32>
    %c160_151 = arith.constant 160 : index
    %c0_152 = arith.constant 0 : index
    %356 = vector.load %arg2[%c160_151, %c0_152] : memref<168x128xf32, #tpu.memory_space<vmem>>, vector<1x32xf32>
    %c161 = arith.constant 161 : index
    %c0_153 = arith.constant 0 : index
    %357 = vector.load %arg2[%c161, %c0_153] : memref<168x128xf32, #tpu.memory_space<vmem>>, vector<1x32xf32>
    %c162 = arith.constant 162 : index
    %c0_154 = arith.constant 0 : index
    %358 = vector.load %arg2[%c162, %c0_154] : memref<168x128xf32, #tpu.memory_space<vmem>>, vector<1x32xf32>
    %c32 = arith.constant 32 : index
    %c0_155 = arith.constant 0 : index
    %359 = vector.load %arg2[%c32, %c0_155] : memref<168x128xf32, #tpu.memory_space<vmem>>, vector<128x32xf32>
    %c163 = arith.constant 163 : index
    %c0_156 = arith.constant 0 : index
    %360 = vector.load %arg2[%c163, %c0_156] : memref<168x128xf32, #tpu.memory_space<vmem>>, vector<1x128xf32>
    %cst_157 = arith.constant dense<0.000000e+00> : vector<16x32xf32>
    %361 = tpu.matmul %354, %355, %cst_157 {dimension_numbers = #tpu.dot_dimension_numbers<[1], [0], [0], [1], [0, 0, 1, 1], [], []>} : vector<16x32xf32>, vector<32x32xf32>, vector<16x32xf32> -> vector<16x32xf32>
    %362 = vector.broadcast %356 : vector<1x32xf32> to vector<16x32xf32>
    %363 = arith.addf %361, %362 : vector<16x32xf32>
    %cst_158 = arith.constant 5.000000e-01 : f32
    %364 = vector.broadcast %cst_158 : f32 to vector<16x32xf32>
    %365 = arith.mulf %364, %363 : vector<16x32xf32>
    %cst_159 = arith.constant 0.707106769 : f32
    %366 = vector.broadcast %cst_159 : f32 to vector<16x32xf32>
    %367 = arith.mulf %363, %366 : vector<16x32xf32>
    %368 = math.erf %367 : vector<16x32xf32>
    %cst_160 = arith.constant 1.000000e+00 : f32
    %369 = vector.broadcast %cst_160 : f32 to vector<16x32xf32>
    %370 = arith.addf %369, %368 : vector<16x32xf32>
    %371 = arith.mulf %365, %370 : vector<16x32xf32>
    %cst_161 = arith.constant dense<0.000000e+00> : vector<16xf32>
    %372 = vector.multi_reduction <add>, %371, %cst_161 [1] : vector<16x32xf32> to vector<16xf32>
    %373 = vector.shape_cast %372 : vector<16xf32> to vector<16x1xf32>
    %cst_162 = arith.constant 3.200000e+01 : f32
    %374 = vector.broadcast %cst_162 : f32 to vector<16x1xf32>
    %375 = arith.divf %373, %374 : vector<16x1xf32>
    %376 = vector.broadcast %375 : vector<16x1xf32> to vector<16x32xf32>
    %377 = arith.subf %371, %376 : vector<16x32xf32>
    %378 = arith.mulf %377, %377 : vector<16x32xf32>
    %cst_163 = arith.constant dense<0.000000e+00> : vector<16xf32>
    %379 = vector.multi_reduction <add>, %378, %cst_163 [1] : vector<16x32xf32> to vector<16xf32>
    %380 = vector.shape_cast %379 : vector<16xf32> to vector<16x1xf32>
    %cst_164 = arith.constant 3.200000e+01 : f32
    %381 = vector.broadcast %cst_164 : f32 to vector<16x1xf32>
    %382 = arith.divf %380, %381 : vector<16x1xf32>
    %383 = vector.broadcast %375 : vector<16x1xf32> to vector<16x32xf32>
    %384 = arith.subf %371, %383 : vector<16x32xf32>
    %cst_165 = arith.constant 9.99999974E-6 : f32
    %385 = vector.broadcast %cst_165 : f32 to vector<16x1xf32>
    %386 = arith.addf %382, %385 : vector<16x1xf32>
    %387 = math.rsqrt %386 : vector<16x1xf32>
    %388 = vector.broadcast %387 : vector<16x1xf32> to vector<16x32xf32>
    %389 = arith.mulf %384, %388 : vector<16x32xf32>
    %390 = vector.broadcast %357 : vector<1x32xf32> to vector<16x32xf32>
    %391 = arith.mulf %389, %390 : vector<16x32xf32>
    %392 = vector.broadcast %358 : vector<1x32xf32> to vector<16x32xf32>
    %393 = arith.addf %391, %392 : vector<16x32xf32>
    %cst_166 = arith.constant dense<0.000000e+00> : vector<16x128xf32>
    %394 = tpu.matmul %393, %359, %cst_166 {dimension_numbers = #tpu.dot_dimension_numbers<[1], [1], [0], [0], [0, 0, 1, 0], [], []>} : vector<16x32xf32>, vector<128x32xf32>, vector<16x128xf32> -> vector<16x128xf32>
    %395 = vector.broadcast %360 : vector<1x128xf32> to vector<16x128xf32>
    %396 = arith.addf %394, %395 : vector<16x128xf32>
    %c0_167 = arith.constant 0 : index
    %c0_168 = arith.constant 0 : index
    %397 = vector.load %arg3[%c0_167, %c0_168] : memref<16x128xf32, #tpu.memory_space<vmem>>, vector<16x128xf32>
    tpu.vector_store %arg3[%c0_167, %c0_168], %396 {strides = array<i32>} : memref<16x128xf32, #tpu.memory_space<vmem>>, vector<16x128xf32>,
    return
  }
}

</mosaic_0001>

<bundles_post_ra>
// kernel: recommender_forward.1
= control target key start
LH: loop header
LB: loop body
LE: loop exit
PB: predicated region body
PF: predicated region fallthrough
CT: control target
= control target key end

     0   :  { %8 = vsyncpa [#allocation3], 0  ;;  %s4131_s15 = smov [#allocation2]   ;;  %s4132_s17 = smov 128   ;;  %s5081_s0 = inlined_call_operand.vmem [shape: f32[16,128], index: 0, kind: input, shape index: {}]   ;;  %s5082_s1 = inlined_call_operand.hbm [shape: f32[2,272,128], index: 1, kind: input, shape index: {}]   ;;  %s5083_s2 = inlined_call_operand.vmem [shape: f32[168,128], index: 2, kind: input, shape index: {}]   ;;  %s5084_s3 = inlined_call_operand.vmem [shape: f32[16,128], index: 3, kind: output, shape index: {}]  }
   0x1   :  { %s15_s14 = sshll.u32 %s5082_s1, 4  ;;  %s17_s16 = sshll.u32 %s4131_s15, 4  ;;  %s16_s14 = int_to_ptr.hbm [resolvable:$true] %s15_s14  ;;  %s18_s16 = int_to_ptr.vmem [resolvable:$true] %s17_s16 }
   0x2   :  { %s4133_s18 = smov 8  }
   0x3   :  { %23 = dma.hbm_to_vmem [thread:$0]  %s16_s14, 8704, %s18_s16, [#allocation3], %s4132_s17, %s4132_s17, %s4133_s18  }
   0x4   :  { %4129 = dma.done.wait [#allocation3], 8704  }
   0x5   :  { %4130 = vsyncadd [#allocation3], 4294958592  ;;  %v45_v0 = vld [vmem:[#allocation2 + $0x58] sm:$0xff]  ;;  %v44_v1 = vld [vmem:[#allocation2 + $0x50] sm:$0xff]  ;;  %vm46_vm0 = vcmask 785408   ;;  %s4134_s22 = smov 120  }
   0x6   :  { %57 = vmatpush.msra.mxu0 %v45_v0  ;;  %v43_v2 = vld [vmem:[#allocation2 + $0x48] sm:$0xff]  ;;  %v42_v3 = vld [vmem:[#allocation2 + $0x40] sm:$0xff]  ;;  %v41_v4 = vld [vmem:[#allocation2 + $0x38] sm:$0xff]  ;;  %s4135_s23 = smov 64   ;;  %s4136_s24 = smov 96   ;;  %vm94_vm1 = vcmask 64512  }
   0x7   :  { %v40_v5 = vld [vmem:[#allocation2 + $0x30] sm:$0xff]  ;;  %v39_v6 = vld [vmem:[#allocation2 + $0x28] sm:$0xff]  ;;  %v38_v7 = vld [vmem:[#allocation2 + $0x20] sm:$0xff]  ;;  %s4137_s25 = smov 32   ;;  %s4138_s26 = smov 100   ;;  %vm283_vm3 = vcmask 950048  }
   0x8   :  { %58 = vmatpush.msra.mxu0 %v44_v1  ;;  %v37_v8 = vld [vmem:[#allocation2 + $0x18] sm:$0xff]  ;;  %v36_v9 = vld [vmem:[#allocation2 + $0x10] sm:$0xff]  ;;  %v35_v10 = vld [vmem:[#allocation2 + $0x8] sm:$0xff]  ;;  %s4139_s27 = smov 28   ;;  %vm364_vm5 = vcmask 130048   ;;  %s4140_s28 = smov 104  }
   0x9   :  { %v34_v11 = vld [vmem:[#allocation2] sm:$0xff]  ;;  %v4180_v13 = vld [vmem:[%s5081_s0 + $0x8] sm:$0xff]  ;;  %s4142_s29 = smov 31   ;;  %s4143_s30 = smov 112  }
   0xa   :  { %59 = vmatpush.msra.mxu0 %v43_v2  ;;  %v4174_v12 = vld [vmem:[%s5081_s0] sm:$0xff]  ;;  %vm33_vm4 = vcmp.ne.f32.partialorder %v4180_v13, 0.0  ;;  %s4144_s4 = smov 16   ;;  %s4145_s5 = smov 24  }
   0xb   :  { %vm32_vm2 = vcmp.ne.f32.partialorder %v4174_v12, 0.0 }
   0xc   :  { %60 = vmatpush.msra.mxu0 %v42_v3 }
   0xe   :  { %61 = vmatpush.msra.mxu0 %v41_v4 }
  0x10   :  { %62 = vmatpush.msra.mxu0 %v40_v5 }
  0x12   :  { %63 = vmatpush.msra.mxu0 %v39_v6 }
  0x14   :  { %64 = vmatpush.msra.mxu0 %v38_v7 }
  0x16   :  { %65 = vmatpush.msra.mxu0 %v37_v8 }
  0x18   :  { %66 = vmatpush.msra.mxu0 %v36_v9 }
  0x1a   :  { %67 = vmatpush.msra.mxu0 %v35_v10 }
  0x1c   :  { %68 = vmatpush.msra.mxu0 %v34_v11 }
  0x1d   :  { %3573 = vmatmul.msk.f32.vlgmr.msra.gmra.mxu0 %vm46_vm0, %v4174_v12 }
  0x25   :  { %3574 = vmatmul.msk.f32.gmra.mxu0 %vm46_vm0, %v4180_v13 }
  0x9a   :  { %v4183_v14 = vpop.f32.mrf.mxu0 }
  0xa2   :  { %v4185_v15 = vpop.f32.mrf.mxu0 }
  0xa3   :  { %92 = vrot.lane.b32.xlu2 %v4185_v15, %s4134_s22  ;;  %84 = vrot.lane.b32.xlu1 %v4185_v15, %s4135_s23 }
  0xa4   :  { %80 = vrot.lane.b32.xlu0 %v4185_v15, %s4136_s24 }
  0xab   :  { %90 = vrot.lane.b32.xlu2 %v4183_v14, %s4134_s22  ;;  %82 = vrot.lane.b32.xlu1 %v4183_v14, %s4135_s23 }
  0xac   :  { %78 = vrot.lane.b32.xlu0 %v4183_v14, %s4136_s24 }
  0xb3   :  { %88 = vrot.lane.b32.xlu2 %v4185_v15, %s4137_s25 }
  0xfd   :  { %v93_v16 = vpop.permute.xlu2 %92 }
  0xfe   :  { %3575 = vmatpush.xpose.msk.msra.mxu1 %vm94_vm1, %v93_v16 }
 0x105   :  { %v91_v17 = vpop.permute.xlu2 %90 }
 0x106   :  { %3576 = vmatpush.xpose.msk.msra.mxu1 %vm94_vm1, %v91_v17 }
 0x109   :  { %3577 = vmatmul.msk.f32.vlgmr.msra.gmra.mxu1 %vm94_vm1, %v4183_v14 }
 0x10d   :  { %v4223_v22 = vpop.permute.xlu2 %88 }
 0x111   :  { %3578 = vmatmul.msk.f32.gmra.mxu1 %vm94_vm1, %v4185_v15 }
 0x115   :  { %v4207_v18 = vpop.permute.xlu1 %84 }
 0x116   :  { %v4209_v19 = vpop.permute.xlu0 %80 }
 0x117   :  { %128 = vrot.lane.b32.xlu0 %v4209_v19, %s4134_s22 }
 0x11d   :  { %v4213_v20 = vpop.permute.xlu1 %82 }
 0x11e   :  { %v4215_v21 = vpop.permute.xlu0 %78  ;;  %161 = vrot.lane.b32.xlu2 %v4213_v20, %s4134_s22 }
 0x11f   :  { %86 = vrot.lane.b32.xlu0 %v4183_v14, %s4137_s25  ;;  %126 = vrot.lane.b32.xlu1 %v4215_v21, %s4134_s22 }
 0x127   :  { %198 = vrot.lane.b32.xlu0 %v4223_v22, %s4134_s22  ;;  %163 = vrot.lane.b32.xlu1 %v4207_v18, %s4134_s22 }
 0x178   :  { %v162_v32 = vpop.permute.xlu2 %161 }
 0x186   :  { %v120_v23 = vpop.f32.mrf.mxu1 }
 0x187   :  { %v231_v24 = vmul.f32 0.17677669, %v120_v23 }
 0x189   :  { %v129_v25 = vpop.permute.xlu0 %128  ;;  %251 = vrot.lane.b32.xlu2 %v231_v24, %s4138_s26 }
 0x18a   :  { %3579 = vmatpush.xpose.msk.msra.mxu2 %vm94_vm1, %v129_v25 }
 0x18e   :  { %v123_v26 = vpop.f32.mrf.mxu1 }
 0x18f   :  { %v232_v27 = vmul.f32 0.17677669, %v123_v26 }
 0x191   :  { %v127_v28 = vpop.permute.xlu1 %126  ;;  %v4231_v29 = vpop.permute.xlu0 %86  ;;  %253 = vrot.lane.b32.xlu0 %v232_v27, %s4138_s26 }
 0x192   :  { %3580 = vmatpush.xpose.msk.msra.mxu2 %vm94_vm1, %v127_v28  ;;  %196 = vrot.lane.b32.xlu1 %v4231_v29, %s4134_s22 }
 0x195   :  { %3581 = vmatmul.msk.f32.vlgmr.msra.gmra.mxu2 %vm94_vm1, %v4215_v21 }
 0x199   :  { %v164_v30 = vpop.permute.xlu1 %163  ;;  %v199_v31 = vpop.permute.xlu0 %198 }
 0x19a   :  { %3583 = vmatpush.xpose.msk.msra.mxu3 %vm94_vm1, %v164_v30  ;;  %3587 = vmatpush.xpose.msk.msrb.mxu1 %vm94_vm1, %v199_v31 }
 0x19d   :  { %3582 = vmatmul.msk.f32.gmra.mxu2 %vm94_vm1, %v4209_v19 }
 0x19e   :  { %3584 = vmatpush.xpose.msk.msra.mxu3 %vm94_vm1, %v162_v32 }
 0x1a1   :  { %3585 = vmatmul.msk.f32.vlgmr.msra.gmra.mxu3 %vm94_vm1, %v4213_v20 }
 0x1a9   :  { %3586 = vmatmul.msk.f32.gmra.mxu3 %vm94_vm1, %v4207_v18 }
 0x1e3   :  { %v252_v40 = vpop.permute.xlu2 %251 }
 0x1e4   :  { %v275_v41 = vsel %vm32_vm2, %v252_v40, -4.2949673e+09 }
 0x1e5   :  { %v284_v43 = vsel %vm283_vm3, %v275_v41, -inf }
 0x203   :  { %v254_v42 = vpop.permute.xlu0 %253 }
 0x204   :  { %v197_v33 = vpop.permute.xlu1 %196  ;;  %v276_v44 = vsel %vm33_vm4, %v254_v42, -4.2949673e+09 }
 0x205   :  { %3588 = vmatpush.xpose.msk.msrb.mxu1 %vm94_vm1, %v197_v33  ;;  %v287_v45 = vsel %vm283_vm3, %v276_v44, -inf }
 0x208   :  { %3589 = vmatmul.msk.f32.vlgmr.msrb.gmra.mxu1 %vm94_vm1, %v4231_v29 }
 0x210   :  { %3590 = vmatmul.msk.f32.gmra.mxu1 %vm94_vm1, %v4223_v22 }
 0x218   :  { %v155_v34 = vpop.f32.mrf.mxu2 }
 0x219   :  { %v233_v35 = vmul.f32 0.17677669, %v155_v34 }
 0x21b   :  { %255 = vrot.lane.b32.xlu1 %v233_v35, %s4138_s26 }
 0x220   :  { %v158_v36 = vpop.f32.mrf.mxu2 }
 0x221   :  { %v234_v37 = vmul.f32 0.17677669, %v158_v36 }
 0x223   :  { %257 = vrot.lane.b32.xlu2 %v234_v37, %s4138_s26 }
 0x224   :  { %v190_v38 = vpop.f32.mrf.mxu3 }
 0x225   :  { %v235_v39 = vmul.f32 0.17677669, %v190_v38 }
 0x227   :  { %259 = vrot.lane.b32.xlu0 %v235_v39, %s4138_s26 }
 0x22c   :  { %v193_v48 = vpop.f32.mrf.mxu3 }
 0x22d   :  { %v236_v50 = vmul.f32 0.17677669, %v193_v48 }
 0x24c   :  { %285 = vmax.xlane.f32.xlu2 %v284_v43 }
 0x251   :  { %288 = vmax.xlane.f32.xlu0 %v287_v45 }
 0x27d   :  { %v258_v54 = vpop.permute.xlu2 %257 }
 0x27e   :  { %v278_v8 = vsel %vm33_vm4, %v258_v54, -4.2949673e+09 }
 0x27f   :  { %v293_v10 = vsel %vm283_vm3, %v278_v8, -inf }
 0x285   :  { %v225_v46 = vpop.f32.mrf.mxu1 }
 0x286   :  { %v237_v47 = vmul.f32 0.17677669, %v225_v46 }
 0x288   :  { %263 = vrot.lane.b32.xlu1 %v237_v47, %s4138_s26 }
 0x28d   :  { %v228_v49 = vpop.f32.mrf.mxu1  ;;  %v256_v52 = vpop.permute.xlu1 %255 }
 0x28e   :  { %v238_v51 = vmul.f32 0.17677669, %v228_v49  ;;  %v277_v53 = vsel %vm32_vm2, %v256_v52, -4.2949673e+09 }
 0x28f   :  { %v290_v55 = vsel %vm283_vm3, %v277_v53, -inf }
 0x290   :  { %261 = vrot.lane.b32.xlu1 %v236_v50, %s4138_s26  ;;  %265 = vrot.lane.b32.xlu2 %v238_v51, %s4138_s26 }
 0x299   :  { %v260_v2 = vpop.permute.xlu0 %259 }
 0x29a   :  { %v279_v3 = vsel %vm32_vm2, %v260_v2, -4.2949673e+09 }
 0x29b   :  { %v296_v6 = vsel %vm283_vm3, %v279_v3, -inf }
 0x2ba   :  { %291 = vmax.xlane.f32.xlu1 %v290_v55 }
 0x2bf   :  { %v286_v56 = vpop.xlane.xlu2 %285 }
 0x2c0   :  { %v308_v57 = vsub.f32 %v275_v41, %v286_v56 }
 0x2c2   :  { %v316_v58 = vmul.f32 1.442695, %v308_v57 }
 0x2c4   :  { %3869 = vpow2.f32 %v316_v58  ;;  %v289_v9 = vpop.xlane.xlu0 %288 }
 0x2c5   :  { %v309_v11 = vsub.f32 %v276_v44, %v289_v9 }
 0x2c7   :  { %v318_v16 = vmul.f32 1.442695, %v309_v11 }
 0x2c9   :  { %3871 = vpow2.f32 %v318_v16 }
 0x2ca   :  { %v4270_v59 = vpop.eup %3869 }
 0x2cb   :  { %340 = vrot.lane.b32.xlu2 %v4270_v59, %s4139_s27 }
 0x2cf   :  { %v4292_v17 = vpop.eup %3871 }
 0x2ea   :  { %v266_v60 = vpop.permute.xlu2 %265 }
 0x2eb   :  { %v4276_v61 = vsel %vm33_vm4, %v266_v60, -4.2949673e+09 }
 0x2ec   :  { %v305_v62 = vsel %vm283_vm3, %v4276_v61, -inf }
 0x2f4   :  { %306 = vmax.xlane.f32.xlu2 %v305_v62 }
 0x2fa   :  { %v264_v63 = vpop.permute.xlu1 %263 }
 0x2fb   :  { %v281_v0 = vsel %vm32_vm2, %v264_v63, -4.2949673e+09 }
 0x2fc   :  { %v302_v1 = vsel %vm283_vm3, %v281_v0, -inf }
 0x2fd   :  { %303 = vmax.xlane.f32.xlu0 %v302_v1 }
 0x302   :  { %v262_v4 = vpop.permute.xlu1 %261 }
 0x303   :  { %v280_v5 = vsel %vm33_vm4, %v262_v4, -4.2949673e+09 }
 0x304   :  { %v299_v7 = vsel %vm283_vm3, %v280_v5, -inf }
 0x305   :  { %297 = vmax.xlane.f32.xlu0 %v296_v6  ;;  %300 = vmax.xlane.f32.xlu1 %v299_v7 }
 0x30d   :  { %294 = vmax.xlane.f32.xlu0 %v293_v10 }
 0x31e   :  { %342 = vrot.lane.b32.xlu1 %v4292_v17, %s4139_s27 }
 0x325   :  { %v341_v43 = vpop.permute.xlu2 %340 }
 0x326   :  { %v365_v48 = vsel %vm364_vm5, %v341_v43, 0.0 }
 0x32d   :  { %v292_v23 = vpop.xlane.xlu1 %291 }
 0x32e   :  { %v310_v24 = vsub.f32 %v277_v53, %v292_v23 }
 0x330   :  { %v320_v25 = vmul.f32 1.442695, %v310_v24 }
 0x332   :  { %3873 = vpow2.f32 %v320_v25 }
 0x338   :  { %v4296_v26 = vpop.eup %3873 }
 0x339   :  { %344 = vrot.lane.b32.xlu0 %v4296_v26, %s4139_s27 }
 0x367   :  { %v307_v49 = vpop.xlane.xlu2 %306 }
 0x368   :  { %v315_v51 = vsub.f32 %v4276_v61, %v307_v49 }
 0x36a   :  { %v330_v52 = vmul.f32 1.442695, %v315_v51 }
 0x370   :  { %v304_v27 = vpop.xlane.xlu0 %303 }
 0x371   :  { %v314_v28 = vsub.f32 %v281_v0, %v304_v27 }
 0x373   :  { %v328_v30 = vmul.f32 1.442695, %v314_v28 }
 0x375   :  { %3875 = vpow2.f32 %v328_v30 }
 0x378   :  { %v298_v31 = vpop.xlane.xlu0 %297  ;;  %v301_v36 = vpop.xlane.xlu1 %300 }
 0x379   :  { %v312_v32 = vsub.f32 %v279_v3, %v298_v31  ;;  %v313_v42 = vsub.f32 %v280_v5, %v301_v36 }
 0x37b   :  { %v4300_v33 = vpop.eup %3875  ;;  %v324_v34 = vmul.f32 1.442695, %v312_v32  ;;  %v326_v44 = vmul.f32 1.442695, %v313_v42 }
 0x37c   :  { %352 = vrot.lane.b32.xlu2 %v4300_v33, %s4139_s27 }
 0x37d   :  { %3877 = vpow2.f32 %v324_v34 }
 0x380   :  { %v295_v39 = vpop.xlane.xlu0 %294 }
 0x381   :  { %v311_v40 = vsub.f32 %v278_v8, %v295_v39  ;;  %v4335_v39 = vpack.i.bf16 %v4183_v14, %v4185_v15 }
 0x383   :  { %v4304_v35 = vpop.eup %3877  ;;  %v322_v41 = vmul.f32 1.442695, %v311_v40 }
 0x384   :  { %348 = vrot.lane.b32.xlu0 %v4304_v35, %s4139_s27 }
 0x385   :  { %3879 = vpow2.f32 %v322_v41  ;;  %v4341_v41 = vpack.i.bf16 %v4215_v21, %v4209_v19  ;;  %v4352_v21 = vpack.i.bf16 %v4213_v20, %v4207_v18 }
 0x386   :  { %3881 = vpow2.f32 %v326_v44 }
 0x387   :  { %3883 = vpow2.f32 %v330_v52 }
 0x38b   :  { %v4309_v45 = vpop.eup %3879 }
 0x38c   :  { %v4315_v50 = vpop.eup %3881 }
 0x38d   :  { %v4320_v53 = vpop.eup %3883 }
 0x390   :  { %v343_v37 = vpop.permute.xlu1 %342 }
 0x391   :  { %v368_v38 = vsel %vm364_vm5, %v343_v37, 0.0 }
 0x392   :  { %369 = vadd.xlane.f32.xlu1 %v368_v38 }
 0x3ab   :  { %v345_v46 = vpop.permute.xlu0 %344  ;;  %346 = vrot.lane.b32.xlu1 %v4309_v45, %s4139_s27 }
 0x3ac   :  { %v371_v47 = vsel %vm364_vm5, %v345_v46, 0.0 }
 0x3ad   :  { %372 = vadd.xlane.f32.xlu2 %v371_v47 }
 0x3ae   :  { %366 = vadd.xlane.f32.xlu0 %v365_v48 }
 0x3b3   :  { %350 = vrot.lane.b32.xlu1 %v4315_v50, %s4139_s27 }
 0x3c2   :  { %354 = vrot.lane.b32.xlu0 %v4320_v53, %s4139_s27 }
 0x3d6   :  { %v353_v54 = vpop.permute.xlu2 %352 }
 0x3d7   :  { %v383_v55 = vsel %vm364_vm5, %v353_v54, 0.0 }
 0x3dd   :  { %384 = vadd.xlane.f32.xlu1 %v383_v55 }
 0x3f6   :  { %v349_v56 = vpop.permute.xlu0 %348 }
 0x3f7   :  { %v377_v57 = vsel %vm364_vm5, %v349_v56, 0.0 }
 0x3f8   :  { %378 = vadd.xlane.f32.xlu1 %v377_v57 }
 0x405   :  { %v370_v58 = vpop.xlane.xlu1 %369 }
 0x406   :  { %3885 = vrcp.f32 %v370_v58  ;;  %v415_v32 = vand.u32 2147483648, %v370_v58  ;;  %vm409_vm11 = vweird.f32 %v370_v58  ;;  %v413_v36 = vand.u32 2147483647, %v370_v58 }
 0x408   :  { %v416_v40 = vor.u32 1.1754944e-38, %v415_v32  ;;  %vm414_vm13 = vcmp.eq.f32.partialorder %v413_v36, 8.507059e+37 }
 0x40c   :  { %v3886_v62 = vpop.eup %3885 }
 0x40d   :  { %v405_v1 = vmul.f32 %v3886_v62, %v370_v58  ;;  %vm410_vm9 = vweird.f32 %v3886_v62 }
 0x40e   :  { %vm411_vm12 = vmor %vm409_vm11, %vm410_vm9 }
 0x40f   :  { %v406_v5 = vsub.f32 1.0, %v405_v1 }
 0x411   :  { %v407_v10 = vmul.f32 %v3886_v62, %v406_v5 }
 0x413   :  { %v408_v30 = vadd.f32 %v3886_v62, %v407_v10 }
 0x415   :  { %v412_v37 = vsel %vm411_vm12, %v3886_v62, %v408_v30 }
 0x41d   :  { %v347_v60 = vpop.permute.xlu1 %346 }
 0x41e   :  { %v374_v61 = vsel %vm364_vm5, %v347_v60, 0.0 }
 0x41f   :  { %375 = vadd.xlane.f32.xlu1 %v374_v61 }
 0x420   :  { %v373_v63 = vpop.xlane.xlu2 %372 }
 0x421   :  { %v367_v0 = vpop.xlane.xlu0 %366  ;;  %v430_v43 = vand.u32 2147483648, %v373_v63  ;;  %vm424_vm15 = vweird.f32 %v373_v63  ;;  %v428_v15 = vand.u32 2147483647, %v373_v63 }
 0x422   :  { %3887 = vrcp.f32 %v367_v0  ;;  %v400_v9 = vand.u32 2147483648, %v367_v0  ;;  %v398_v23 = vand.u32 2147483647, %v367_v0  ;;  %vm394_vm7 = vweird.f32 %v367_v0 }
 0x423   :  { %3889 = vrcp.f32 %v373_v63  ;;  %v431_v46 = vor.u32 1.1754944e-38, %v430_v43 }
 0x424   :  { %v401_v25 = vor.u32 1.1754944e-38, %v400_v9  ;;  %vm399_vm10 = vcmp.eq.f32.partialorder %v398_v23, 8.507059e+37 }
 0x425   :  { %v351_v2 = vpop.permute.xlu1 %350 }
 0x426   :  { %v380_v3 = vsel %vm364_vm5, %v351_v2, 0.0 }
 0x427   :  { %381 = vadd.xlane.f32.xlu0 %v380_v3 }
 0x428   :  { %v3888_v4 = vpop.eup %3887 }
 0x429   :  { %v390_v6 = vmul.f32 %v3888_v4, %v367_v0  ;;  %v3890_v7 = vpop.eup %3889  ;;  %vm395_vm6 = vweird.f32 %v3888_v4 }
 0x42a   :  { %v420_v11 = vmul.f32 %v3890_v7, %v373_v63  ;;  %vm396_vm8 = vmor %vm394_vm7, %vm395_vm6  ;;  %vm425_vm14 = vweird.f32 %v3890_v7  ;;  %vm429_vm6 = vcmp.eq.f32.partialorder %v428_v15, 8.507059e+37 }
 0x42b   :  { %v391_v8 = vsub.f32 1.0, %v390_v6  ;;  %vm426_vm0 = vmor %vm424_vm15, %vm425_vm14 }
 0x42c   :  { %v421_v27 = vsub.f32 1.0, %v420_v11 }
 0x42d   :  { %v392_v16 = vmul.f32 %v3888_v4, %v391_v8 }
 0x42e   :  { %v422_v38 = vmul.f32 %v3890_v7, %v421_v27 }
 0x42f   :  { %v393_v24 = vadd.f32 %v3888_v4, %v392_v16 }
 0x430   :  { %v423_v42 = vadd.f32 %v3890_v7, %v422_v38 }
 0x431   :  { %v397_v28 = vsel %vm396_vm8, %v3888_v4, %v393_v24 }
 0x432   :  { %v402_v31 = vsel %vm399_vm10, %v401_v25, %v397_v28  ;;  %v427_v44 = vsel %vm426_vm0, %v3890_v7, %v423_v42 }
 0x433   :  { %v4329_v34 = vmul.f32 %v4270_v59, %v402_v31  ;;  %v417_v59 = vsel %vm414_vm13, %v416_v40, %v412_v37  ;;  %v432_v19 = vsel %vm429_vm6, %v431_v46, %v427_v44 }
 0x434   :  { %v4346_v14 = vmul.f32 %v4292_v17, %v417_v59  ;;  %v4357_v17 = vmul.f32 %v4296_v26, %v432_v19  ;;  %v355_v48 = vpop.permute.xlu0 %354 }
 0x435   :  { %511 = vrot.lane.b32.xlu2 %v4329_v34, %s4139_s27  ;;  %v386_v51 = vsel %vm364_vm5, %v355_v48, 0.0 }
 0x438   :  { %3766 = vrot.lane.b32.xlu1 %v4335_v39, %s4140_s28 }
 0x43b   :  { %3771 = vrot.lane.b32.xlu0 %v4341_v41, %s4140_s28 }
 0x43d   :  { %513 = vrot.lane.b32.xlu2 %v4346_v14, %s4139_s27 }
 0x443   :  { %3776 = vrot.lane.b32.xlu0 %v4352_v21, %s4140_s28 }
 0x445   :  { %550 = vrot.lane.b32.xlu2 %v4357_v17, %s4139_s27 }
 0x450   :  { %v385_v47 = vpop.xlane.xlu1 %384 }
 0x451   :  { %3891 = vrcp.f32 %v385_v47  ;;  %v490_v55 = vand.u32 2147483648, %v385_v47  ;;  %vm484_vm8 = vweird.f32 %v385_v47  ;;  %v488_v56 = vand.u32 2147483647, %v385_v47 }
 0x453   :  { %v491_v57 = vor.u32 1.1754944e-38, %v490_v55  ;;  %vm489_vm10 = vcmp.eq.f32.partialorder %v488_v56, 8.507059e+37 }
 0x457   :  { %v3892_v49 = vpop.eup %3891 }
 0x458   :  { %v480_v52 = vmul.f32 %v3892_v49, %v385_v47  ;;  %vm485_vm7 = vweird.f32 %v3892_v49 }
 0x459   :  { %vm486_vm9 = vmor %vm484_vm8, %vm485_vm7 }
 0x45a   :  { %v481_v54 = vsub.f32 1.0, %v480_v52 }
 0x45c   :  { %v482_v18 = vmul.f32 %v3892_v49, %v481_v54 }
 0x45e   :  { %v483_v20 = vadd.f32 %v3892_v49, %v482_v18 }
 0x460   :  { %v487_v26 = vsel %vm486_vm9, %v3892_v49, %v483_v20 }
 0x461   :  { %v492_v58 = vsel %vm489_vm10, %v491_v57, %v487_v26 }
 0x462   :  { %387 = vadd.xlane.f32.xlu1 %v386_v51  ;;  %v4363_v60 = vmul.f32 %v4300_v33, %v492_v58 }
 0x46b   :  { %v379_v61 = vpop.xlane.xlu1 %378 }
 0x46c   :  { %3893 = vrcp.f32 %v379_v61  ;;  %v460_v27 = vand.u32 2147483648, %v379_v61  ;;  %vm454_vm0 = vweird.f32 %v379_v61  ;;  %v458_v32 = vand.u32 2147483647, %v379_v61 }
 0x46e   :  { %v461_v59 = vor.u32 1.1754944e-38, %v460_v27  ;;  %vm459_vm9 = vcmp.eq.f32.partialorder %v458_v32, 8.507059e+37  ;;  %v3847_v32 = vld [vmem:[#allocation2 + $0x100] ss:$0 sm:$0xff] }
 0x472   :  { %v3894_v63 = vpop.eup %3893 }
 0x473   :  { %v450_v0 = vmul.f32 %v3894_v63, %v379_v61  ;;  %vm455_vm14 = vweird.f32 %v3894_v63 }
 0x474   :  { %vm456_vm6 = vmor %vm454_vm0, %vm455_vm14 }
 0x475   :  { %v451_v2 = vsub.f32 1.0, %v450_v0 }
 0x477   :  { %v452_v7 = vmul.f32 %v3894_v63, %v451_v2 }
 0x479   :  { %v453_v25 = vadd.f32 %v3894_v63, %v452_v7 }
 0x47b   :  { %628 = vrot.lane.b32.xlu1 %v4363_v60, %s4139_s27  ;;  %v457_v40 = vsel %vm456_vm6, %v3894_v63, %v453_v25 }
 0x47c   :  { %v462_v44 = vsel %vm459_vm9, %v461_v59, %v457_v40  ;;  %v667_v40 = vld [vmem:[#allocation2 + $0xf0] sm:$0xff]  ;;  %v4417_v59 = vld [vmem:[#allocation2 + $0x101] ss:$0 sm:$0xff] }
 0x47d   :  { %v4376_v49 = vmul.f32 %v4304_v35, %v462_v44  ;;  %v4386_v35 = vpack.i.bf16 %v4231_v29, %v4223_v22 }
 0x48f   :  { %v512_v8 = vpop.permute.xlu2 %511 }
 0x492   :  { %v376_v62 = vpop.xlane.xlu1 %375 }
 0x493   :  { %3895 = vrcp.f32 %v376_v62  ;;  %v445_v6 = vand.u32 2147483648, %v376_v62  ;;  %v443_v9 = vand.u32 2147483647, %v376_v62  ;;  %vm439_vm12 = vweird.f32 %v376_v62 }
 0x495   :  { %v446_v16 = vor.u32 1.1754944e-38, %v445_v6  ;;  %vm444_vm15 = vcmp.eq.f32.partialorder %v443_v9, 8.507059e+37 }
 0x497   :  { %v514_v42 = vpop.permute.xlu2 %513 }
 0x499   :  { %v3896_v1 = vpop.eup %3895 }
 0x49a   :  { %v435_v3 = vmul.f32 %v3896_v1, %v376_v62  ;;  %v382_v4 = vpop.xlane.xlu0 %381  ;;  %vm440_vm11 = vweird.f32 %v3896_v1 }
 0x49b   :  { %3897 = vrcp.f32 %v382_v4  ;;  %vm441_vm13 = vmor %vm439_vm12, %vm440_vm11  ;;  %v475_v36 = vand.u32 2147483648, %v382_v4  ;;  %v473_v38 = vand.u32 2147483647, %v382_v4  ;;  %vm469_vm8 = vweird.f32 %v382_v4 }
 0x49c   :  { %v436_v5 = vsub.f32 1.0, %v435_v3 }
 0x49d   :  { %v476_v15 = vor.u32 1.1754944e-38, %v475_v36  ;;  %vm474_vm11 = vcmp.eq.f32.partialorder %v473_v38, 8.507059e+37 }
 0x49e   :  { %v437_v33 = vmul.f32 %v3896_v1, %v436_v5 }
 0x4a0   :  { %v438_v10 = vadd.f32 %v3896_v1, %v437_v33  ;;  %v665_v33 = vld [vmem:[#allocation2 + $0xe0] sm:$0xff] }
 0x4a1   :  { %v3898_v11 = vpop.eup %3897 }
 0x4a2   :  { %v465_v23 = vmul.f32 %v3898_v11, %v382_v4  ;;  %v442_v24 = vsel %vm441_vm13, %v3896_v1, %v438_v10  ;;  %vm470_vm7 = vweird.f32 %v3898_v11  ;;  %v4141_v10 = vmov 96  }
 0x4a3   :  { %v447_v28 = vsel %vm444_vm15, %v446_v16, %v442_v24  ;;  %vm471_vm10 = vmor %vm469_vm8, %vm470_vm7  ;;  %3786 = vset.pattern.permute.xlu0 %v4141_v10  ;;  %3785 = vset.pattern.permute.xlu2 %v4141_v10  ;;  %vm909_vm8 = vcmask 195584  }
 0x4a4   :  { %v466_v30 = vsub.f32 1.0, %v465_v23  ;;  %v4368_v31 = vmul.f32 %v4309_v45, %v447_v28 }
 0x4a6   :  { %552 = vrot.lane.b32.xlu2 %v4368_v31, %s4139_s27  ;;  %v467_v37 = vmul.f32 %v3898_v11, %v466_v30 }
 0x4a8   :  { %v468_v43 = vadd.f32 %v3898_v11, %v467_v37  ;;  %v668_v37 = vld [vmem:[#allocation2 + $0xf8] sm:$0xff] }
 0x4aa   :  { %v3767_v45 = vpop.permute.xlu1 %3766  ;;  %v472_v46 = vsel %vm471_vm10, %v3898_v11, %v468_v43  ;;  %v666_v43 = vld [vmem:[#allocation2 + $0xe8] sm:$0xff] }
 0x4ab   :  { %v3768_v19 = vunpack.i.l.bf16 %v3767_v45  ;;  %v477_v47 = vsel %vm474_vm11, %v476_v15, %v472_v46  ;;  %v3769_v52 = vunpack.i.h.bf16 %v3767_v45 }
 0x4ac   :  { %v4373_v48 = vmul.f32 %v4315_v50, %v477_v47  ;;  %v551_v50 = vpop.permute.xlu2 %550 }
 0x4ad   :  { %v3772_v51 = vpop.permute.xlu0 %3771  ;;  %539 = vmatpush.msrb.mxu2 %v3768_v19 }
 0x4ae   :  { %591 = vrot.lane.b32.xlu0 %v4373_v48, %s4139_s27  ;;  %589 = vrot.lane.b32.xlu2 %v4376_v49, %s4139_s27  ;;  %v3773_v54 = vunpack.i.l.bf16 %v3772_v51  ;;  %v3774_v18 = vunpack.i.h.bf16 %v3772_v51 }
 0x4af   :  { %540 = vmatpush.msrb.mxu2 %v3769_v52 }
 0x4b0   :  { %3591 = vmatmul.msk.f32.vlgmr.msrb.gmra.mxu2 %vm364_vm5, %v512_v8  ;;  %578 = vmatpush.msrb.mxu3 %v3773_v54 }
 0x4b2   :  { %579 = vmatpush.msrb.mxu3 %v3774_v18 }
 0x4b3   :  { %3593 = vmatmul.msk.f32.vlgmr.msrb.gmra.mxu3 %vm364_vm5, %v551_v50 }
 0x4b4   :  { %947 = vmatpush.msra.mxu3 %v668_v37 }
 0x4b5   :  { %v3777_v20 = vpop.permute.xlu0 %3776 }
 0x4b6   :  { %3781 = vrot.lane.b32.xlu2 %v4386_v35, %s4140_s28  ;;  %v3778_v55 = vunpack.i.l.bf16 %v3777_v20  ;;  %v3779_v56 = vunpack.i.h.bf16 %v3777_v20  ;;  %948 = vmatpush.msra.mxu3 %v667_v40 }
 0x4b8   :  { %3592 = vmatmul.msk.f32.gmra.mxu2 %vm364_vm5, %v514_v42  ;;  %617 = vmatpush.msrb.mxu0 %v3778_v55 }
 0x4b9   :  { %3747 = vmatpush.msra.mxu2 %v3778_v55  ;;  %949 = vmatpush.msra.mxu3 %v666_v43 }
 0x4ba   :  { %618 = vmatpush.msrb.mxu0 %v3779_v56 }
 0x4bb   :  { %3748 = vmatpush.msra.mxu2 %v3779_v56 }
 0x4bd   :  { %722 = vmatpush.msrb.mxu2 %v665_v33 }
 0x4be   :  { %673 = vperm.xlu2 %3785, %v4174_v12  }
 0x4c6   :  { %1072 = vrot.lane.b32.xlu2 %v4180_v13, %s4142_s29 }
 0x4ce   :  { %1070 = vrot.lane.b32.xlu2 %v4174_v12, %s4142_s29 }
 0x4d5   :  { %v388_v26 = vpop.xlane.xlu1 %387 }
 0x4d6   :  { %3899 = vrcp.f32 %v388_v26  ;;  %v505_v62 = vand.u32 2147483648, %v388_v26  ;;  %v503_v29 = vand.u32 2147483647, %v388_v26  ;;  %vm499_vm13 = vweird.f32 %v388_v26 }
 0x4d8   :  { %v506_v0 = vor.u32 1.1754944e-38, %v505_v62  ;;  %vm504_vm15 = vcmp.eq.f32.partialorder %v503_v29, 8.507059e+37 }
 0x4dc   :  { %v3900_v57 = vpop.eup %3899 }
 0x4dd   :  { %v495_v58 = vmul.f32 %v3900_v57, %v388_v26  ;;  %vm500_vm12 = vweird.f32 %v3900_v57 }
 0x4de   :  { %vm501_vm14 = vmor %vm499_vm13, %vm500_vm12 }
 0x4df   :  { %v496_v61 = vsub.f32 1.0, %v495_v58 }
 0x4e1   :  { %v497_v22 = vmul.f32 %v3900_v57, %v496_v61 }
 0x4e3   :  { %v498_v63 = vadd.f32 %v3900_v57, %v497_v22 }
 0x4e5   :  { %v502_v1 = vsel %vm501_vm14, %v3900_v57, %v498_v63 }
 0x4e6   :  { %v507_v2 = vsel %vm504_vm15, %v506_v0, %v502_v1 }
 0x4e7   :  { %v4392_v3 = vmul.f32 %v4320_v53, %v507_v2 }
 0x4e9   :  { %630 = vrot.lane.b32.xlu0 %v4392_v3, %s4139_s27 }
 0x4ed   :  { %v629_v9 = vpop.permute.xlu1 %628 }
 0x4f1   :  { %677 = vperm.xlu0 %3786, %v4180_v13  }
 0x500   :  { %v553_v4 = vpop.permute.xlu2 %552 }
 0x501   :  { %3594 = vmatmul.msk.f32.gmra.mxu3 %vm364_vm5, %v553_v4 }
 0x508   :  { %v590_v5 = vpop.permute.xlu2 %589 }
 0x509   :  { %3595 = vmatmul.msk.f32.vlgmr.msrb.gmra.mxu0 %vm364_vm5, %v590_v5 }
 0x510   :  { %v3782_v6 = vpop.permute.xlu2 %3781 }
 0x511   :  { %v3783_v7 = vunpack.i.l.bf16 %v3782_v6  ;;  %v3784_v8 = vunpack.i.h.bf16 %v3782_v6 }
 0x513   :  { %656 = vmatpush.msra.mxu1 %v3783_v7 }
 0x515   :  { %657 = vmatpush.msra.mxu1 %v3784_v8 }
 0x516   :  { %3597 = vmatmul.msk.f32.vlgmr.msra.gmra.mxu1 %vm364_vm5, %v629_v9 }
 0x518   :  { %v4412_v36 = vpop.permute.xlu2 %673 }
 0x519   :  { %v4415_v38 = vmul.f32 %v3847_v32, %v4412_v36 }
 0x520   :  { %v592_v53 = vpop.permute.xlu0 %591 }
 0x521   :  { %3596 = vmatmul.msk.f32.vlgmr.msra.gmra.mxu2 %vm364_vm5, %v592_v53 }
 0x533   :  { %v542_v11 = vpop.f32.mrf.mxu2 }
 0x534   :  { %3599 = vmatmul.msk.f32.vlgmr.msrb.gmra.mxu2 %vm94_vm1, %v542_v11 }
 0x536   :  { %v581_v23 = vpop.f32.mrf.mxu3 }
 0x53b   :  { %v545_v16 = vpop.f32.mrf.mxu2 }
 0x53c   :  { %3600 = vmatmul.msk.f32.gmra.mxu2 %vm94_vm1, %v545_v16 }
 0x544   :  { %3601 = vmatmul.msk.f32.gmra.mxu2 %vm94_vm1, %v581_v23 }
 0x55b   :  { %v631_v24 = vpop.permute.xlu0 %630 }
 0x55c   :  { %3598 = vmatmul.msk.f32.gmra.mxu1 %vm364_vm5, %v631_v24 }
 0x563   :  { %v4420_v44 = vpop.permute.xlu0 %677 }
 0x564   :  { %v4424_v19 = vmul.f32 %v3847_v32, %v4420_v44 }
 0x584   :  { %v584_v25 = vpop.f32.mrf.mxu3 }
 0x585   :  { %3602 = vmatmul.msk.f32.gmra.mxu2 %vm94_vm1, %v584_v25 }
 0x586   :  { %v620_v27 = vpop.f32.mrf.mxu0 }
 0x58d   :  { %3603 = vmatmul.msk.f32.gmra.mxu2 %vm94_vm1, %v620_v27 }
 0x593   :  { %v659_v30 = vpop.f32.mrf.mxu1 }
 0x5a4   :  { %v623_v28 = vpop.f32.mrf.mxu2 }
 0x5a5   :  { %3604 = vmatmul.msk.f32.gmra.mxu2 %vm94_vm1, %v623_v28 }
 0x5ad   :  { %3605 = vmatmul.msk.f32.gmra.mxu2 %vm94_vm1, %v659_v30 }
 0x5b7   :  { %v724_v42 = vpop.f32.mrf.mxu2 }
 0x5b8   :  { %v725_v15 = vadd.f32 %v724_v42, %v4415_v38 }
 0x5ba   :  { %v749_v45 = vadd.f32 %v4417_v59, %v725_v15 }
 0x5bc   :  { %v3607_v46 = vmul.f32 -1.442695, %v749_v45 }
 0x5be   :  { %3901 = vpow2.f32 %v3607_v46 }
 0x5bf   :  { %v727_v47 = vpop.f32.mrf.mxu2 }
 0x5c0   :  { %v728_v51 = vadd.f32 %v727_v47, %v4424_v19 }
 0x5c2   :  { %v750_v52 = vadd.f32 %v4417_v59, %v728_v51 }
 0x5c4   :  { %v3902_v54 = vpop.eup %3901  ;;  %v3608_v18 = vmul.f32 -1.442695, %v750_v52 }
 0x5c5   :  { %v781_v50 = vadd.f32 1.0, %v3902_v54 }
 0x5c6   :  { %3903 = vpow2.f32 %v3608_v18 }
 0x5c7   :  { %3905 = vrcp.f32 %v781_v50  ;;  %v730_v20 = vpop.f32.mrf.mxu2  ;;  %v800_v29 = vand.u32 2147483648, %v781_v50  ;;  %v798_v0 = vand.u32 2147483647, %v781_v50  ;;  %vm794_vm6 = vweird.f32 %v781_v50 }
 0x5c8   :  { %v731_v55 = vadd.f32 %v730_v20, %v4415_v38 }
 0x5c9   :  { %v801_v6 = vor.u32 1.1754944e-38, %v800_v29  ;;  %vm799_vm9 = vcmp.eq.f32.partialorder %v798_v0, 8.507059e+37 }
 0x5ca   :  { %v751_v56 = vadd.f32 %v4417_v59, %v731_v55 }
 0x5cc   :  { %v3904_v26 = vpop.eup %3903  ;;  %v3609_v57 = vmul.f32 -1.442695, %v751_v56 }
 0x5cd   :  { %v3906_v58 = vpop.eup %3905  ;;  %v782_v61 = vadd.f32 1.0, %v3904_v26 }
 0x5ce   :  { %3907 = vpow2.f32 %v3609_v57  ;;  %v790_v62 = vmul.f32 %v3906_v58, %v781_v50  ;;  %vm795_vm0 = vweird.f32 %v3906_v58 }
 0x5cf   :  { %3909 = vrcp.f32 %v782_v61  ;;  %vm796_vm7 = vmor %vm794_vm6, %vm795_vm0  ;;  %v815_v10 = vand.u32 2147483648, %v782_v61  ;;  %v813_v16 = vand.u32 2147483647, %v782_v61  ;;  %vm809_vm11 = vweird.f32 %v782_v61 }
 0x5d0   :  { %v791_v22 = vsub.f32 1.0, %v790_v62 }
 0x5d1   :  { %v816_v25 = vor.u32 1.1754944e-38, %v815_v10  ;;  %vm814_vm13 = vcmp.eq.f32.partialorder %v813_v16, 8.507059e+37 }
 0x5d2   :  { %v792_v63 = vmul.f32 %v3906_v58, %v791_v22 }
 0x5d4   :  { %v3908_v1 = vpop.eup %3907  ;;  %v793_v2 = vadd.f32 %v3906_v58, %v792_v63 }
 0x5d5   :  { %v3910_v4 = vpop.eup %3909  ;;  %v783_v5 = vadd.f32 1.0, %v3908_v1 }
 0x5d6   :  { %v797_v7 = vsel %vm796_vm7, %v3906_v58, %v793_v2  ;;  %v805_v8 = vmul.f32 %v3910_v4, %v782_v61  ;;  %vm810_vm10 = vweird.f32 %v3910_v4 }
 0x5d7   :  { %3911 = vrcp.f32 %v783_v5  ;;  %v802_v33 = vsel %vm799_vm9, %v801_v6, %v797_v7  ;;  %vm811_vm12 = vmor %vm809_vm11, %vm810_vm10  ;;  %v830_v37 = vand.u32 2147483648, %v783_v5  ;;  %v828_v42 = vand.u32 2147483647, %v783_v5 }
 0x5d8   :  { %3615 = vmatmul.msk.f32.vlgmr.msra.gmra.mxu3 %vm909_vm8, %v802_v33  ;;  %v806_v9 = vsub.f32 1.0, %v805_v8  ;;  %vm824_vm15 = vweird.f32 %v783_v5 }
 0x5d9   :  { %v662_v53 = vpop.f32.mrf.mxu1  ;;  %v831_v15 = vor.u32 1.1754944e-38, %v830_v37  ;;  %vm829_vm6 = vcmp.eq.f32.partialorder %v828_v42, 8.507059e+37 }
 0x5da   :  { %3606 = vmatmul.msk.f32.gmra.mxu2 %vm94_vm1, %v662_v53  ;;  %v807_v11 = vmul.f32 %v3910_v4, %v806_v9 }
 0x5dc   :  { %v808_v23 = vadd.f32 %v3910_v4, %v807_v11 }
 0x5dd   :  { %v3912_v24 = vpop.eup %3911 }
 0x5de   :  { %v812_v27 = vsel %vm811_vm12, %v3910_v4, %v808_v23  ;;  %v820_v28 = vmul.f32 %v3912_v24, %v783_v5  ;;  %vm825_vm14 = vweird.f32 %v3912_v24 }
 0x5df   :  { %v817_v30 = vsel %vm814_vm13, %v816_v25, %v812_v27  ;;  %vm826_vm0 = vmor %vm824_vm15, %vm825_vm14 }
 0x5e0   :  { %3616 = vmatmul.msk.f32.gmra.mxu3 %vm909_vm8, %v817_v30  ;;  %v821_v32 = vsub.f32 1.0, %v820_v28 }
 0x5e2   :  { %v822_v40 = vmul.f32 %v3912_v24, %v821_v32 }
 0x5e4   :  { %v823_v43 = vadd.f32 %v3912_v24, %v822_v40 }
 0x5e6   :  { %v827_v45 = vsel %vm826_vm0, %v3912_v24, %v823_v43 }
 0x5e7   :  { %v832_v46 = vsel %vm829_vm6, %v831_v15, %v827_v45 }
 0x5e8   :  { %3617 = vmatmul.msk.f32.gmra.mxu3 %vm909_vm8, %v832_v46 }
 0x608   :  { %v733_v47 = vpop.f32.mrf.mxu2 }
 0x609   :  { %v734_v51 = vadd.f32 %v733_v47, %v4424_v19 }
 0x60b   :  { %v752_v52 = vadd.f32 %v4417_v59, %v734_v51 }
 0x60d   :  { %v3610_v54 = vmul.f32 -1.442695, %v752_v52 }
 0x60f   :  { %3913 = vpow2.f32 %v3610_v54 }
 0x610   :  { %v736_v18 = vpop.f32.mrf.mxu2 }
 0x611   :  { %v737_v50 = vadd.f32 %v736_v18, %v4415_v38 }
 0x613   :  { %v753_v20 = vadd.f32 %v4417_v59, %v737_v50 }
 0x615   :  { %v3914_v55 = vpop.eup %3913  ;;  %v3611_v56 = vmul.f32 -1.442695, %v753_v20 }
 0x616   :  { %v784_v26 = vadd.f32 1.0, %v3914_v55 }
 0x617   :  { %3915 = vpow2.f32 %v3611_v56 }
 0x618   :  { %3917 = vrcp.f32 %v784_v26  ;;  %v845_v29 = vand.u32 2147483648, %v784_v26  ;;  %v843_v0 = vand.u32 2147483647, %v784_v26  ;;  %vm839_vm9 = vweird.f32 %v784_v26 }
 0x61a   :  { %v846_v4 = vor.u32 1.1754944e-38, %v845_v29  ;;  %vm844_vm11 = vcmp.eq.f32.partialorder %v843_v0, 8.507059e+37 }
 0x61d   :  { %v3916_v57 = vpop.eup %3915 }
 0x61e   :  { %v3918_v58 = vpop.eup %3917  ;;  %v785_v61 = vadd.f32 1.0, %v3916_v57 }
 0x61f   :  { %v835_v62 = vmul.f32 %v3918_v58, %v784_v26  ;;  %vm840_vm7 = vweird.f32 %v3918_v58 }
 0x620   :  { %3919 = vrcp.f32 %v785_v61  ;;  %vm841_vm10 = vmor %vm839_vm9, %vm840_vm7  ;;  %v860_v53 = vand.u32 2147483648, %v785_v61  ;;  %v858_v16 = vand.u32 2147483647, %v785_v61  ;;  %vm854_vm13 = vweird.f32 %v785_v61 }
 0x621   :  { %v836_v22 = vsub.f32 1.0, %v835_v62 }
 0x622   :  { %v861_v25 = vor.u32 1.1754944e-38, %v860_v53  ;;  %vm859_vm15 = vcmp.eq.f32.partialorder %v858_v16, 8.507059e+37 }
 0x623   :  { %v837_v63 = vmul.f32 %v3918_v58, %v836_v22 }
 0x625   :  { %v838_v1 = vadd.f32 %v3918_v58, %v837_v63 }
 0x626   :  { %v3920_v2 = vpop.eup %3919 }
 0x627   :  { %v842_v5 = vsel %vm841_vm10, %v3918_v58, %v838_v1  ;;  %v850_v6 = vmul.f32 %v3920_v2, %v785_v61  ;;  %vm855_vm12 = vweird.f32 %v3920_v2 }
 0x628   :  { %v739_v7 = vpop.f32.mrf.mxu2  ;;  %v847_v8 = vsel %vm844_vm11, %v846_v4, %v842_v5  ;;  %vm856_vm14 = vmor %vm854_vm13, %vm855_vm12  ;;  %v4445_v4 = vpop.permute.xlu2 %1072 }
 0x629   :  { %v740_v33 = vadd.f32 %v739_v7, %v4424_v19  ;;  %3618 = vmatmul.msk.f32.gmra.mxu3 %vm909_vm8, %v847_v8  ;;  %v851_v9 = vsub.f32 1.0, %v850_v6 }
 0x62b   :  { %v754_v10 = vadd.f32 %v4417_v59, %v740_v33  ;;  %v852_v11 = vmul.f32 %v3920_v2, %v851_v9 }
 0x62d   :  { %v3612_v23 = vmul.f32 -1.442695, %v754_v10  ;;  %v853_v24 = vadd.f32 %v3920_v2, %v852_v11 }
 0x62f   :  { %3921 = vpow2.f32 %v3612_v23  ;;  %v857_v27 = vsel %vm856_vm14, %v3920_v2, %v853_v24  ;;  %vm1074_vm14 = vcmask 23552  }
 0x630   :  { %v742_v28 = vpop.f32.mrf.mxu2  ;;  %v862_v30 = vsel %vm859_vm15, %v861_v25, %v857_v27  ;;  %3623 = vmatpush.xpose.msk.msra.mxu0 %vm1074_vm14, %v4445_v4  ;;  %v4450_v7 = vpop.permute.xlu2 %1070 }
 0x631   :  { %v743_v32 = vadd.f32 %v742_v28, %v4415_v38  ;;  %3619 = vmatmul.msk.f32.gmra.mxu3 %vm909_vm8, %v862_v30  ;;  %v671_v38 = vld [vmem:[#allocation2 + $0x102] sm:$0x1] }
 0x632   :  { %v977_v57 = vsub.f32 0.0, %v671_v38 }
 0x633   :  { %v755_v37 = vadd.f32 %v4417_v59, %v743_v32  ;;  %v975_v32 = vmul.f32 1.442695, %v671_v38 }
 0x634   :  { %v978_v63 = vmul.f32 1.442695, %v977_v57  ;;  %3624 = vmatpush.xpose.msk.msra.mxu0 %vm1074_vm14, %v4450_v7 }
 0x635   :  { %v3922_v40 = vpop.eup %3921  ;;  %v3613_v42 = vmul.f32 -1.442695, %v755_v37 }
 0x636   :  { %v786_v43 = vadd.f32 1.0, %v3922_v40 }
 0x637   :  { %3923 = vpow2.f32 %v3613_v42 }
 0x638   :  { %3925 = vrcp.f32 %v786_v43  ;;  %v875_v52 = vand.u32 2147483648, %v786_v43  ;;  %v873_v18 = vand.u32 2147483647, %v786_v43  ;;  %vm869_vm6 = vweird.f32 %v786_v43 }
 0x63a   :  { %v876_v55 = vor.u32 1.1754944e-38, %v875_v52  ;;  %vm874_vm9 = vcmp.eq.f32.partialorder %v873_v18, 8.507059e+37 }
 0x63d   :  { %v3924_v15 = vpop.eup %3923 }
 0x63e   :  { %v3926_v45 = vpop.eup %3925  ;;  %v787_v46 = vadd.f32 1.0, %v3924_v15 }
 0x63f   :  { %v865_v47 = vmul.f32 %v3926_v45, %v786_v43  ;;  %vm870_vm0 = vweird.f32 %v3926_v45 }
 0x640   :  { %3927 = vrcp.f32 %v787_v46  ;;  %vm871_vm7 = vmor %vm869_vm6, %vm870_vm0  ;;  %v890_v62 = vand.u32 2147483648, %v787_v46  ;;  %v888_v29 = vand.u32 2147483647, %v787_v46  ;;  %vm884_vm11 = vweird.f32 %v787_v46 }
 0x641   :  { %v866_v51 = vsub.f32 1.0, %v865_v47  ;;  %3929 = vpow2.f32 %v978_v63 }
 0x642   :  { %v891_v1 = vor.u32 1.1754944e-38, %v890_v62  ;;  %vm889_vm13 = vcmp.eq.f32.partialorder %v888_v29, 8.507059e+37 }
 0x643   :  { %v867_v54 = vmul.f32 %v3926_v45, %v866_v51 }
 0x645   :  { %v868_v50 = vadd.f32 %v3926_v45, %v867_v54 }
 0x646   :  { %v3928_v20 = vpop.eup %3927 }
 0x647   :  { %v872_v56 = vsel %vm871_vm7, %v3926_v45, %v868_v50  ;;  %v880_v26 = vmul.f32 %v3928_v20, %v787_v46  ;;  %vm885_vm10 = vweird.f32 %v3928_v20  ;;  %v3930_v6 = vpop.eup %3929 }
 0x648   :  { %v877_v58 = vsel %vm874_vm9, %v876_v55, %v872_v56  ;;  %vm886_vm12 = vmor %vm884_vm11, %vm885_vm10  ;;  %v4452_v8 = vperm.slane %v3930_v6, 0  ;;  %vm1396_vm9 = vcmask 261120  }
 0x649   :  { %3620 = vmatmul.msk.f32.gmra.mxu3 %vm909_vm8, %v877_v58  ;;  %v881_v61 = vsub.f32 1.0, %v880_v26 }
 0x64b   :  { %v882_v22 = vmul.f32 %v3928_v20, %v881_v61 }
 0x64d   :  { %v883_v0 = vadd.f32 %v3928_v20, %v882_v22 }
 0x64f   :  { %v887_v2 = vsel %vm886_vm12, %v3928_v20, %v883_v0 }
 0x650   :  { %v892_v5 = vsel %vm889_vm13, %v891_v1, %v887_v2 }
 0x651   :  { %3621 = vmatmul.msk.f32.gmra.mxu3 %vm909_vm8, %v892_v5 }
 0x65b   :  { %v951_v33 = vpop.f32.mrf.mxu3 }
 0x65c   :  { %v981_v9 = vmul.f32 %v4452_v8, %v951_v33 }
 0x65d   :  { %v745_v53 = vpop.f32.mrf.mxu2 }
 0x65e   :  { %v997_v10 = vand.u32 2147483647, %v981_v9  ;;  %v746_v11 = vadd.f32 %v745_v53, %v4424_v19  ;;  %v989_v20 = vmax.f32 %v981_v9, 0.0 }
 0x660   :  { %v1005_v16 = vsub.f32 0.0, %v997_v10  ;;  %v756_v23 = vadd.f32 %v4417_v59, %v746_v11 }
 0x662   :  { %v1013_v24 = vmul.f32 1.442695, %v1005_v16  ;;  %v3614_v25 = vmul.f32 -1.442695, %v756_v23 }
 0x663   :  { %v954_v27 = vpop.f32.mrf.mxu3 }
 0x664   :  { %3931 = vpow2.f32 %v1013_v24  ;;  %v982_v28 = vmul.f32 %v4452_v8, %v954_v27 }
 0x665   :  { %3933 = vpow2.f32 %v3614_v25 }
 0x666   :  { %v998_v30 = vand.u32 2147483647, %v982_v28  ;;  %3935 = vpow2.f32 %v975_v32  ;;  %v990_v5 = vmax.f32 %v982_v28, 0.0 }
 0x668   :  { %v1006_v37 = vsub.f32 0.0, %v998_v30 }
 0x66a   :  { %v3932_v40 = vpop.eup %3931  ;;  %v1015_v42 = vmul.f32 1.442695, %v1006_v37 }
 0x66b   :  { %v3934_v43 = vpop.eup %3933  ;;  %v1029_v15 = vadd.f32 1.0, %v3932_v40  ;;  %v957_v45 = vpop.f32.mrf.mxu3 }
 0x66c   :  { %v788_v19 = vadd.f32 1.0, %v3934_v43  ;;  %3937 = vpow2.f32 %v1015_v42  ;;  %v983_v59 = vmul.f32 %v4452_v8, %v957_v45  ;;  %v3936_v51 = vpop.eup %3935 }
 0x66d   :  { %3939 = vlog2.f32 %v1029_v15  ;;  %v4461_v56 = vperm.slane %v3936_v51, 0 }
 0x66e   :  { %3941 = vrcp.f32 %v788_v19  ;;  %v999_v46 = vand.u32 2147483647, %v983_v59  ;;  %v905_v62 = vand.u32 2147483648, %v788_v19  ;;  %v903_v29 = vand.u32 2147483647, %v788_v19 }
 0x66f   :  { %vm899_vm0 = vweird.f32 %v788_v19  ;;  %v991_v23 = vmax.f32 %v983_v59, 0.0 }
 0x670   :  { %v1007_v47 = vsub.f32 0.0, %v999_v46  ;;  %v906_v33 = vor.u32 1.1754944e-38, %v905_v62  ;;  %vm904_vm7 = vcmp.eq.f32.partialorder %v903_v29, 8.507059e+37 }
 0x672   :  { %v3938_v52 = vpop.eup %3937  ;;  %v1017_v54 = vmul.f32 1.442695, %v1007_v47 }
 0x673   :  { %v3940_v18 = vpop.eup %3939  ;;  %v1030_v38 = vadd.f32 1.0, %v3938_v52 }
 0x674   :  { %v3942_v50 = vpop.eup %3941  ;;  %v1038_v55 = vmul.f32 0.6931472, %v3940_v18  ;;  %3943 = vpow2.f32 %v1017_v54 }
 0x675   :  { %3945 = vlog2.f32 %v1030_v38  ;;  %v895_v26 = vmul.f32 %v3942_v50, %v788_v19  ;;  %vm900_vm15 = vweird.f32 %v3942_v50 }
 0x676   :  { %v1053_v57 = vadd.f32 %v1038_v55, %v989_v20  ;;  %vm901_vm6 = vmor %vm899_vm0, %vm900_vm15 }
 0x677   :  { %v896_v58 = vsub.f32 1.0, %v895_v26 }
 0x678   :  { %v1062_v61 = vmul.f32 %v4461_v56, %v1053_v57 }
 0x679   :  { %v897_v22 = vmul.f32 %v3942_v50, %v896_v58 }
 0x67a   :  { %v3944_v63 = vpop.eup %3943  ;;  %3625 = vmatmul.msk.f32.vlgmr.msra.gmra.mxu0 %vm1074_vm14, %v1062_v61 }
 0x67b   :  { %v3946_v0 = vpop.eup %3945  ;;  %v1031_v1 = vadd.f32 1.0, %v3944_v63  ;;  %v898_v2 = vadd.f32 %v3942_v50, %v897_v22 }
 0x67c   :  { %v1040_v6 = vmul.f32 0.6931472, %v3946_v0 }
 0x67d   :  { %3947 = vlog2.f32 %v1031_v1  ;;  %v902_v9 = vsel %vm901_vm6, %v3942_v50, %v898_v2 }
 0x67e   :  { %v1054_v53 = vadd.f32 %v1040_v6, %v990_v5  ;;  %v907_v10 = vsel %vm904_vm7, %v906_v33, %v902_v9 }
 0x67f   :  { %3622 = vmatmul.msk.f32.gmra.mxu3 %vm909_vm8, %v907_v10 }
 0x680   :  { %v1063_v11 = vmul.f32 %v4461_v56, %v1054_v53 }
 0x682   :  { %3626 = vmatmul.msk.f32.gmra.mxu0 %vm1074_vm14, %v1063_v11 }
 0x683   :  { %v3948_v16 = vpop.eup %3947 }
 0x684   :  { %v1042_v24 = vmul.f32 0.6931472, %v3948_v16 }
 0x686   :  { %v1055_v25 = vadd.f32 %v1042_v24, %v991_v23 }
 0x688   :  { %v1064_v27 = vmul.f32 %v4461_v56, %v1055_v25 }
 0x68a   :  { %3627 = vmatmul.msk.f32.gmra.mxu0 %vm1074_vm14, %v1064_v27 }
 0x6ac   :  { %v960_v28 = vpop.f32.mrf.mxu3 }
 0x6ad   :  { %v984_v30 = vmul.f32 %v4452_v8, %v960_v28 }
 0x6af   :  { %v1000_v32 = vand.u32 2147483647, %v984_v30  ;;  %v992_v54 = vmax.f32 %v984_v30, 0.0 }
 0x6b1   :  { %v1008_v37 = vsub.f32 0.0, %v1000_v32 }
 0x6b3   :  { %v1019_v40 = vmul.f32 1.442695, %v1008_v37 }
 0x6b4   :  { %v963_v42 = vpop.f32.mrf.mxu3 }
 0x6b5   :  { %3949 = vpow2.f32 %v1019_v40  ;;  %v985_v43 = vmul.f32 %v4452_v8, %v963_v42 }
 0x6b7   :  { %v1001_v15 = vand.u32 2147483647, %v985_v43  ;;  %v993_v26 = vmax.f32 %v985_v43, 0.0 }
 0x6b9   :  { %v1009_v45 = vsub.f32 0.0, %v1001_v15 }
 0x6bb   :  { %v3950_v19 = vpop.eup %3949  ;;  %v1021_v59 = vmul.f32 1.442695, %v1009_v45 }
 0x6bc   :  { %v1032_v46 = vadd.f32 1.0, %v3950_v19 }
 0x6bd   :  { %3951 = vpow2.f32 %v1021_v59 }
 0x6be   :  { %3953 = vlog2.f32 %v1032_v46 }
 0x6c3   :  { %v3952_v47 = vpop.eup %3951 }
 0x6c4   :  { %v3954_v51 = vpop.eup %3953  ;;  %v1033_v52 = vadd.f32 1.0, %v3952_v47 }
 0x6c5   :  { %v1044_v18 = vmul.f32 0.6931472, %v3954_v51 }
 0x6c6   :  { %3955 = vlog2.f32 %v1033_v52 }
 0x6c7   :  { %v1056_v38 = vadd.f32 %v1044_v18, %v992_v54 }
 0x6c9   :  { %v1065_v50 = vmul.f32 %v4461_v56, %v1056_v38 }
 0x6cb   :  { %3628 = vmatmul.msk.f32.gmra.mxu0 %vm1074_vm14, %v1065_v50 }
 0x6cc   :  { %v3956_v20 = vpop.eup %3955  ;;  %v966_v55 = vpop.f32.mrf.mxu3 }
 0x6cd   :  { %v1046_v57 = vmul.f32 0.6931472, %v3956_v20  ;;  %v986_v58 = vmul.f32 %v4452_v8, %v966_v55 }
 0x6cf   :  { %v1057_v61 = vadd.f32 %v1046_v57, %v993_v26  ;;  %v1002_v62 = vand.u32 2147483647, %v986_v58  ;;  %v994_v16 = vmax.f32 %v986_v58, 0.0 }
 0x6d1   :  { %v1010_v22 = vsub.f32 0.0, %v1002_v62  ;;  %v1066_v29 = vmul.f32 %v4461_v56, %v1057_v61 }
 0x6d3   :  { %v1023_v63 = vmul.f32 1.442695, %v1010_v22  ;;  %3629 = vmatmul.msk.f32.gmra.mxu0 %vm1074_vm14, %v1066_v29 }
 0x6d4   :  { %v969_v0 = vpop.f32.mrf.mxu3 }
 0x6d5   :  { %3957 = vpow2.f32 %v1023_v63  ;;  %v987_v1 = vmul.f32 %v4452_v8, %v969_v0 }
 0x6d7   :  { %v1003_v2 = vand.u32 2147483647, %v987_v1  ;;  %v995_v28 = vmax.f32 %v987_v1, 0.0 }
 0x6d9   :  { %v1011_v5 = vsub.f32 0.0, %v1003_v2 }
 0x6db   :  { %v3958_v6 = vpop.eup %3957  ;;  %v1025_v33 = vmul.f32 1.442695, %v1011_v5 }
 0x6dc   :  { %v1034_v9 = vadd.f32 1.0, %v3958_v6 }
 0x6dd   :  { %3959 = vpow2.f32 %v1025_v33 }
 0x6de   :  { %3961 = vlog2.f32 %v1034_v9 }
 0x6e3   :  { %v3960_v53 = vpop.eup %3959 }
 0x6e4   :  { %v3962_v10 = vpop.eup %3961  ;;  %v1035_v11 = vadd.f32 1.0, %v3960_v53 }
 0x6e5   :  { %v1048_v23 = vmul.f32 0.6931472, %v3962_v10 }
 0x6e6   :  { %3963 = vlog2.f32 %v1035_v11 }
 0x6e7   :  { %v1058_v24 = vadd.f32 %v1048_v23, %v994_v16 }
 0x6e9   :  { %v1067_v25 = vmul.f32 %v4461_v56, %v1058_v24 }
 0x6eb   :  { %3630 = vmatmul.msk.f32.gmra.mxu0 %vm1074_vm14, %v1067_v25 }
 0x6ec   :  { %v3964_v27 = vpop.eup %3963 }
 0x6ed   :  { %v1050_v30 = vmul.f32 0.6931472, %v3964_v27 }
 0x6ef   :  { %v1059_v32 = vadd.f32 %v1050_v30, %v995_v28 }
 0x6f1   :  { %v1068_v37 = vmul.f32 %v4461_v56, %v1059_v32 }
 0x6f3   :  { %3631 = vmatmul.msk.f32.gmra.mxu0 %vm1074_vm14, %v1068_v37 }
 0x6f7   :  { %v1120_v40 = vpop.f32.mrf.mxu0 }
 0x6f8   :  { %1152 = vrot.lane.b32.xlu1 %v1120_v40, %s4138_s26 }
 0x6ff   :  { %v1123_v42 = vpop.f32.mrf.mxu0 }
 0x700   :  { %1154 = vrot.lane.b32.xlu0 %v1123_v42, %s4138_s26 }
 0x702   :  { %v972_v43 = vpop.f32.mrf.mxu3 }
 0x703   :  { %v988_v15 = vmul.f32 %v4452_v8, %v972_v43 }
 0x705   :  { %v1004_v45 = vand.u32 2147483647, %v988_v15  ;;  %v996_v54 = vmax.f32 %v988_v15, 0.0 }
 0x707   :  { %v1012_v19 = vsub.f32 0.0, %v1004_v45  ;;  %v1126_v59 = vpop.f32.mrf.mxu0 }
 0x708   :  { %1156 = vrot.lane.b32.xlu2 %v1126_v59, %s4138_s26 }
 0x709   :  { %v1027_v46 = vmul.f32 1.442695, %v1012_v19  ;;  %v1375_v19 = vld [vmem:[#allocation2 + $0x78] sm:$0xff] }
 0x70a   :  { %1415 = vmatpush.msra.mxu2 %v1375_v19 }
 0x70b   :  { %3965 = vpow2.f32 %v1027_v46  ;;  %v1374_v46 = vld [vmem:[#allocation2 + $0x70] sm:$0xff] }
 0x70c   :  { %1416 = vmatpush.msra.mxu2 %v1374_v46  ;;  %v3851_v46 = vld [vmem:[#allocation2 + $0x104] ss:$0 sm:$0xff] }
 0x710   :  { %3788 = vrot.lane.b32.xlu2 %v4335_v39, %s4143_s30 }
 0x711   :  { %v3966_v47 = vpop.eup %3965 }
 0x712   :  { %v1036_v51 = vadd.f32 1.0, %v3966_v47  ;;  %v1373_v47 = vld [vmem:[#allocation2 + $0x68] sm:$0xff] }
 0x713   :  { %1417 = vmatpush.msra.mxu2 %v1373_v47 }
 0x714   :  { %3967 = vlog2.f32 %v1036_v51  ;;  %v1372_v51 = vld [vmem:[#allocation2 + $0x60] sm:$0xff] }
 0x715   :  { %1418 = vmatpush.msra.mxu2 %v1372_v51 }
 0x71a   :  { %v3968_v52 = vpop.eup %3967 }
 0x71b   :  { %v1052_v18 = vmul.f32 0.6931472, %v3968_v52 }
 0x71d   :  { %v1060_v38 = vadd.f32 %v1052_v18, %v996_v54 }
 0x71f   :  { %v1069_v8 = vmul.f32 %v4461_v56, %v1060_v38 }
 0x721   :  { %3632 = vmatmul.msk.f32.gmra.mxu0 %vm1074_vm14, %v1069_v8 }
 0x748   :  { %v1129_v50 = vpop.f32.mrf.mxu0 }
 0x749   :  { %1158 = vrot.lane.b32.xlu1 %v1129_v50, %s4138_s26 }
 0x750   :  { %v1132_v20 = vpop.f32.mrf.mxu0 }
 0x751   :  { %1160 = vrot.lane.b32.xlu0 %v1132_v20, %s4138_s26  ;;  %v4103_v20 = vld [vmem:[%s5081_s0] sm:$0xff] }
 0x762   :  { %v1157_v55 = vpop.permute.xlu2 %1156 }
 0x763   :  { %v1178_v63 = vmul.f32 %v1157_v55, %v4357_v17 }
 0x768   :  { %v1135_v26 = vpop.f32.mrf.mxu0 }
 0x769   :  { %1162 = vrot.lane.b32.xlu1 %v1135_v26, %s4138_s26 }
 0x76a   :  { %v1153_v39 = vpop.permute.xlu1 %1152  ;;  %v3789_v57 = vpop.permute.xlu2 %3788 }
 0x76b   :  { %v1176_v58 = vmul.f32 %v1153_v39, %v4329_v34  ;;  %v3790_v61 = vunpack.i.l.bf16 %v3789_v57  ;;  %v3791_v62 = vunpack.i.h.bf16 %v3789_v57 }
 0x76d   :  { %1186 = vrot.lane.b32.xlu0 %v1176_v58, %s4139_s27  ;;  %1214 = vmatpush.msrb.mxu1 %v3790_v61 }
 0x76f   :  { %1215 = vmatpush.msrb.mxu1 %v3791_v62 }
 0x770   :  { %v1138_v56 = vpop.f32.mrf.mxu0 }
 0x771   :  { %1164 = vrot.lane.b32.xlu2 %v1138_v56, %s4138_s26  ;;  %v4104_v56 = vld [vmem:[%s5081_s0 + $0x8] sm:$0xff] }
 0x772   :  { %v1155_v22 = vpop.permute.xlu0 %1154 }
 0x773   :  { %v1177_v29 = vmul.f32 %v1155_v22, %v4346_v14 }
 0x775   :  { %3793 = vrot.lane.b32.xlu0 %v4341_v41, %s4143_s30  ;;  %1188 = vrot.lane.b32.xlu1 %v1177_v29, %s4139_s27  ;;  %v3850_v29 = vld [vmem:[#allocation2 + $0x103] ss:$0 sm:$0xff] }
 0x77d   :  { %1225 = vrot.lane.b32.xlu1 %v1178_v63, %s4139_s27 }
 0x79e   :  { %v1141_v34 = vpop.f32.mrf.mxu0 }
 0x79f   :  { %1166 = vrot.lane.b32.xlu2 %v1141_v34, %s4138_s26 }
 0x7a7   :  { %3798 = vrot.lane.b32.xlu2 %v4352_v21, %s4143_s30 }
 0x7af   :  { %3803 = vrot.lane.b32.xlu2 %v4386_v35, %s4143_s30 }
 0x7bb   :  { %v1159_v0 = vpop.permute.xlu1 %1158 }
 0x7bc   :  { %v1179_v14 = vmul.f32 %v1159_v0, %v4368_v31 }
 0x7be   :  { %1227 = vrot.lane.b32.xlu0 %v1179_v14, %s4139_s27 }
 0x7c3   :  { %v1161_v41 = vpop.permute.xlu0 %1160 }
 0x7c4   :  { %v1180_v1 = vmul.f32 %v1161_v41, %v4376_v49 }
 0x7c6   :  { %1264 = vrot.lane.b32.xlu1 %v1180_v1, %s4139_s27 }
 0x7cb   :  { %v1165_v17 = vpop.permute.xlu2 %1164 }
 0x7cc   :  { %v1182_v2 = vmul.f32 %v1165_v17, %v4363_v60 }
 0x7ce   :  { %1303 = vrot.lane.b32.xlu1 %v1182_v2, %s4139_s27 }
 0x7db   :  { %v1163_v5 = vpop.permute.xlu1 %1162 }
 0x7dc   :  { %v1181_v21 = vmul.f32 %v1163_v5, %v4373_v48  ;;  %v4146_v5 = vmov 32.0  }
 0x7dd   :  { %3969 = vrcp.f32 %v4146_v5  ;;  %v1390_v5 = vld [vmem:[#allocation2 + $0xd0] sm:$0xff] }
 0x7de   :  { %1266 = vrot.lane.b32.xlu0 %v1181_v21, %s4139_s27 }
 0x7df   :  { %v1187_v35 = vpop.permute.xlu0 %1186 }
 0x7e0   :  { %3633 = vmatmul.msk.f32.vlgmr.msrb.gmra.mxu1 %vm364_vm5, %v1187_v35 }
 0x7e3   :  { %v3970_v21 = vpop.eup %3969 }
 0x7e4   :  { %v1435_v35 = vmul.f32 32.0, %v3970_v21  ;;  %vm1439_vm10 = vweird.f32 %v3970_v21 }
 0x7e7   :  { %v3794_v31 = vpop.permute.xlu0 %3793  ;;  %v1189_v6 = vpop.permute.xlu1 %1188 }
 0x7e8   :  { %v3795_v33 = vunpack.i.l.bf16 %v3794_v31  ;;  %3634 = vmatmul.msk.f32.gmra.mxu1 %vm364_vm5, %v1189_v6  ;;  %v3796_v49 = vunpack.i.h.bf16 %v3794_v31  ;;  %v1436_v31 = vsub.f32 1.0, %v1435_v35 }
 0x7ea   :  { %1253 = vmatpush.msra.mxu1 %v3795_v33  ;;  %v1437_v6 = vmul.f32 %v3970_v21, %v1436_v31 }
 0x7ec   :  { %1254 = vmatpush.msra.mxu1 %v3796_v49  ;;  %v1438_v33 = vadd.f32 %v3970_v21, %v1437_v6 }
 0x7ee   :  { %v4547_v49 = vsel %vm1439_vm10, %v3970_v21, %v1438_v33  ;;  %v1389_v33 = vld [vmem:[#allocation2 + $0xc8] sm:$0xff] }
 0x7ef   :  { %v1226_v9 = vpop.permute.xlu1 %1225 }
 0x7f0   :  { %3635 = vmatmul.msk.f32.vlgmr.msra.gmra.mxu1 %vm364_vm5, %v1226_v9  ;;  %v1382_v9 = vld [vmem:[#allocation2 + $0x98] sm:$0xff] }
 0x7f1   :  { %1504 = vmatpush.msrb.mxu3 %v1382_v9 }
 0x7f9   :  { %v1167_v60 = vpop.permute.xlu2 %1166 }
 0x7fa   :  { %v1183_v53 = vmul.f32 %v1167_v60, %v4392_v3  ;;  %v1381_v60 = vld [vmem:[#allocation2 + $0x90] sm:$0xff] }
 0x7fb   :  { %1505 = vmatpush.msrb.mxu3 %v1381_v60 }
 0x7fc   :  { %1305 = vrot.lane.b32.xlu0 %v1183_v53, %s4139_s27 }
 0x801   :  { %v3799_v48 = vpop.permute.xlu2 %3798 }
 0x802   :  { %v3800_v10 = vunpack.i.l.bf16 %v3799_v48  ;;  %v3801_v11 = vunpack.i.h.bf16 %v3799_v48 }
 0x804   :  { %1292 = vmatpush.msrb.mxu1 %v3800_v10 }
 0x806   :  { %1293 = vmatpush.msrb.mxu1 %v3801_v11 }
 0x809   :  { %v3804_v16 = vpop.permute.xlu2 %3803 }
 0x80a   :  { %v3805_v23 = vunpack.i.l.bf16 %v3804_v16  ;;  %v3806_v24 = vunpack.i.h.bf16 %v3804_v16 }
 0x80c   :  { %1331 = vmatpush.msra.mxu1 %v3805_v23 }
 0x80e   :  { %1332 = vmatpush.msra.mxu1 %v3806_v24 }
 0x830   :  { %v1228_v25 = vpop.permute.xlu0 %1227 }
 0x831   :  { %3636 = vmatmul.msk.f32.gmra.mxu1 %vm364_vm5, %v1228_v25 }
 0x838   :  { %v1265_v27 = vpop.permute.xlu1 %1264 }
 0x839   :  { %3637 = vmatmul.msk.f32.vlgmr.msrb.gmra.mxu1 %vm364_vm5, %v1265_v27 }
 0x840   :  { %v1304_v3 = vpop.permute.xlu1 %1303 }
 0x850   :  { %v1267_v28 = vpop.permute.xlu0 %1266 }
 0x851   :  { %3638 = vmatmul.msk.f32.gmra.mxu1 %vm364_vm5, %v1267_v28 }
 0x859   :  { %3639 = vmatmul.msk.f32.vlgmr.msra.gmra.mxu1 %vm364_vm5, %v1304_v3  ;;  %v1380_v3 = vld [vmem:[#allocation2 + $0x88] sm:$0xff] }
 0x85a   :  { %1506 = vmatpush.msrb.mxu3 %v1380_v3 }
 0x85d   :  { %v1217_v30 = vpop.f32.mrf.mxu1 }
 0x865   :  { %v1220_v32 = vpop.f32.mrf.mxu1 }
 0x86d   :  { %v1256_v37 = vpop.f32.mrf.mxu1 }
 0x86e   :  { %v1306_v40 = vpop.permute.xlu0 %1305  ;;  %1342 = vrot.lane.b32.xlu2 %v1256_v37, %s4133_s18 }
 0x86f   :  { %3640 = vmatmul.msk.f32.gmra.mxu1 %vm364_vm5, %v1306_v40 }
 0x8ae   :  { %v1259_v42 = vpop.f32.mrf.mxu1 }
 0x8af   :  { %1344 = vrot.lane.b32.xlu2 %v1259_v42, %s4133_s18 }
 0x8b6   :  { %v1295_v43 = vpop.f32.mrf.mxu1 }
 0x8b7   :  { %1350 = vrot.lane.b32.xlu1 %v1295_v43, %s4144_s4 }
 0x8c8   :  { %v1343_v52 = vpop.permute.xlu2 %1342 }
 0x8c9   :  { %v1364_v18 = vsel %vm94_vm1, %v1217_v30, %v1343_v52  ;;  %v1379_v30 = vld [vmem:[#allocation2 + $0x80] sm:$0xff] }
 0x8ca   :  { %1507 = vmatpush.msrb.mxu3 %v1379_v30 }
 0x8ce   :  { %v1298_v15 = vpop.f32.mrf.mxu1 }
 0x8cf   :  { %1352 = vrot.lane.b32.xlu1 %v1298_v15, %s4144_s4 }
 0x8d6   :  { %v1334_v45 = vpop.f32.mrf.mxu1 }
 0x8d7   :  { %1358 = vrot.lane.b32.xlu0 %v1334_v45, %s4145_s5 }
 0x8ec   :  { %v1337_v59 = vpop.f32.mrf.mxu1 }
 0x8ed   :  { %1360 = vrot.lane.b32.xlu0 %v1337_v59, %s4145_s5 }
 0x909   :  { %v1345_v26 = vpop.permute.xlu2 %1344 }
 0x90a   :  { %v1365_v57 = vsel %vm94_vm1, %v1220_v32, %v1345_v26 }
 0x929   :  { %v1351_v54 = vpop.permute.xlu1 %1350 }
 0x92a   :  { %v1366_v38 = vsel %vm364_vm5, %v1364_v18, %v1351_v54  ;;  %v3852_v18 = vld [vmem:[#allocation2 + $0x105] ss:$0 sm:$0xff] }
 0x941   :  { %v1353_v39 = vpop.permute.xlu1 %1352 }
 0x942   :  { %v1367_v58 = vsel %vm364_vm5, %v1365_v57, %v1353_v39 }
 0x949   :  { %v1359_v8 = vpop.permute.xlu0 %1358 }
 0x94a   :  { %v1368_v50 = vsel %vm909_vm8, %v1366_v38, %v1359_v8 }
 0x94b   :  { %v1370_v55 = vadd.f32 %v4103_v20, %v1368_v50 }
 0x94d   :  { %3641 = vmatmul.msk.f32.vlgmr.msra.gmra.mxu2 %vm1396_vm9, %v1370_v55 }
 0x95f   :  { %v1361_v61 = vpop.permute.xlu0 %1360 }
 0x960   :  { %v1369_v62 = vsel %vm909_vm8, %v1367_v58, %v1361_v61 }
 0x961   :  { %v1371_v22 = vadd.f32 %v4104_v56, %v1369_v62 }
 0x963   :  { %3642 = vmatmul.msk.f32.gmra.mxu2 %vm1396_vm9, %v1371_v22 }
 0x9d0   :  { %v1420_v63 = vpop.f32.mrf.mxu2 }
 0x9d1   :  { %v1421_v34 = vadd.f32 %v3850_v29, %v1420_v63 }
 0x9d3   :  { %v1426_v0 = vadd.f32 %v4103_v20, %v1421_v34 }
 0x9d5   :  { %v1428_v14 = vsel %vm1396_vm9, %v1426_v0, 0.0 }
 0x9d6   :  { %1429 = vadd.xlane.f32.xlu2 %v1428_v14 }
 0x9e6   :  { %v1423_v41 = vpop.f32.mrf.mxu2 }
 0x9e7   :  { %v1424_v1 = vadd.f32 %v3850_v29, %v1423_v41  ;;  %v3853_v29 = vld [vmem:[#allocation2 + $0x106] ss:$0 sm:$0xff] }
 0x9e9   :  { %v1427_v17 = vadd.f32 %v4104_v56, %v1424_v1  ;;  %v1391_v1 = vld [vmem:[#allocation2 + $0xd8] sm:$0xff] }
 0x9ea   :  { %1619 = vmatpush.msrb.mxu0 %v1391_v1 }
 0x9eb   :  { %v1431_v2 = vsel %vm1396_vm9, %v1427_v17, 0.0 }
 0x9ec   :  { %1432 = vadd.xlane.f32.xlu1 %v1431_v2  ;;  %1620 = vmatpush.msrb.mxu0 %v1390_v5 }
 0x9ee   :  { %1621 = vmatpush.msrb.mxu0 %v1389_v33 }
 0xa49   :  { %v1430_v53 = vpop.xlane.xlu2 %1429 }
 0xa4a   :  { %v1441_v48 = vmul.f32 %v4547_v49, %v1430_v53  ;;  %v1388_v53 = vld [vmem:[#allocation2 + $0xc0] sm:$0xff] }
 0xa4b   :  { %1622 = vmatpush.msrb.mxu0 %v1388_v53 }
 0xa4c   :  { %v1443_v10 = vsub.f32 %v1426_v0, %v1441_v48 }
 0xa4e   :  { %v1445_v11 = vmul.f32 %v1443_v10, %v1443_v10 }
 0xa50   :  { %v1447_v16 = vsel %vm1396_vm9, %v1445_v11, 0.0 }
 0xa51   :  { %1448 = vadd.xlane.f32.xlu0 %v1447_v16 }
 0xa5f   :  { %v1433_v23 = vpop.xlane.xlu1 %1432 }
 0xa60   :  { %v1442_v24 = vmul.f32 %v4547_v49, %v1433_v23  ;;  %v1386_v23 = vld [vmem:[#allocation2 + $0xb0] sm:$0xff] }
 0xa62   :  { %v1444_v25 = vsub.f32 %v1427_v17, %v1442_v24 }
 0xa64   :  { %v1446_v27 = vmul.f32 %v1444_v25, %v1444_v25 }
 0xa66   :  { %v1450_v28 = vsel %vm1396_vm9, %v1446_v27, 0.0 }
 0xa67   :  { %1451 = vadd.xlane.f32.xlu2 %v1450_v28 }
 0xac4   :  { %v1449_v32 = vpop.xlane.xlu0 %1448 }
 0xac5   :  { %v1453_v37 = vmul.f32 %v1449_v32, %v4547_v49  ;;  %v1384_v32 = vld [vmem:[#allocation2 + $0xa0] sm:$0xff] }
 0xac7   :  { %v1455_v40 = vadd.f32 1e-05, %v1453_v37 }
 0xac9   :  { %3971 = vrsqrt.f32 %v1455_v40  ;;  %vm1463_vm12 = vweird.f32 %v1455_v40 }
 0xacf   :  { %v3972_v42 = vpop.eup %3971 }
 0xad0   :  { %v1458_v43 = vmul.f32 %v3972_v42, %v1455_v40  ;;  %vm1464_vm11 = vweird.f32 %v3972_v42 }
 0xad1   :  { %vm1465_vm13 = vmor %vm1463_vm12, %vm1464_vm11 }
 0xad2   :  { %v1459_v15 = vmul.f32 %v3972_v42, %v1458_v43 }
 0xad4   :  { %v1460_v45 = vmul.f32 0.5, %v1459_v15 }
 0xad6   :  { %v1461_v19 = vsub.f32 1.5, %v1460_v45 }
 0xad8   :  { %v1462_v59 = vmul.f32 %v3972_v42, %v1461_v19 }
 0xada   :  { %v1466_v47 = vsel %vm1465_vm13, %v3972_v42, %v1462_v59  ;;  %v1452_v51 = vpop.xlane.xlu2 %1451  ;;  %vm1604_vm13 = vcmask 523264  }
 0xadb   :  { %v1477_v52 = vmul.f32 %v1466_v47, %v1443_v10  ;;  %v1454_v54 = vmul.f32 %v1452_v51, %v4547_v49  ;;  %v1387_v10 = vld [vmem:[#allocation2 + $0xb8] sm:$0xff] }
 0xadc   :  { %1623 = vmatpush.msrb.mxu0 %v1387_v10 }
 0xadd   :  { %v1480_v38 = vmul.f32 %v3851_v46, %v1477_v52  ;;  %v1456_v8 = vadd.f32 1e-05, %v1454_v54 }
 0xade   :  { %1624 = vmatpush.msrb.mxu0 %v1386_v23 }
 0xadf   :  { %3973 = vrsqrt.f32 %v1456_v8  ;;  %v4555_v50 = vadd.f32 %v3852_v18, %v1480_v38  ;;  %vm1473_vm0 = vweird.f32 %v1456_v8 }
 0xae1   :  { %3643 = vmatmul.msk.f32.vlgmr.msrb.gmra.mxu3 %vm1396_vm9, %v4555_v50 }
 0xae5   :  { %v3974_v20 = vpop.eup %3973 }
 0xae6   :  { %v1468_v55 = vmul.f32 %v3974_v20, %v1456_v8  ;;  %vm1474_vm15 = vweird.f32 %v3974_v20 }
 0xae7   :  { %vm1475_vm6 = vmor %vm1473_vm0, %vm1474_vm15 }
 0xae8   :  { %v1469_v26 = vmul.f32 %v3974_v20, %v1468_v55 }
 0xaea   :  { %v1470_v39 = vmul.f32 0.5, %v1469_v26 }
 0xaec   :  { %v1471_v57 = vsub.f32 1.5, %v1470_v39 }
 0xaee   :  { %v1472_v58 = vmul.f32 %v3974_v20, %v1471_v57 }
 0xaf0   :  { %v1476_v61 = vsel %vm1475_vm6, %v3974_v20, %v1472_v58 }
 0xaf1   :  { %v1478_v62 = vmul.f32 %v1476_v61, %v1444_v25  ;;  %v1385_v25 = vld [vmem:[#allocation2 + $0xa8] sm:$0xff] }
 0xaf2   :  { %1625 = vmatpush.msrb.mxu0 %v1385_v25 }
 0xaf3   :  { %v1481_v56 = vmul.f32 %v3851_v46, %v1478_v62 }
 0xaf4   :  { %1626 = vmatpush.msrb.mxu0 %v1384_v32 }
 0xaf5   :  { %v4559_v22 = vadd.f32 %v3852_v18, %v1481_v56 }
 0xaf7   :  { %3644 = vmatmul.msk.f32.gmra.mxu3 %vm1396_vm9, %v4559_v22 }
 0xb64   :  { %v1509_v63 = vpop.f32.mrf.mxu3 }
 0xb65   :  { %v4563_v34 = vadd.f32 %v3853_v29, %v1509_v63 }
 0xb67   :  { %v4566_v0 = vmul.f32 0.70710677, %v4563_v34  ;;  %v1515_v33 = vmul.f32 0.5, %v4563_v34 }
 0xb69   :  { %v1519_v14 = vmul.f32 %v4566_v0, %v4566_v0 }
 0xb6b   :  { %v1520_v41 = vmin.f32 %v1519_v14, 16.0 }
 0xb6d   :  { %v1521_v17 = vmul.f32 2.1237322e-06, %v1520_v41  ;;  %v1532_v2 = vmul.f32 3.8918573e-05, %v1520_v41 }
 0xb6f   :  { %v1522_v21 = vadd.f32 0.00028619796, %v1521_v17  ;;  %v1533_v35 = vadd.f32 0.001143296, %v1532_v2 }
 0xb71   :  { %v1523_v31 = vmul.f32 %v1522_v21, %v1520_v41  ;;  %v1534_v6 = vmul.f32 %v1533_v35, %v1520_v41 }
 0xb73   :  { %v1524_v9 = vadd.f32 0.0036580483, %v1523_v31  ;;  %v1535_v60 = vadd.f32 0.014752088, %v1534_v6 }
 0xb75   :  { %v1536_v48 = vmul.f32 %v1535_v60, %v1520_v41  ;;  %v1525_v11 = vmul.f32 %v1524_v9, %v1520_v41 }
 0xb77   :  { %v1537_v16 = vadd.f32 0.112945676, %v1536_v48  ;;  %v1526_v28 = vadd.f32 0.05243302, %v1525_v11 }
 0xb79   :  { %v1538_v24 = vmul.f32 %v1537_v16, %v1520_v41  ;;  %v1527_v42 = vmul.f32 %v1526_v28, %v1520_v41 }
 0xb7a   :  { %v1512_v27 = vpop.f32.mrf.mxu3 }
 0xb7b   :  { %v1539_v3 = vadd.f32 0.4994258, %v1538_v24  ;;  %v4570_v30 = vadd.f32 %v3853_v29, %v1512_v27  ;;  %v1528_v19 = vadd.f32 0.18741608, %v1527_v42 }
 0xb7d   :  { %v1540_v37 = vmul.f32 %v1539_v3, %v1520_v41  ;;  %v4573_v40 = vmul.f32 0.70710677, %v4570_v30  ;;  %v1529_v54 = vmul.f32 %v1528_v19, %v1520_v41 }
 0xb7f   :  { %v1541_v43 = vadd.f32 1.0, %v1540_v37  ;;  %v1559_v15 = vmul.f32 %v4573_v40, %v4573_v40  ;;  %v1530_v26 = vadd.f32 1.1283791, %v1529_v54 }
 0xb81   :  { %3975 = vrcp.f32 %v1541_v43  ;;  %v1560_v45 = vmin.f32 %v1559_v15, 16.0  ;;  %v1553_v39 = vand.u32 2147483648, %v1541_v43  ;;  %v1551_v61 = vand.u32 2147483647, %v1541_v43 }
 0xb82   :  { %vm1547_vm10 = vweird.f32 %v1541_v43  ;;  %v1531_v41 = vmul.f32 %v1530_v26, %v4566_v0 }
 0xb83   :  { %v1561_v59 = vmul.f32 2.1237322e-06, %v1560_v45  ;;  %v1572_v46 = vmul.f32 3.8918573e-05, %v1560_v45  ;;  %v1554_v63 = vor.u32 1.1754944e-38, %v1553_v39  ;;  %vm1552_vm12 = vcmp.eq.f32.partialorder %v1551_v61, 8.507059e+37 }
 0xb85   :  { %v1562_v47 = vadd.f32 0.00028619796, %v1561_v59  ;;  %v1573_v51 = vadd.f32 0.001143296, %v1572_v46  ;;  %v3854_v46 = vld [vmem:[#allocation2 + $0x107] ss:$0 sm:$0xff] }
 0xb87   :  { %v3976_v52 = vpop.eup %3975  ;;  %v1563_v38 = vmul.f32 %v1562_v47, %v1560_v45  ;;  %v1574_v8 = vmul.f32 %v1573_v51, %v1560_v45 }
 0xb88   :  { %v1543_v18 = vmul.f32 %v3976_v52, %v1541_v43  ;;  %vm1548_vm7 = vweird.f32 %v3976_v52 }
 0xb89   :  { %v1575_v55 = vadd.f32 0.014752088, %v1574_v8  ;;  %v1564_v57 = vadd.f32 0.0036580483, %v1563_v38  ;;  %vm1549_vm11 = vmor %vm1547_vm10, %vm1548_vm7 }
 0xb8a   :  { %v1544_v20 = vsub.f32 1.0, %v1543_v18 }
 0xb8b   :  { %v1576_v62 = vmul.f32 %v1575_v55, %v1560_v45  ;;  %v1565_v14 = vmul.f32 %v1564_v57, %v1560_v45 }
 0xb8c   :  { %v1545_v58 = vmul.f32 %v3976_v52, %v1544_v20 }
 0xb8d   :  { %v1577_v29 = vadd.f32 0.112945676, %v1576_v62  ;;  %v1566_v35 = vadd.f32 0.05243302, %v1565_v14 }
 0xb8e   :  { %v1546_v56 = vadd.f32 %v3976_v52, %v1545_v58 }
 0xb8f   :  { %v1578_v17 = vmul.f32 %v1577_v29, %v1560_v45  ;;  %v1567_v53 = vmul.f32 %v1566_v35, %v1560_v45  ;;  %v1688_v29 = vld [vmem:[#allocation2 + $0x118] sm:$0xff] }
 0xb90   :  { %v1550_v1 = vsel %vm1549_vm11, %v3976_v52, %v1546_v56  ;;  %v1689_v56 = vld [vmem:[#allocation2 + $0x120] sm:$0xff] }
 0xb91   :  { %v1555_v2 = vsel %vm1552_vm12, %v1554_v63, %v1550_v1  ;;  %v1579_v21 = vadd.f32 0.4994258, %v1578_v17  ;;  %v1568_v0 = vadd.f32 0.18741608, %v1567_v53  ;;  %v1687_v63 = vld [vmem:[#allocation2 + $0x110] sm:$0xff] }
 0xb92   :  { %v1556_v5 = vmul.f32 %v1555_v2, %v1531_v41  ;;  %v3856_v53 = vld [vmem:[#allocation2 + $0x109] ss:$0 sm:$0xff] }
 0xb93   :  { %v1580_v6 = vmul.f32 %v1579_v21, %v1560_v45  ;;  %v1569_v11 = vmul.f32 %v1568_v0, %v1560_v45  ;;  %v1516_v45 = vmul.f32 0.5, %v4570_v30 }
 0xb94   :  { %v3645_v31 = vclamps-f32 %v1556_v5, 1.0 }
 0xb95   :  { %v1581_v60 = vadd.f32 1.0, %v1580_v6  ;;  %v1570_v25 = vadd.f32 1.1283791, %v1569_v11  ;;  %v3855_v6 = vld [vmem:[#allocation2 + $0x108] ss:$0 sm:$0xff] }
 0xb96   :  { %v1599_v9 = vadd.f32 1.0, %v3645_v31 }
 0xb97   :  { %3977 = vrcp.f32 %v1581_v60  ;;  %v1593_v24 = vand.u32 2147483648, %v1581_v60  ;;  %v1591_v28 = vand.u32 2147483647, %v1581_v60  ;;  %vm1587_vm0 = vweird.f32 %v1581_v60 }
 0xb98   :  { %v1601_v48 = vmul.f32 %v1599_v9, %v1515_v33  ;;  %v1571_v32 = vmul.f32 %v1570_v25, %v4573_v40 }
 0xb99   :  { %v1594_v34 = vor.u32 1.1754944e-38, %v1593_v24  ;;  %vm1592_vm7 = vcmp.eq.f32.partialorder %v1591_v28, 8.507059e+37 }
 0xb9a   :  { %3647 = vmatmul.msk.f32.vlgmr.msrb.gmra.mxu0 %vm1604_vm13, %v1601_v48 }
 0xb9d   :  { %v3978_v10 = vpop.eup %3977 }
 0xb9e   :  { %v1583_v16 = vmul.f32 %v3978_v10, %v1581_v60  ;;  %vm1588_vm15 = vweird.f32 %v3978_v10 }
 0xb9f   :  { %vm1589_vm6 = vmor %vm1587_vm0, %vm1588_vm15 }
 0xba0   :  { %v1584_v23 = vsub.f32 1.0, %v1583_v16 }
 0xba2   :  { %v1585_v27 = vmul.f32 %v3978_v10, %v1584_v23 }
 0xba4   :  { %v1586_v3 = vadd.f32 %v3978_v10, %v1585_v27 }
 0xba6   :  { %v1590_v37 = vsel %vm1589_vm6, %v3978_v10, %v1586_v3 }
 0xba7   :  { %v1595_v42 = vsel %vm1592_vm7, %v1594_v34, %v1590_v37 }
 0xba8   :  { %v1596_v43 = vmul.f32 %v1595_v42, %v1571_v32 }
 0xbaa   :  { %v3646_v15 = vclamps-f32 %v1596_v43, 1.0 }
 0xbac   :  { %v1600_v19 = vadd.f32 1.0, %v3646_v15 }
 0xbae   :  { %v1602_v59 = vmul.f32 %v1600_v19, %v1516_v45 }
 0xbb0   :  { %3648 = vmatmul.msk.f32.gmra.mxu0 %vm1604_vm13, %v1602_v59 }
 0xc17   :  { %v1628_v47 = vpop.f32.mrf.mxu0 }
 0xc18   :  { %v1629_v51 = vadd.f32 %v3854_v46, %v1628_v47 }
 0xc1a   :  { %v1634_v52 = vadd.f32 %v1629_v51, %v4555_v50 }
 0xc1c   :  { %v1636_v54 = vsel %vm1396_vm9, %v1634_v52, 0.0 }
 0xc1d   :  { %1637 = vadd.xlane.f32.xlu1 %v1636_v54 }
 0xc2d   :  { %v1631_v40 = vpop.f32.mrf.mxu0 }
 0xc2e   :  { %v1632_v18 = vadd.f32 %v3854_v46, %v1631_v40 }
 0xc30   :  { %v1635_v38 = vadd.f32 %v1632_v18, %v4559_v22  ;;  %v1690_v22 = vld [vmem:[#allocation2 + $0x128] sm:$0xff] }
 0xc31   :  { %1709 = vmatpush.msrb.mxu1 %v1690_v22 }
 0xc32   :  { %v1639_v8 = vsel %vm1396_vm9, %v1635_v38, 0.0 }
 0xc33   :  { %1640 = vadd.xlane.f32.xlu0 %v1639_v8  ;;  %1710 = vmatpush.msrb.mxu1 %v1689_v56 }
 0xc35   :  { %1711 = vmatpush.msrb.mxu1 %v1688_v29 }
 0xc37   :  { %1712 = vmatpush.msrb.mxu1 %v1687_v63 }
 0xc90   :  { %v1638_v30 = vpop.xlane.xlu1 %1637 }
 0xc91   :  { %v1642_v20 = vmul.f32 %v1638_v30, %v4547_v49 }
 0xc93   :  { %v1644_v55 = vsub.f32 %v1634_v52, %v1642_v20 }
 0xc95   :  { %v1646_v26 = vmul.f32 %v1644_v55, %v1644_v55 }
 0xc97   :  { %v1648_v39 = vsel %vm1396_vm9, %v1646_v26, 0.0 }
 0xc98   :  { %1649 = vadd.xlane.f32.xlu2 %v1648_v39 }
 0xca6   :  { %v1641_v57 = vpop.xlane.xlu0 %1640 }
 0xca7   :  { %v1643_v50 = vmul.f32 %v1641_v57, %v4547_v49 }
 0xca9   :  { %v1645_v58 = vsub.f32 %v1635_v38, %v1643_v50 }
 0xcab   :  { %v1647_v61 = vmul.f32 %v1645_v58, %v1645_v58 }
 0xcad   :  { %v1651_v62 = vsel %vm1396_vm9, %v1647_v61, 0.0 }
 0xcae   :  { %1652 = vadd.xlane.f32.xlu1 %v1651_v62 }
 0xd0b   :  { %v1650_v14 = vpop.xlane.xlu2 %1649 }
 0xd0c   :  { %v1654_v41 = vmul.f32 %v1650_v14, %v4547_v49 }
 0xd0e   :  { %v1656_v1 = vadd.f32 1e-05, %v1654_v41 }
 0xd10   :  { %3979 = vrsqrt.f32 %v1656_v1  ;;  %vm1664_vm11 = vweird.f32 %v1656_v1 }
 0xd16   :  { %v3980_v17 = vpop.eup %3979 }
 0xd17   :  { %v1659_v2 = vmul.f32 %v3980_v17, %v1656_v1  ;;  %vm1665_vm10 = vweird.f32 %v3980_v17 }
 0xd18   :  { %vm1666_vm12 = vmor %vm1664_vm11, %vm1665_vm10 }
 0xd19   :  { %v1660_v5 = vmul.f32 %v3980_v17, %v1659_v2 }
 0xd1b   :  { %v1661_v21 = vmul.f32 0.5, %v1660_v5 }
 0xd1d   :  { %v1662_v35 = vsub.f32 1.5, %v1661_v21 }
 0xd1f   :  { %v1663_v31 = vmul.f32 %v3980_v17, %v1662_v35 }
 0xd21   :  { %v1667_v33 = vsel %vm1666_vm12, %v3980_v17, %v1663_v31  ;;  %v1653_v60 = vpop.xlane.xlu1 %1652 }
 0xd22   :  { %v1678_v9 = vmul.f32 %v1667_v33, %v1644_v55  ;;  %v1655_v48 = vmul.f32 %v1653_v60, %v4547_v49 }
 0xd24   :  { %v1681_v0 = vmul.f32 %v3855_v6, %v1678_v9  ;;  %v1657_v10 = vadd.f32 1e-05, %v1655_v48 }
 0xd26   :  { %v4593_v11 = vadd.f32 %v3856_v53, %v1681_v0  ;;  %3981 = vrsqrt.f32 %v1657_v10  ;;  %vm1674_vm0 = vweird.f32 %v1657_v10 }
 0xd28   :  { %3649 = vmatmul.msk.f32.vlgmr.msrb.gmra.mxu1 %vm1396_vm9, %v4593_v11 }
 0xd2c   :  { %v3982_v16 = vpop.eup %3981 }
 0xd2d   :  { %v1669_v23 = vmul.f32 %v3982_v16, %v1657_v10  ;;  %vm1675_vm15 = vweird.f32 %v3982_v16 }
 0xd2e   :  { %vm1676_vm6 = vmor %vm1674_vm0, %vm1675_vm15 }
 0xd2f   :  { %v1670_v24 = vmul.f32 %v3982_v16, %v1669_v23 }
 0xd31   :  { %v1671_v25 = vmul.f32 0.5, %v1670_v24 }
 0xd33   :  { %v1672_v27 = vsub.f32 1.5, %v1671_v25 }
 0xd35   :  { %v1673_v28 = vmul.f32 %v3982_v16, %v1672_v27 }
 0xd37   :  { %v1677_v3 = vsel %vm1676_vm6, %v3982_v16, %v1673_v28 }
 0xd38   :  { %v1679_v34 = vmul.f32 %v1677_v3, %v1645_v58 }
 0xd3a   :  { %v1682_v32 = vmul.f32 %v3855_v6, %v1679_v34 }
 0xd3c   :  { %v4597_v37 = vadd.f32 %v3856_v53, %v1682_v32 }
 0xd3e   :  { %3650 = vmatmul.msk.f32.gmra.mxu1 %vm1396_vm9, %v4597_v37 }
 0xda5   :  { %v4601_v42 = vpop.f32.mrf.mxu1 }
 0xda6   :  { %1722 = vrot.lane.b32.xlu2 %v4601_v42, %s4136_s24 }
 0xdbb   :  { %v4605_v43 = vpop.f32.mrf.mxu1 }
 0xdbc   :  { %1728 = vrot.lane.b32.xlu2 %v4605_v43, %s4135_s23  ;;  %1736 = vrot.lane.b32.xlu1 %v4605_v43, %s4134_s22 }
 0xdbd   :  { %1724 = vrot.lane.b32.xlu0 %v4605_v43, %s4136_s24 }
 0xdc5   :  { %1734 = vrot.lane.b32.xlu0 %v4601_v42, %s4134_s22 }
 0xdcd   :  { %1726 = vrot.lane.b32.xlu0 %v4601_v42, %s4135_s23 }
 0xdd5   :  { %1732 = vrot.lane.b32.xlu0 %v4605_v43, %s4137_s25 }
 0xe00   :  { %v4619_v15 = vpop.permute.xlu2 %1722 }
 0xe01   :  { %1769 = vrot.lane.b32.xlu2 %v4619_v15, %s4134_s22 }
 0xe16   :  { %v4623_v45 = vpop.permute.xlu2 %1728 }
 0xe17   :  { %1806 = vrot.lane.b32.xlu2 %v4623_v45, %s4134_s22 }
 0xe2e   :  { %v1737_v19 = vpop.permute.xlu1 %1736 }
 0xe2f   :  { %v4627_v59 = vpop.permute.xlu0 %1724  ;;  %3651 = vmatpush.xpose.msk.msrb.mxu2 %vm94_vm1, %v1737_v19 }
 0xe30   :  { %1771 = vrot.lane.b32.xlu1 %v4627_v59, %s4134_s22 }
 0xe37   :  { %v1735_v46 = vpop.permute.xlu0 %1734 }
 0xe38   :  { %1730 = vrot.lane.b32.xlu1 %v4601_v42, %s4137_s25  ;;  %3652 = vmatpush.xpose.msk.msrb.mxu2 %vm94_vm1, %v1735_v46 }
 0xe3b   :  { %3653 = vmatmul.msk.f32.vlgmr.msrb.gmra.mxu2 %vm94_vm1, %v4601_v42 }
 0xe3f   :  { %v4637_v47 = vpop.permute.xlu0 %1726 }
 0xe40   :  { %1804 = vrot.lane.b32.xlu0 %v4637_v47, %s4134_s22 }
 0xe43   :  { %3654 = vmatmul.msk.f32.gmra.mxu2 %vm94_vm1, %v4605_v43 }
 0xe47   :  { %v4643_v51 = vpop.permute.xlu0 %1732 }
 0xe48   :  { %1841 = vrot.lane.b32.xlu1 %v4643_v51, %s4134_s22 }
 0xe5b   :  { %v1770_v52 = vpop.permute.xlu2 %1769 }
 0xe71   :  { %v1807_v54 = vpop.permute.xlu2 %1806 }
 0xe72   :  { %3659 = vmatpush.xpose.msk.msra.mxu0 %vm94_vm1, %v1807_v54 }
 0xea2   :  { %v1772_v40 = vpop.permute.xlu1 %1771 }
 0xea3   :  { %3655 = vmatpush.xpose.msk.msra.mxu3 %vm94_vm1, %v1772_v40 }
 0xea7   :  { %3656 = vmatpush.xpose.msk.msra.mxu3 %vm94_vm1, %v1770_v52 }
 0xeaa   :  { %3657 = vmatmul.msk.f32.vlgmr.msra.gmra.mxu3 %vm94_vm1, %v4619_v15  ;;  %v4652_v18 = vpop.permute.xlu1 %1730 }
 0xeab   :  { %1839 = vrot.lane.b32.xlu2 %v4652_v18, %s4134_s22 }
 0xeb2   :  { %3658 = vmatmul.msk.f32.gmra.mxu3 %vm94_vm1, %v4627_v59  ;;  %v1805_v38 = vpop.permute.xlu0 %1804 }
 0xeb3   :  { %3660 = vmatpush.xpose.msk.msra.mxu0 %vm94_vm1, %v1805_v38 }
 0xeb6   :  { %3661 = vmatmul.msk.f32.vlgmr.msra.gmra.mxu0 %vm94_vm1, %v4637_v47 }
 0xeba   :  { %v1842_v8 = vpop.permute.xlu1 %1841 }
 0xebb   :  { %3663 = vmatpush.xpose.msk.msra.mxu1 %vm94_vm1, %v1842_v8 }
 0xebe   :  { %v1763_v30 = vpop.f32.mrf.mxu2  ;;  %3662 = vmatmul.msk.f32.gmra.mxu0 %vm94_vm1, %v4623_v45 }
 0xebf   :  { %v1874_v20 = vmul.f32 0.17677669, %v1763_v30 }
 0xec1   :  { %1890 = vrot.lane.b32.xlu0 %v1874_v20, %s4138_s26 }
 0xec6   :  { %v1766_v55 = vpop.f32.mrf.mxu2 }
 0xec7   :  { %v1875_v26 = vmul.f32 0.17677669, %v1766_v55 }
 0xec9   :  { %1892 = vrot.lane.b32.xlu1 %v1875_v26, %s4138_s26 }
 0xf05   :  { %v1840_v39 = vpop.permute.xlu2 %1839 }
 0xf06   :  { %3664 = vmatpush.xpose.msk.msra.mxu1 %vm94_vm1, %v1840_v39 }
 0xf09   :  { %3665 = vmatmul.msk.f32.vlgmr.msra.gmra.mxu1 %vm94_vm1, %v4652_v18 }
 0xf11   :  { %3666 = vmatmul.msk.f32.gmra.mxu1 %vm94_vm1, %v4643_v51 }
 0xf2d   :  { %v1798_v57 = vpop.f32.mrf.mxu3 }
 0xf2e   :  { %v1876_v50 = vmul.f32 0.17677669, %v1798_v57 }
 0xf30   :  { %1894 = vrot.lane.b32.xlu2 %v1876_v50, %s4138_s26 }
 0xf33   :  { %v1833_v58 = vpop.f32.mrf.mxu0  ;;  %v1891_v62 = vpop.permute.xlu0 %1890 }
 0xf34   :  { %v1878_v61 = vmul.f32 0.17677669, %v1833_v58  ;;  %v1914_v22 = vsel %vm32_vm2, %v1891_v62, -4.2949673e+09 }
 0xf35   :  { %v1922_v56 = vsel %vm283_vm3, %v1914_v22, -inf  ;;  %v1801_v35 = vpop.f32.mrf.mxu3 }
 0xf36   :  { %1898 = vrot.lane.b32.xlu1 %v1878_v61, %s4138_s26  ;;  %v1877_v31 = vmul.f32 0.17677669, %v1801_v35 }
 0xf3b   :  { %v1893_v29 = vpop.permute.xlu1 %1892  ;;  %v1836_v17 = vpop.f32.mrf.mxu0 }
 0xf3c   :  { %v1915_v63 = vsel %vm33_vm4, %v1893_v29, -4.2949673e+09  ;;  %v1879_v5 = vmul.f32 0.17677669, %v1836_v17 }
 0xf3d   :  { %v1925_v14 = vsel %vm283_vm3, %v1915_v63, -inf }
 0xf59   :  { %1923 = vmax.xlane.f32.xlu2 %v1922_v56 }
 0xf60   :  { %1926 = vmax.xlane.f32.xlu1 %v1925_v14 }
 0xf86   :  { %v1868_v41 = vpop.f32.mrf.mxu1 }
 0xf87   :  { %v1880_v1 = vmul.f32 0.17677669, %v1868_v41 }
 0xf89   :  { %1902 = vrot.lane.b32.xlu0 %v1880_v1, %s4138_s26 }
 0xf8a   :  { %v1895_v60 = vpop.permute.xlu2 %1894 }
 0xf8b   :  { %v1916_v53 = vsel %vm32_vm2, %v1895_v60, -4.2949673e+09 }
 0xf8c   :  { %v1928_v48 = vsel %vm283_vm3, %v1916_v53, -inf }
 0xf8e   :  { %v1871_v2 = vpop.f32.mrf.mxu1 }
 0xf8f   :  { %v1881_v21 = vmul.f32 0.17677669, %v1871_v2 }
 0xf91   :  { %1900 = vrot.lane.b32.xlu0 %v1879_v5, %s4138_s26  ;;  %1904 = vrot.lane.b32.xlu2 %v1881_v21, %s4138_s26 }
 0xf99   :  { %1896 = vrot.lane.b32.xlu0 %v1877_v31, %s4138_s26 }
 0xfa8   :  { %v1899_v6 = vpop.permute.xlu1 %1898 }
 0xfa9   :  { %v1918_v33 = vsel %vm32_vm2, %v1899_v6, -4.2949673e+09 }
 0xfaa   :  { %v1934_v9 = vsel %vm283_vm3, %v1918_v33, -inf }
 0xfab   :  { %1935 = vmax.xlane.f32.xlu1 %v1934_v9 }
 0xfc3   :  { %1929 = vmax.xlane.f32.xlu0 %v1928_v48 }
 0xfcc   :  { %v1924_v0 = vpop.xlane.xlu2 %1923 }
 0xfcd   :  { %v1946_v10 = vsub.f32 %v1914_v22, %v1924_v0 }
 0xfcf   :  { %v1954_v16 = vmul.f32 1.442695, %v1946_v10 }
 0xfd1   :  { %3983 = vpow2.f32 %v1954_v16 }
 0xfd3   :  { %v1927_v52 = vpop.xlane.xlu1 %1926 }
 0xfd4   :  { %v1947_v54 = vsub.f32 %v1915_v63, %v1927_v52 }
 0xfd6   :  { %v1956_v8 = vmul.f32 1.442695, %v1947_v54 }
 0xfd7   :  { %v4689_v23 = vpop.eup %3983 }
 0xfd8   :  { %1978 = vrot.lane.b32.xlu2 %v4689_v23, %s4139_s27  ;;  %3985 = vpow2.f32 %v1956_v8 }
 0xfde   :  { %v4705_v30 = vpop.eup %3985 }
 0xfeb   :  { %v1905_v24 = vpop.permute.xlu2 %1904 }
 0xfec   :  { %v1921_v28 = vsel %vm33_vm4, %v1905_v24, -4.2949673e+09  ;;  %v4739_v24 = vpack.i.bf16 %v4601_v42, %v4605_v43 }
 0xfed   :  { %v1943_v34 = vsel %vm283_vm3, %v1921_v28, -inf }
 0xffb   :  { %v1903_v25 = vpop.permute.xlu0 %1902 }
 0xffc   :  { %v1920_v27 = vsel %vm32_vm2, %v1903_v25, -4.2949673e+09 }
 0xffd   :  { %v1940_v3 = vsel %vm283_vm3, %v1920_v27, -inf }
 0xffe   :  { %1941 = vmax.xlane.f32.xlu1 %v1940_v3 }
0x1001   :  { %1944 = vmax.xlane.f32.xlu2 %v1943_v34 }
0x1003   :  { %v1901_v32 = vpop.permute.xlu0 %1900 }
0x1004   :  { %v1919_v19 = vsel %vm33_vm4, %v1901_v32, -4.2949673e+09 }
0x1005   :  { %v1937_v46 = vsel %vm283_vm3, %v1919_v19, -inf }
0x1006   :  { %1938 = vmax.xlane.f32.xlu0 %v1937_v46 }
0x100b   :  { %v1897_v12 = vpop.permute.xlu0 %1896 }
0x100c   :  { %v1917_v40 = vsel %vm33_vm4, %v1897_v12, -4.2949673e+09 }
0x100d   :  { %v1931_v38 = vsel %vm283_vm3, %v1917_v40, -inf }
0x100e   :  { %1932 = vmax.xlane.f32.xlu1 %v1931_v38 }
0x101a   :  { %1980 = vrot.lane.b32.xlu0 %v4705_v30, %s4139_s27 }
0x101e   :  { %v1936_v20 = vpop.xlane.xlu1 %1935 }
0x101f   :  { %v1950_v55 = vsub.f32 %v1918_v33, %v1936_v20  ;;  %v4748_v20 = vpack.i.bf16 %v4619_v15, %v4627_v59 }
0x1021   :  { %v1962_v26 = vmul.f32 1.442695, %v1950_v55 }
0x1023   :  { %3987 = vpow2.f32 %v1962_v26 }
0x1029   :  { %v4709_v39 = vpop.eup %3987 }
0x102a   :  { %1986 = vrot.lane.b32.xlu0 %v4709_v39, %s4139_s27 }
0x1032   :  { %v1979_v61 = vpop.permute.xlu2 %1978 }
0x1033   :  { %v2002_v62 = vsel %vm364_vm5, %v1979_v61, 0.0 }
0x1036   :  { %v1930_v13 = vpop.xlane.xlu0 %1929 }
0x1037   :  { %v1948_v57 = vsub.f32 %v1916_v53, %v1930_v13 }
0x1039   :  { %v1958_v50 = vmul.f32 1.442695, %v1948_v57 }
0x103b   :  { %3989 = vpow2.f32 %v1958_v50 }
0x1041   :  { %v4713_v58 = vpop.eup %3989 }
0x1042   :  { %1982 = vrot.lane.b32.xlu1 %v4713_v58, %s4139_s27 }
0x106c   :  { %2003 = vadd.xlane.f32.xlu1 %v2002_v62 }
0x1071   :  { %v1942_v22 = vpop.xlane.xlu1 %1941 }
0x1072   :  { %v1952_v56 = vsub.f32 %v1920_v27, %v1942_v22 }
0x1074   :  { %v1966_v29 = vmul.f32 1.442695, %v1952_v56  ;;  %v1945_v63 = vpop.xlane.xlu2 %1944 }
0x1075   :  { %v1953_v14 = vsub.f32 %v1921_v28, %v1945_v63 }
0x1076   :  { %3991 = vpow2.f32 %v1966_v29 }
0x1077   :  { %v1968_v41 = vmul.f32 1.442695, %v1953_v14 }
0x1079   :  { %v1939_v1 = vpop.xlane.xlu0 %1938  ;;  %3993 = vpow2.f32 %v1968_v41 }
0x107a   :  { %v1951_v17 = vsub.f32 %v1919_v19, %v1939_v1 }
0x107c   :  { %v4718_v2 = vpop.eup %3991  ;;  %v1964_v5 = vmul.f32 1.442695, %v1951_v17 }
0x107d   :  { %1990 = vrot.lane.b32.xlu2 %v4718_v2, %s4139_s27 }
0x107e   :  { %3995 = vpow2.f32 %v1964_v5 }
0x107f   :  { %v4722_v31 = vpop.eup %3993 }
0x1081   :  { %v1933_v21 = vpop.xlane.xlu1 %1932 }
0x1082   :  { %v1949_v35 = vsub.f32 %v1917_v40, %v1933_v21 }
0x1084   :  { %v4724_v6 = vpop.eup %3995  ;;  %v1960_v33 = vmul.f32 1.442695, %v1949_v35 }
0x1085   :  { %1992 = vrot.lane.b32.xlu1 %v4722_v31, %s4139_s27  ;;  %1988 = vrot.lane.b32.xlu0 %v4724_v6, %s4139_s27 }
0x1086   :  { %3997 = vpow2.f32 %v1960_v33 }
0x108c   :  { %v4730_v9 = vpop.eup %3997  ;;  %v1981_v60 = vpop.permute.xlu0 %1980 }
0x108d   :  { %1984 = vrot.lane.b32.xlu0 %v4730_v9, %s4139_s27  ;;  %v2005_v0 = vsel %vm364_vm5, %v1981_v60, 0.0 }
0x109c   :  { %v1987_v10 = vpop.permute.xlu0 %1986 }
0x109d   :  { %v2014_v16 = vsel %vm364_vm5, %v1987_v10, 0.0 }
0x10b4   :  { %v1983_v53 = vpop.permute.xlu1 %1982 }
0x10b5   :  { %v2008_v48 = vsel %vm364_vm5, %v1983_v53, 0.0 }
0x10b6   :  { %2009 = vadd.xlane.f32.xlu2 %v2008_v48 }
0x10b7   :  { %2006 = vadd.xlane.f32.xlu0 %v2005_v0 }
0x10bf   :  { %2015 = vadd.xlane.f32.xlu0 %v2014_v16 }
0x10ce   :  { %3808 = vrot.lane.b32.xlu2 %v4739_v24, %s4140_s28 }
0x10d7   :  { %v1991_v25 = vpop.permute.xlu2 %1990 }
0x10d8   :  { %v2020_v27 = vsel %vm364_vm5, %v1991_v25, 0.0 }
0x10d9   :  { %2021 = vadd.xlane.f32.xlu0 %v2020_v27 }
0x10df   :  { %v2004_v28 = vpop.xlane.xlu1 %2003 }
0x10e0   :  { %3999 = vrcp.f32 %v2004_v28  ;;  %v2037_v12 = vand.u32 2147483648, %v2004_v28  ;;  %vm2031_vm3 = vweird.f32 %v2004_v28  ;;  %v2035_v40 = vand.u32 2147483647, %v2004_v28 }
0x10e2   :  { %v2038_v8 = vor.u32 1.1754944e-38, %v2037_v12  ;;  %vm2036_vm7 = vcmp.eq.f32.partialorder %v2035_v40, 8.507059e+37 }
0x10e6   :  { %v4000_v32 = vpop.eup %3999 }
0x10e7   :  { %v2027_v19 = vmul.f32 %v4000_v32, %v2004_v28  ;;  %vm2032_vm2 = vweird.f32 %v4000_v32 }
0x10e8   :  { %vm2033_vm4 = vmor %vm2031_vm3, %vm2032_vm2 }
0x10e9   :  { %v2028_v42 = vsub.f32 1.0, %v2027_v19 }
0x10eb   :  { %v2029_v43 = vmul.f32 %v4000_v32, %v2028_v42 }
0x10ed   :  { %v2030_v54 = vadd.f32 %v4000_v32, %v2029_v43 }
0x10ef   :  { %v2034_v38 = vsel %vm2033_vm4, %v4000_v32, %v2030_v54 }
0x10f0   :  { %v2039_v55 = vsel %vm2036_vm7, %v2038_v8, %v2034_v38  ;;  %v4775_v8 = vpack.i.bf16 %v4652_v18, %v4643_v51 }
0x10f1   :  { %v4753_v26 = vmul.f32 %v4689_v23, %v2039_v55 }
0x10f7   :  { %v1989_v3 = vpop.permute.xlu0 %1988  ;;  %v1993_v33 = vpop.permute.xlu1 %1992 }
0x10f8   :  { %v2017_v34 = vsel %vm364_vm5, %v1989_v3, 0.0  ;;  %v2023_v28 = vsel %vm364_vm5, %v1993_v33, 0.0 }
0x10f9   :  { %2018 = vadd.xlane.f32.xlu1 %v2017_v34 }
0x10ff   :  { %v1985_v46 = vpop.permute.xlu0 %1984 }
0x1100   :  { %v2011_v52 = vsel %vm364_vm5, %v1985_v46, 0.0 }
0x1101   :  { %2012 = vadd.xlane.f32.xlu0 %v2011_v52 }
0x1112   :  { %3813 = vrot.lane.b32.xlu1 %v4748_v20, %s4140_s28 }
0x1115   :  { %2148 = vrot.lane.b32.xlu0 %v4753_v26, %s4139_s27 }
0x1129   :  { %v2010_v13 = vpop.xlane.xlu2 %2009 }
0x112a   :  { %4001 = vrcp.f32 %v2010_v13  ;;  %v2007_v57 = vpop.xlane.xlu0 %2006  ;;  %v2067_v0 = vand.u32 2147483648, %v2010_v13  ;;  %vm2061_vm6 = vweird.f32 %v2010_v13  ;;  %v2065_v27 = vand.u32 2147483647, %v2010_v13 }
0x112b   :  { %4003 = vrcp.f32 %v2007_v57  ;;  %v2052_v23 = vand.u32 2147483648, %v2007_v57  ;;  %v2050_v41 = vand.u32 2147483647, %v2007_v57  ;;  %vm2046_vm11 = vweird.f32 %v2007_v57 }
0x112c   :  { %v2068_v46 = vor.u32 1.1754944e-38, %v2067_v0  ;;  %vm2066_vm7 = vcmp.eq.f32.partialorder %v2065_v27, 8.507059e+37 }
0x112d   :  { %v2053_v35 = vor.u32 1.1754944e-38, %v2052_v23  ;;  %vm2051_vm15 = vcmp.eq.f32.partialorder %v2050_v41, 8.507059e+37 }
0x1130   :  { %v4002_v50 = vpop.eup %4001 }
0x1131   :  { %v4004_v61 = vpop.eup %4003  ;;  %v2057_v62 = vmul.f32 %v4002_v50, %v2010_v13  ;;  %v3809_v22 = vpop.permute.xlu2 %3808  ;;  %vm2062_vm0 = vweird.f32 %v4002_v50 }
0x1132   :  { %v2042_v15 = vmul.f32 %v4004_v61, %v2007_v57  ;;  %v3810_v59 = vunpack.i.l.bf16 %v3809_v22  ;;  %v2016_v56 = vpop.xlane.xlu0 %2015  ;;  %v3811_v14 = vunpack.i.h.bf16 %v3809_v22  ;;  %vm2047_vm10 = vweird.f32 %v4004_v61  ;;  %vm2063_vm2 = vmor %vm2061_vm6, %vm2062_vm0 }
0x1133   :  { %v2058_v29 = vsub.f32 1.0, %v2057_v62  ;;  %4005 = vrcp.f32 %v2016_v56  ;;  %vm2048_vm12 = vmor %vm2046_vm11, %vm2047_vm10  ;;  %v2097_v3 = vand.u32 2147483648, %v2016_v56  ;;  %v2095_v19 = vand.u32 2147483647, %v2016_v56 }
0x1134   :  { %v2043_v63 = vsub.f32 1.0, %v2042_v15  ;;  %2176 = vmatpush.msra.mxu2 %v3810_v59  ;;  %vm2091_vm4 = vweird.f32 %v2016_v56 }
0x1135   :  { %v2059_v1 = vmul.f32 %v4002_v50, %v2058_v29  ;;  %v2098_v42 = vor.u32 1.1754944e-38, %v2097_v3  ;;  %vm2096_vm11 = vcmp.eq.f32.partialorder %v2095_v19, 8.507059e+37 }
0x1136   :  { %v2044_v17 = vmul.f32 %v4004_v61, %v2043_v63  ;;  %2177 = vmatpush.msra.mxu2 %v3811_v14 }
0x1137   :  { %v2060_v48 = vadd.f32 %v4002_v50, %v2059_v1 }
0x1138   :  { %v2045_v5 = vadd.f32 %v4004_v61, %v2044_v17 }
0x1139   :  { %v4006_v21 = vpop.eup %4005  ;;  %v2064_v32 = vsel %vm2063_vm2, %v4002_v50, %v2060_v48 }
0x113a   :  { %v2087_v60 = vmul.f32 %v4006_v21, %v2016_v56  ;;  %v2049_v53 = vsel %vm2048_vm12, %v4004_v61, %v2045_v5  ;;  %vm2092_vm3 = vweird.f32 %v4006_v21 }
0x113b   :  { %v2054_v10 = vsel %vm2051_vm15, %v2053_v35, %v2049_v53  ;;  %vm2093_vm10 = vmor %vm2091_vm4, %vm2092_vm3 }
0x113c   :  { %v2088_v16 = vsub.f32 1.0, %v2087_v60  ;;  %v4758_v25 = vmul.f32 %v4705_v30, %v2054_v10  ;;  %v2069_v30 = vsel %vm2066_vm7, %v2068_v46, %v2064_v32 }
0x113d   :  { %v4764_v12 = vmul.f32 %v4713_v58, %v2069_v30 }
0x113e   :  { %v2089_v34 = vmul.f32 %v4006_v21, %v2088_v16  ;;  %2150 = vrot.lane.b32.xlu2 %v4758_v25, %s4139_s27 }
0x113f   :  { %2024 = vadd.xlane.f32.xlu0 %v2023_v28 }
0x1140   :  { %v2090_v52 = vadd.f32 %v4006_v21, %v2089_v34  ;;  %v4792_v34 = vpack.i.bf16 %v4637_v47, %v4623_v45 }
0x1142   :  { %v2094_v43 = vsel %vm2093_vm10, %v4006_v21, %v2090_v52 }
0x1143   :  { %v2099_v54 = vsel %vm2096_vm11, %v2098_v42, %v2094_v43 }
0x1144   :  { %v4767_v40 = vmul.f32 %v4709_v39, %v2099_v54 }
0x1146   :  { %2187 = vrot.lane.b32.xlu2 %v4764_v12, %s4139_s27  ;;  %2226 = vrot.lane.b32.xlu1 %v4767_v40, %s4139_s27 }
0x114c   :  { %v2022_v38 = vpop.xlane.xlu0 %2021 }
0x114d   :  { %4007 = vrcp.f32 %v2022_v38  ;;  %v2127_v39 = vand.u32 2147483648, %v2022_v38  ;;  %v2125_v50 = vand.u32 2147483647, %v2022_v38  ;;  %vm2121_vm15 = vweird.f32 %v2022_v38 }
0x114e   :  { %3823 = vrot.lane.b32.xlu1 %v4775_v8, %s4140_s28 }
0x114f   :  { %v2128_v62 = vor.u32 1.1754944e-38, %v2127_v39  ;;  %vm2126_vm6 = vcmp.eq.f32.partialorder %v2125_v50, 8.507059e+37 }
0x1153   :  { %v4008_v58 = vpop.eup %4007 }
0x1154   :  { %v2117_v55 = vmul.f32 %v4008_v58, %v2022_v38  ;;  %vm2122_vm12 = vweird.f32 %v4008_v58 }
0x1155   :  { %vm2123_vm0 = vmor %vm2121_vm15, %vm2122_vm12 }
0x1156   :  { %v2118_v13 = vsub.f32 1.0, %v2117_v55 }
0x1158   :  { %v2119_v57 = vmul.f32 %v4008_v58, %v2118_v13 }
0x115a   :  { %v2120_v61 = vadd.f32 %v4008_v58, %v2119_v57 }
0x115c   :  { %v2124_v22 = vsel %vm2123_vm0, %v4008_v58, %v2120_v61 }
0x115d   :  { %v2129_v15 = vsel %vm2126_vm6, %v2128_v62, %v2124_v22 }
0x115e   :  { %v4780_v51 = vmul.f32 %v4718_v2, %v2129_v15 }
0x1160   :  { %2265 = vrot.lane.b32.xlu0 %v4780_v51, %s4139_s27 }
0x116c   :  { %v2019_v18 = vpop.xlane.xlu1 %2018 }
0x116d   :  { %v2112_v28 = vand.u32 2147483648, %v2019_v18  ;;  %vm2106_vm11 = vweird.f32 %v2019_v18  ;;  %v2110_v3 = vand.u32 2147483647, %v2019_v18 }
0x116f   :  { %v2113_v32 = vor.u32 1.1754944e-38, %v2112_v28  ;;  %vm2111_vm15 = vcmp.eq.f32.partialorder %v2110_v3, 8.507059e+37 }
0x1174   :  { %v2013_v59 = vpop.xlane.xlu0 %2012 }
0x1175   :  { %4009 = vrcp.f32 %v2013_v59  ;;  %v2082_v23 = vand.u32 2147483648, %v2013_v59  ;;  %v2080_v17 = vand.u32 2147483647, %v2013_v59  ;;  %vm2076_vm3 = vweird.f32 %v2013_v59 }
0x1176   :  { %4011 = vrcp.f32 %v2019_v18 }
0x1177   :  { %v2083_v2 = vor.u32 1.1754944e-38, %v2082_v23  ;;  %vm2081_vm7 = vcmp.eq.f32.partialorder %v2080_v17, 8.507059e+37 }
0x117b   :  { %v4010_v56 = vpop.eup %4009 }
0x117c   :  { %v2072_v29 = vmul.f32 %v4010_v56, %v2013_v59  ;;  %v4012_v63 = vpop.eup %4011  ;;  %vm2077_vm2 = vweird.f32 %v4010_v56 }
0x117d   :  { %v2102_v41 = vmul.f32 %v4012_v63, %v2019_v18  ;;  %vm2078_vm4 = vmor %vm2076_vm3, %vm2077_vm2  ;;  %vm2107_vm10 = vweird.f32 %v4012_v63 }
0x117e   :  { %v2073_v14 = vsub.f32 1.0, %v2072_v29  ;;  %vm2108_vm12 = vmor %vm2106_vm11, %vm2107_vm10  ;;  %v2302_v29 = vld [vmem:[#allocation2 + $0x1f0] sm:$0xff] }
0x117f   :  { %v2103_v21 = vsub.f32 1.0, %v2102_v41  ;;  %2351 = vmatpush.msrb.mxu2 %v2302_v29 }
0x1180   :  { %v2074_v1 = vmul.f32 %v4010_v56, %v2073_v14 }
0x1181   :  { %v2104_v16 = vmul.f32 %v4012_v63, %v2103_v21  ;;  %v2305_v21 = vld [vmem:[#allocation2 + $0x208] sm:$0xff] }
0x1182   :  { %v2075_v5 = vadd.f32 %v4010_v56, %v2074_v1 }
0x1183   :  { %v2105_v27 = vadd.f32 %v4012_v63, %v2104_v16 }
0x1184   :  { %v3814_v35 = vpop.permute.xlu1 %3813  ;;  %v2079_v33 = vsel %vm2078_vm4, %v4010_v56, %v2075_v5 }
0x1185   :  { %v3815_v60 = vunpack.i.l.bf16 %v3814_v35  ;;  %v2084_v53 = vsel %vm2081_vm7, %v2083_v2, %v2079_v33  ;;  %v3816_v0 = vunpack.i.h.bf16 %v3814_v35  ;;  %v3848_v2 = vld [vmem:[#allocation2 + $0x210] ss:$0 sm:$0xff]  ;;  %v2304_v35 = vld [vmem:[#allocation2 + $0x200] sm:$0xff] }
0x1186   :  { %v4785_v48 = vmul.f32 %v4730_v9, %v2084_v53  ;;  %v2109_v9 = vsel %vm2108_vm12, %v4012_v63, %v2105_v27  ;;  %v4825_v33 = vmul.f32 %v3848_v2, %v4412_v36 }
0x1187   :  { %2215 = vmatpush.msrb.mxu3 %v3815_v60  ;;  %v2149_v10 = vpop.permute.xlu0 %2148  ;;  %v2114_v19 = vsel %vm2111_vm15, %v2113_v32, %v2109_v9  ;;  %v4827_v60 = vld [vmem:[#allocation2 + $0x211] ss:$0 sm:$0xff]  ;;  %v4832_v32 = vmul.f32 %v3848_v2, %v4420_v44 }
0x1188   :  { %2189 = vrot.lane.b32.xlu2 %v4785_v48, %s4139_s27  ;;  %3667 = vmatmul.msk.f32.vlgmr.msra.gmra.mxu2 %vm364_vm5, %v2149_v10  ;;  %v4797_v46 = vmul.f32 %v4724_v6, %v2114_v19 }
0x1189   :  { %2216 = vmatpush.msrb.mxu3 %v3816_v0  ;;  %v2303_v0 = vld [vmem:[#allocation2 + $0x1f8] sm:$0xff] }
0x118b   :  { %2575 = vmatpush.msra.mxu3 %v2305_v21 }
0x118d   :  { %2576 = vmatpush.msra.mxu3 %v2304_v35 }
0x118f   :  { %2577 = vmatpush.msra.mxu3 %v2303_v0 }
0x1190   :  { %3818 = vrot.lane.b32.xlu2 %v4792_v34, %s4140_s28 }
0x1198   :  { %v2151_v52 = vpop.permute.xlu2 %2150  ;;  %2228 = vrot.lane.b32.xlu2 %v4797_v46, %s4139_s27 }
0x1199   :  { %3668 = vmatmul.msk.f32.gmra.mxu2 %vm364_vm5, %v2151_v52 }
0x11a0   :  { %v2188_v42 = vpop.permute.xlu2 %2187 }
0x11a1   :  { %3669 = vmatmul.msk.f32.vlgmr.msrb.gmra.mxu3 %vm364_vm5, %v2188_v42 }
0x11b2   :  { %v2025_v45 = vpop.xlane.xlu0 %2024 }
0x11b3   :  { %4013 = vrcp.f32 %v2025_v45  ;;  %v2142_v38 = vand.u32 2147483648, %v2025_v45  ;;  %v2140_v6 = vand.u32 2147483647, %v2025_v45  ;;  %vm2136_vm6 = vweird.f32 %v2025_v45 }
0x11b5   :  { %v2143_v39 = vor.u32 1.1754944e-38, %v2142_v38  ;;  %vm2141_vm3 = vcmp.eq.f32.partialorder %v2140_v6, 8.507059e+37 }
0x11b8   :  { %v2227_v47 = vpop.permute.xlu1 %2226 }
0x11b9   :  { %v4014_v30 = vpop.eup %4013 }
0x11ba   :  { %v2132_v43 = vmul.f32 %v4014_v30, %v2025_v45  ;;  %vm2137_vm0 = vweird.f32 %v4014_v30 }
0x11bb   :  { %vm2138_vm2 = vmor %vm2136_vm6, %vm2137_vm0 }
0x11bc   :  { %v2133_v54 = vsub.f32 1.0, %v2132_v43 }
0x11be   :  { %v2134_v58 = vmul.f32 %v4014_v30, %v2133_v54 }
0x11c0   :  { %v2135_v55 = vadd.f32 %v4014_v30, %v2134_v58  ;;  %v3824_v13 = vpop.permute.xlu1 %3823 }
0x11c1   :  { %v3825_v57 = vunpack.i.l.bf16 %v3824_v13  ;;  %v3826_v61 = vunpack.i.h.bf16 %v3824_v13 }
0x11c2   :  { %v2139_v50 = vsel %vm2138_vm2, %v4014_v30, %v2135_v55 }
0x11c3   :  { %2293 = vmatpush.msrb.mxu1 %v3825_v57  ;;  %v2144_v62 = vsel %vm2141_vm3, %v2143_v39, %v2139_v50 }
0x11c4   :  { %v4804_v22 = vmul.f32 %v4722_v31, %v2144_v62 }
0x11c5   :  { %2294 = vmatpush.msrb.mxu1 %v3826_v61 }
0x11c6   :  { %2267 = vrot.lane.b32.xlu2 %v4804_v22, %s4139_s27 }
0x11d2   :  { %v2266_v15 = vpop.permute.xlu0 %2265 }
0x11d3   :  { %3673 = vmatmul.msk.f32.vlgmr.msrb.gmra.mxu1 %vm364_vm5, %v2266_v15 }
0x11e2   :  { %v2190_v18 = vpop.permute.xlu2 %2189 }
0x11e3   :  { %3670 = vmatmul.msk.f32.gmra.mxu3 %vm364_vm5, %v2190_v18 }
0x11ea   :  { %v3819_v59 = vpop.permute.xlu2 %3818 }
0x11eb   :  { %v3820_v56 = vunpack.i.l.bf16 %v3819_v59  ;;  %v3821_v63 = vunpack.i.h.bf16 %v3819_v59 }
0x11ed   :  { %2254 = vmatpush.msrb.mxu0 %v3820_v56 }
0x11ef   :  { %2255 = vmatpush.msrb.mxu0 %v3821_v63 }
0x11f0   :  { %3671 = vmatmul.msk.f32.vlgmr.msrb.gmra.mxu0 %vm364_vm5, %v2227_v47 }
0x11f1   :  { %3699 = vmatpush.xpose.msk.msra.mxu0 %vm1074_vm14, %v4445_v4 }
0x11f2   :  { %v2229_v31 = vpop.permute.xlu2 %2228 }
0x11f5   :  { %3700 = vmatpush.xpose.msk.msra.mxu0 %vm1074_vm14, %v4450_v7 }
0x11f8   :  { %3672 = vmatmul.msk.f32.gmra.mxu0 %vm364_vm5, %v2229_v31 }
0x120b   :  { %v2179_v14 = vpop.f32.mrf.mxu2 }
0x120c   :  { %3675 = vmatmul.msk.f32.vlgmr.msrb.gmra.mxu2 %vm94_vm1, %v2179_v14 }
0x121c   :  { %v2182_v23 = vpop.f32.mrf.mxu2 }
0x121d   :  { %3676 = vmatmul.msk.f32.gmra.mxu2 %vm94_vm1, %v2182_v23 }
0x1220   :  { %v2268_v41 = vpop.permute.xlu2 %2267 }
0x1221   :  { %3674 = vmatmul.msk.f32.gmra.mxu1 %vm364_vm5, %v2268_v41 }
0x1224   :  { %v2218_v1 = vpop.f32.mrf.mxu3 }
0x1225   :  { %3677 = vmatmul.msk.f32.gmra.mxu2 %vm94_vm1, %v2218_v1 }
0x1250   :  { %v2296_v5 = vpop.f32.mrf.mxu1 }
0x1266   :  { %v2221_v17 = vpop.f32.mrf.mxu3 }
0x1267   :  { %3678 = vmatmul.msk.f32.gmra.mxu2 %vm94_vm1, %v2221_v17 }
0x126d   :  { %v2257_v4 = vpop.f32.mrf.mxu0 }
0x126f   :  { %3679 = vmatmul.msk.f32.gmra.mxu2 %vm94_vm1, %v2257_v4 }
0x1275   :  { %v2260_v7 = vpop.f32.mrf.mxu0 }
0x1277   :  { %3680 = vmatmul.msk.f32.gmra.mxu2 %vm94_vm1, %v2260_v7 }
0x127f   :  { %3681 = vmatmul.msk.f32.gmra.mxu2 %vm94_vm1, %v2296_v5 }
0x128f   :  { %v2353_v53 = vpop.f32.mrf.mxu2 }
0x1290   :  { %v2354_v10 = vadd.f32 %v2353_v53, %v4825_v33 }
0x1292   :  { %v2378_v16 = vadd.f32 %v4827_v60, %v2354_v10 }
0x1294   :  { %v3683_v27 = vmul.f32 -1.442695, %v2378_v16 }
0x1296   :  { %4015 = vpow2.f32 %v3683_v27 }
0x129c   :  { %v4016_v28 = vpop.eup %4015 }
0x129d   :  { %v2410_v3 = vadd.f32 1.0, %v4016_v28 }
0x129e   :  { %v2299_v9 = vpop.f32.mrf.mxu1 }
0x129f   :  { %4017 = vrcp.f32 %v2410_v3  ;;  %3682 = vmatmul.msk.f32.gmra.mxu2 %vm94_vm1, %v2299_v9  ;;  %v2429_v38 = vand.u32 2147483648, %v2410_v3  ;;  %v2427_v44 = vand.u32 2147483647, %v2410_v3  ;;  %vm2423_vm7 = vweird.f32 %v2410_v3 }
0x12a0   :  { %v2356_v36 = vpop.f32.mrf.mxu2 }
0x12a1   :  { %v2357_v19 = vadd.f32 %v2356_v36, %v4832_v32  ;;  %v2430_v57 = vor.u32 1.1754944e-38, %v2429_v38  ;;  %vm2428_vm11 = vcmp.eq.f32.partialorder %v2427_v44, 8.507059e+37 }
0x12a3   :  { %v2379_v52 = vadd.f32 %v4827_v60, %v2357_v19 }
0x12a5   :  { %v4018_v42 = vpop.eup %4017  ;;  %v3684_v45 = vmul.f32 -1.442695, %v2379_v52 }
0x12a6   :  { %v2419_v47 = vmul.f32 %v4018_v42, %v2410_v3  ;;  %vm2424_vm4 = vweird.f32 %v4018_v42 }
0x12a7   :  { %4019 = vpow2.f32 %v3684_v45  ;;  %vm2425_vm10 = vmor %vm2423_vm7, %vm2424_vm4 }
0x12a8   :  { %v2359_v30 = vpop.f32.mrf.mxu2  ;;  %v2420_v43 = vsub.f32 1.0, %v2419_v47 }
0x12a9   :  { %v2360_v54 = vadd.f32 %v2359_v30, %v4825_v33 }
0x12aa   :  { %v2421_v58 = vmul.f32 %v4018_v42, %v2420_v43 }
0x12ab   :  { %v2380_v6 = vadd.f32 %v4827_v60, %v2360_v54 }
0x12ac   :  { %v2422_v55 = vadd.f32 %v4018_v42, %v2421_v58 }
0x12ad   :  { %v4020_v13 = vpop.eup %4019  ;;  %v3685_v39 = vmul.f32 -1.442695, %v2380_v6 }
0x12ae   :  { %v2411_v50 = vadd.f32 1.0, %v4020_v13  ;;  %v2426_v61 = vsel %vm2425_vm10, %v4018_v42, %v2422_v55 }
0x12af   :  { %4021 = vpow2.f32 %v3685_v39  ;;  %v2431_v62 = vsel %vm2428_vm11, %v2430_v57, %v2426_v61 }
0x12b0   :  { %4023 = vrcp.f32 %v2411_v50  ;;  %3691 = vmatmul.msk.f32.vlgmr.msra.gmra.mxu3 %vm909_vm8, %v2431_v62  ;;  %v2444_v63 = vand.u32 2147483648, %v2411_v50  ;;  %v2442_v14 = vand.u32 2147483647, %v2411_v50  ;;  %vm2438_vm15 = vweird.f32 %v2411_v50 }
0x12b2   :  { %v2445_v1 = vor.u32 1.1754944e-38, %v2444_v63  ;;  %vm2443_vm6 = vcmp.eq.f32.partialorder %v2442_v14, 8.507059e+37 }
0x12b5   :  { %v4022_v15 = vpop.eup %4021 }
0x12b6   :  { %v4024_v18 = vpop.eup %4023  ;;  %v2412_v59 = vadd.f32 1.0, %v4022_v15 }
0x12b7   :  { %v2434_v56 = vmul.f32 %v4024_v18, %v2411_v50  ;;  %vm2439_vm12 = vweird.f32 %v4024_v18 }
0x12b8   :  { %4025 = vrcp.f32 %v2412_v59  ;;  %vm2440_vm0 = vmor %vm2438_vm15, %vm2439_vm12  ;;  %v2459_v2 = vand.u32 2147483648, %v2412_v59  ;;  %v2457_v35 = vand.u32 2147483647, %v2412_v59  ;;  %vm2453_vm3 = vweird.f32 %v2412_v59 }
0x12b9   :  { %v2435_v29 = vsub.f32 1.0, %v2434_v56 }
0x12ba   :  { %v2460_v0 = vor.u32 1.1754944e-38, %v2459_v2  ;;  %vm2458_vm7 = vcmp.eq.f32.partialorder %v2457_v35, 8.507059e+37 }
0x12bb   :  { %v2436_v31 = vmul.f32 %v4024_v18, %v2435_v29 }
0x12bd   :  { %v2437_v23 = vadd.f32 %v4024_v18, %v2436_v31 }
0x12be   :  { %v4026_v41 = vpop.eup %4025 }
0x12bf   :  { %v2441_v17 = vsel %vm2440_vm0, %v4024_v18, %v2437_v23  ;;  %v2449_v4 = vmul.f32 %v4026_v41, %v2412_v59  ;;  %vm2454_vm2 = vweird.f32 %v4026_v41 }
0x12c0   :  { %v2446_v7 = vsel %vm2443_vm6, %v2445_v1, %v2441_v17  ;;  %vm2455_vm4 = vmor %vm2453_vm3, %vm2454_vm2 }
0x12c1   :  { %3692 = vmatmul.msk.f32.gmra.mxu3 %vm909_vm8, %v2446_v7  ;;  %v2450_v5 = vsub.f32 1.0, %v2449_v4 }
0x12c3   :  { %v2451_v21 = vmul.f32 %v4026_v41, %v2450_v5 }
0x12c5   :  { %v2452_v53 = vadd.f32 %v4026_v41, %v2451_v21 }
0x12c7   :  { %v2456_v10 = vsel %vm2455_vm4, %v4026_v41, %v2452_v53 }
0x12c8   :  { %v2461_v16 = vsel %vm2458_vm7, %v2460_v0, %v2456_v10 }
0x12c9   :  { %3693 = vmatmul.msk.f32.gmra.mxu3 %vm909_vm8, %v2461_v16 }
0x12ea   :  { %v2362_v27 = vpop.f32.mrf.mxu2 }
0x12eb   :  { %v2363_v28 = vadd.f32 %v2362_v27, %v4832_v32 }
0x12ed   :  { %v2381_v3 = vadd.f32 %v4827_v60, %v2363_v28 }
0x12ef   :  { %v3686_v9 = vmul.f32 -1.442695, %v2381_v3 }
0x12f1   :  { %4027 = vpow2.f32 %v3686_v9 }
0x12f2   :  { %v2365_v36 = vpop.f32.mrf.mxu2 }
0x12f3   :  { %v2366_v19 = vadd.f32 %v2365_v36, %v4825_v33 }
0x12f5   :  { %v2382_v52 = vadd.f32 %v4827_v60, %v2366_v19 }
0x12f7   :  { %v4028_v42 = vpop.eup %4027  ;;  %v3687_v45 = vmul.f32 -1.442695, %v2382_v52 }
0x12f8   :  { %v2413_v47 = vadd.f32 1.0, %v4028_v42 }
0x12f9   :  { %4029 = vpow2.f32 %v3687_v45 }
0x12fa   :  { %4031 = vrcp.f32 %v2413_v47  ;;  %v2368_v30 = vpop.f32.mrf.mxu2  ;;  %v2474_v50 = vand.u32 2147483648, %v2413_v47  ;;  %v2472_v15 = vand.u32 2147483647, %v2413_v47  ;;  %vm2468_vm11 = vweird.f32 %v2413_v47 }
0x12fb   :  { %v2369_v43 = vadd.f32 %v2368_v30, %v4832_v32 }
0x12fc   :  { %v2475_v31 = vor.u32 1.1754944e-38, %v2474_v50  ;;  %vm2473_vm15 = vcmp.eq.f32.partialorder %v2472_v15, 8.507059e+37 }
0x12fd   :  { %v2383_v54 = vadd.f32 %v4827_v60, %v2369_v43  ;;  %v2308_v43 = vld [vmem:[#allocation2 + $0x212] sm:$0x1] }
0x12ff   :  { %v4030_v38 = vpop.eup %4029  ;;  %v3688_v58 = vmul.f32 -1.442695, %v2383_v54 }
0x1300   :  { %v4032_v44 = vpop.eup %4031  ;;  %v2414_v6 = vadd.f32 1.0, %v4030_v38 }
0x1301   :  { %4033 = vpow2.f32 %v3688_v58  ;;  %v2464_v55 = vmul.f32 %v4032_v44, %v2413_v47  ;;  %vm2469_vm10 = vweird.f32 %v4032_v44 }
0x1302   :  { %4035 = vrcp.f32 %v2414_v6  ;;  %v2371_v13 = vpop.f32.mrf.mxu2  ;;  %vm2470_vm12 = vmor %vm2468_vm11, %vm2469_vm10  ;;  %v2489_v1 = vand.u32 2147483648, %v2414_v6  ;;  %v2487_v4 = vand.u32 2147483647, %v2414_v6  ;;  %vm2483_vm6 = vweird.f32 %v2414_v6 }
0x1303   :  { %v2372_v39 = vadd.f32 %v2371_v13, %v4825_v33  ;;  %v2465_v57 = vsub.f32 1.0, %v2464_v55 }
0x1304   :  { %v2490_v35 = vor.u32 1.1754944e-38, %v2489_v1  ;;  %vm2488_vm3 = vcmp.eq.f32.partialorder %v2487_v4, 8.507059e+37  ;;  %v2603_v4 = vmul.f32 1.442695, %v2308_v43 }
0x1305   :  { %v2384_v61 = vadd.f32 %v4827_v60, %v2372_v39  ;;  %v2466_v62 = vmul.f32 %v4032_v44, %v2465_v57 }
0x1307   :  { %v4034_v18 = vpop.eup %4033  ;;  %v3689_v59 = vmul.f32 -1.442695, %v2384_v61  ;;  %v2467_v56 = vadd.f32 %v4032_v44, %v2466_v62 }
0x1308   :  { %v4036_v29 = vpop.eup %4035  ;;  %v2415_v63 = vadd.f32 1.0, %v4034_v18 }
0x1309   :  { %4037 = vpow2.f32 %v3689_v59  ;;  %v2471_v14 = vsel %vm2470_vm12, %v4032_v44, %v2467_v56  ;;  %v2479_v23 = vmul.f32 %v4036_v29, %v2414_v6  ;;  %vm2484_vm0 = vweird.f32 %v4036_v29 }
0x130a   :  { %4039 = vrcp.f32 %v2415_v63  ;;  %v2476_v33 = vsel %vm2473_vm15, %v2475_v31, %v2471_v14  ;;  %vm2485_vm2 = vmor %vm2483_vm6, %vm2484_vm0  ;;  %v2504_v27 = vand.u32 2147483648, %v2415_v63  ;;  %v2502_v3 = vand.u32 2147483647, %v2415_v63 }
0x130b   :  { %3694 = vmatmul.msk.f32.gmra.mxu3 %vm909_vm8, %v2476_v33  ;;  %v2480_v41 = vsub.f32 1.0, %v2479_v23  ;;  %vm2498_vm7 = vweird.f32 %v2415_v63  ;;  %v2605_v44 = vsub.f32 0.0, %v2308_v43 }
0x130c   :  { %v2505_v19 = vor.u32 1.1754944e-38, %v2504_v27  ;;  %vm2503_vm11 = vcmp.eq.f32.partialorder %v2502_v3, 8.507059e+37 }
0x130d   :  { %v2481_v17 = vmul.f32 %v4036_v29, %v2480_v41  ;;  %v2606_v50 = vmul.f32 1.442695, %v2605_v44 }
0x130f   :  { %v4038_v7 = vpop.eup %4037  ;;  %v2482_v5 = vadd.f32 %v4036_v29, %v2481_v17 }
0x1310   :  { %v4040_v2 = vpop.eup %4039  ;;  %v2416_v21 = vadd.f32 1.0, %v4038_v7 }
0x1311   :  { %v2486_v53 = vsel %vm2485_vm2, %v4036_v29, %v2482_v5  ;;  %v2494_v0 = vmul.f32 %v4040_v2, %v2415_v63  ;;  %vm2499_vm4 = vweird.f32 %v4040_v2 }
0x1312   :  { %4041 = vrcp.f32 %v2416_v21  ;;  %v2491_v10 = vsel %vm2488_vm3, %v2490_v35, %v2486_v53  ;;  %vm2500_vm10 = vmor %vm2498_vm7, %vm2499_vm4  ;;  %v2519_v30 = vand.u32 2147483648, %v2416_v21  ;;  %v2517_v38 = vand.u32 2147483647, %v2416_v21 }
0x1313   :  { %3695 = vmatmul.msk.f32.gmra.mxu3 %vm909_vm8, %v2491_v10  ;;  %v2495_v16 = vsub.f32 1.0, %v2494_v0  ;;  %vm2513_vm15 = vweird.f32 %v2416_v21  ;;  %4043 = vpow2.f32 %v2606_v50 }
0x1314   :  { %v2520_v6 = vor.u32 1.1754944e-38, %v2519_v30  ;;  %vm2518_vm6 = vcmp.eq.f32.partialorder %v2517_v38, 8.507059e+37 }
0x1315   :  { %v2496_v28 = vmul.f32 %v4040_v2, %v2495_v16 }
0x1317   :  { %v2497_v9 = vadd.f32 %v4040_v2, %v2496_v28 }
0x1318   :  { %v4042_v36 = vpop.eup %4041 }
0x1319   :  { %v2501_v52 = vsel %vm2500_vm10, %v4040_v2, %v2497_v9  ;;  %v2509_v42 = vmul.f32 %v4042_v36, %v2416_v21  ;;  %vm2514_vm12 = vweird.f32 %v4042_v36  ;;  %v4044_v15 = vpop.eup %4043 }
0x131a   :  { %v2506_v45 = vsel %vm2503_vm11, %v2505_v19, %v2501_v52  ;;  %vm2515_vm0 = vmor %vm2513_vm15, %vm2514_vm12  ;;  %v4856_v56 = vperm.slane %v4044_v15, 0 }
0x131b   :  { %3696 = vmatmul.msk.f32.gmra.mxu3 %vm909_vm8, %v2506_v45  ;;  %v2510_v47 = vsub.f32 1.0, %v2509_v42 }
0x131d   :  { %v2511_v54 = vmul.f32 %v4042_v36, %v2510_v47 }
0x131f   :  { %v2512_v58 = vadd.f32 %v4042_v36, %v2511_v54 }
0x1321   :  { %v2516_v55 = vsel %vm2515_vm0, %v4042_v36, %v2512_v58 }
0x1322   :  { %v2374_v13 = vpop.f32.mrf.mxu2  ;;  %v2521_v39 = vsel %vm2518_vm6, %v2520_v6, %v2516_v55 }
0x1323   :  { %v2375_v57 = vadd.f32 %v2374_v13, %v4832_v32  ;;  %3697 = vmatmul.msk.f32.gmra.mxu3 %vm909_vm8, %v2521_v39 }
0x1325   :  { %v2385_v61 = vadd.f32 %v4827_v60, %v2375_v57 }
0x1327   :  { %v3690_v62 = vmul.f32 -1.442695, %v2385_v61 }
0x1329   :  { %4045 = vpow2.f32 %v3690_v62 }
0x132f   :  { %v4046_v18 = vpop.eup %4045 }
0x1330   :  { %v2417_v59 = vadd.f32 1.0, %v4046_v18 }
0x1332   :  { %4047 = vrcp.f32 %v2417_v59  ;;  %v2534_v60 = vand.u32 2147483648, %v2417_v59  ;;  %v2532_v17 = vand.u32 2147483647, %v2417_v59  ;;  %vm2528_vm3 = vweird.f32 %v2417_v59 }
0x1333   :  { %v2579_v29 = vpop.f32.mrf.mxu3 }
0x1334   :  { %v2609_v63 = vmul.f32 %v4856_v56, %v2579_v29  ;;  %v2535_v5 = vor.u32 1.1754944e-38, %v2534_v60  ;;  %vm2533_vm7 = vcmp.eq.f32.partialorder %v2532_v17, 8.507059e+37 }
0x1336   :  { %v2625_v31 = vand.u32 2147483647, %v2609_v63  ;;  %v2617_v36 = vmax.f32 %v2609_v63, 0.0 }
0x1338   :  { %v4048_v14 = vpop.eup %4047  ;;  %v2633_v32 = vsub.f32 0.0, %v2625_v31 }
0x1339   :  { %v2524_v23 = vmul.f32 %v4048_v14, %v2417_v59  ;;  %vm2529_vm2 = vweird.f32 %v4048_v14 }
0x133a   :  { %v2641_v33 = vmul.f32 1.442695, %v2633_v32  ;;  %vm2530_vm4 = vmor %vm2528_vm3, %vm2529_vm2 }
0x133b   :  { %v2525_v41 = vsub.f32 1.0, %v2524_v23 }
0x133c   :  { %4049 = vpow2.f32 %v2641_v33 }
0x133d   :  { %v2526_v1 = vmul.f32 %v4048_v14, %v2525_v41  ;;  %4051 = vpow2.f32 %v2603_v4 }
0x133f   :  { %v2527_v7 = vadd.f32 %v4048_v14, %v2526_v1 }
0x1341   :  { %v2531_v2 = vsel %vm2530_vm4, %v4048_v14, %v2527_v7 }
0x1342   :  { %v4050_v21 = vpop.eup %4049  ;;  %v2536_v35 = vsel %vm2533_vm7, %v2535_v5, %v2531_v2 }
0x1343   :  { %v2657_v53 = vadd.f32 1.0, %v4050_v21  ;;  %3698 = vmatmul.msk.f32.gmra.mxu3 %vm909_vm8, %v2536_v35  ;;  %v4052_v27 = vpop.eup %4051 }
0x1344   :  { %v2582_v0 = vpop.f32.mrf.mxu3  ;;  %v4861_v52 = vperm.slane %v4052_v27, 0 }
0x1345   :  { %4053 = vlog2.f32 %v2657_v53  ;;  %v2610_v10 = vmul.f32 %v4856_v56, %v2582_v0 }
0x1347   :  { %v2626_v16 = vand.u32 2147483647, %v2610_v10  ;;  %v2618_v39 = vmax.f32 %v2610_v10, 0.0 }
0x1349   :  { %v2634_v28 = vsub.f32 0.0, %v2626_v16 }
0x134b   :  { %v4054_v3 = vpop.eup %4053  ;;  %v2643_v9 = vmul.f32 1.442695, %v2634_v28 }
0x134c   :  { %v2666_v19 = vmul.f32 0.6931472, %v4054_v3  ;;  %v2585_v42 = vpop.f32.mrf.mxu3 }
0x134d   :  { %4055 = vpow2.f32 %v2643_v9  ;;  %v2611_v45 = vmul.f32 %v4856_v56, %v2585_v42 }
0x134e   :  { %v2681_v47 = vadd.f32 %v2666_v19, %v2617_v36 }
0x134f   :  { %v2627_v30 = vand.u32 2147483647, %v2611_v45  ;;  %v2619_v15 = vmax.f32 %v2611_v45, 0.0 }
0x1350   :  { %v2690_v43 = vmul.f32 %v4861_v52, %v2681_v47 }
0x1351   :  { %v2635_v54 = vsub.f32 0.0, %v2627_v30 }
0x1352   :  { %3701 = vmatmul.msk.f32.vlgmr.msra.gmra.mxu0 %vm1074_vm14, %v2690_v43 }
0x1353   :  { %v4056_v38 = vpop.eup %4055  ;;  %v2645_v58 = vmul.f32 1.442695, %v2635_v54 }
0x1354   :  { %v2658_v44 = vadd.f32 1.0, %v4056_v38 }
0x1355   :  { %4057 = vpow2.f32 %v2645_v58 }
0x1356   :  { %4059 = vlog2.f32 %v2658_v44 }
0x135b   :  { %v4058_v6 = vpop.eup %4057 }
0x135c   :  { %v4060_v55 = vpop.eup %4059  ;;  %v2659_v13 = vadd.f32 1.0, %v4058_v6 }
0x135d   :  { %v2668_v57 = vmul.f32 0.6931472, %v4060_v55 }
0x135e   :  { %4061 = vlog2.f32 %v2659_v13 }
0x135f   :  { %v2682_v50 = vadd.f32 %v2668_v57, %v2618_v39 }
0x1361   :  { %v2691_v61 = vmul.f32 %v4861_v52, %v2682_v50 }
0x1363   :  { %3702 = vmatmul.msk.f32.gmra.mxu0 %vm1074_vm14, %v2691_v61 }
0x1364   :  { %v4062_v62 = vpop.eup %4061 }
0x1365   :  { %v2670_v18 = vmul.f32 0.6931472, %v4062_v62 }
0x1367   :  { %v2683_v59 = vadd.f32 %v2670_v18, %v2619_v15 }
0x1369   :  { %v2692_v29 = vmul.f32 %v4861_v52, %v2683_v59 }
0x136b   :  { %3703 = vmatmul.msk.f32.gmra.mxu0 %vm1074_vm14, %v2692_v29 }
0x138e   :  { %v2588_v63 = vpop.f32.mrf.mxu3 }
0x138f   :  { %v2612_v31 = vmul.f32 %v4856_v56, %v2588_v63 }
0x1391   :  { %v2628_v14 = vand.u32 2147483647, %v2612_v31  ;;  %v2620_v28 = vmax.f32 %v2612_v31, 0.0 }
0x1393   :  { %v2636_v32 = vsub.f32 0.0, %v2628_v14 }
0x1395   :  { %v2647_v23 = vmul.f32 1.442695, %v2636_v32 }
0x1396   :  { %v2591_v33 = vpop.f32.mrf.mxu3 }
0x1397   :  { %4063 = vpow2.f32 %v2647_v23  ;;  %v2613_v41 = vmul.f32 %v4856_v56, %v2591_v33 }
0x1399   :  { %v2629_v60 = vand.u32 2147483647, %v2613_v41  ;;  %v2621_v38 = vmax.f32 %v2613_v41, 0.0 }
0x139b   :  { %v2637_v1 = vsub.f32 0.0, %v2629_v60 }
0x139d   :  { %v4064_v17 = vpop.eup %4063  ;;  %v2649_v4 = vmul.f32 1.442695, %v2637_v1 }
0x139e   :  { %v2660_v7 = vadd.f32 1.0, %v4064_v17  ;;  %v2594_v5 = vpop.f32.mrf.mxu3 }
0x139f   :  { %4065 = vpow2.f32 %v2649_v4  ;;  %v2614_v2 = vmul.f32 %v4856_v56, %v2594_v5 }
0x13a0   :  { %4067 = vlog2.f32 %v2660_v7 }
0x13a1   :  { %v2630_v21 = vand.u32 2147483647, %v2614_v2  ;;  %v2622_v57 = vmax.f32 %v2614_v2, 0.0 }
0x13a3   :  { %v2638_v35 = vsub.f32 0.0, %v2630_v21 }
0x13a5   :  { %v4066_v53 = vpop.eup %4065  ;;  %v2651_v0 = vmul.f32 1.442695, %v2638_v35 }
0x13a6   :  { %v4068_v10 = vpop.eup %4067  ;;  %v2661_v16 = vadd.f32 1.0, %v4066_v53  ;;  %v2597_v27 = vpop.f32.mrf.mxu3 }
0x13a7   :  { %v2672_v3 = vmul.f32 0.6931472, %v4068_v10  ;;  %4069 = vpow2.f32 %v2651_v0  ;;  %v2615_v9 = vmul.f32 %v4856_v56, %v2597_v27 }
0x13a8   :  { %4071 = vlog2.f32 %v2661_v16 }
0x13a9   :  { %v2684_v36 = vadd.f32 %v2672_v3, %v2620_v28  ;;  %v2631_v19 = vand.u32 2147483647, %v2615_v9  ;;  %v2623_v18 = vmax.f32 %v2615_v9, 0.0 }
0x13ab   :  { %v2639_v42 = vsub.f32 0.0, %v2631_v19  ;;  %v2693_v45 = vmul.f32 %v4861_v52, %v2684_v36 }
0x13ad   :  { %v4070_v47 = vpop.eup %4069  ;;  %v2653_v30 = vmul.f32 1.442695, %v2639_v42  ;;  %3704 = vmatmul.msk.f32.gmra.mxu0 %vm1074_vm14, %v2693_v45 }
0x13ae   :  { %v4072_v43 = vpop.eup %4071  ;;  %v2662_v54 = vadd.f32 1.0, %v4070_v47 }
0x13af   :  { %v2674_v58 = vmul.f32 0.6931472, %v4072_v43  ;;  %4073 = vpow2.f32 %v2653_v30 }
0x13b0   :  { %4075 = vlog2.f32 %v2662_v54 }
0x13b1   :  { %v2685_v44 = vadd.f32 %v2674_v58, %v2621_v38 }
0x13b3   :  { %v2694_v6 = vmul.f32 %v4861_v52, %v2685_v44 }
0x13b5   :  { %v4074_v55 = vpop.eup %4073  ;;  %3705 = vmatmul.msk.f32.gmra.mxu0 %vm1074_vm14, %v2694_v6 }
0x13b6   :  { %v4076_v13 = vpop.eup %4075  ;;  %v2663_v39 = vadd.f32 1.0, %v4074_v55 }
0x13b7   :  { %v2676_v50 = vmul.f32 0.6931472, %v4076_v13 }
0x13b8   :  { %4077 = vlog2.f32 %v2663_v39 }
0x13b9   :  { %v2686_v61 = vadd.f32 %v2676_v50, %v2622_v57 }
0x13bb   :  { %v2695_v62 = vmul.f32 %v4861_v52, %v2686_v61 }
0x13bd   :  { %3706 = vmatmul.msk.f32.gmra.mxu0 %vm1074_vm14, %v2695_v62 }
0x13be   :  { %v4078_v15 = vpop.eup %4077 }
0x13bf   :  { %v2678_v59 = vmul.f32 0.6931472, %v4078_v15 }
0x13c1   :  { %v2687_v29 = vadd.f32 %v2678_v59, %v2623_v18 }
0x13c3   :  { %v2696_v63 = vmul.f32 %v4861_v52, %v2687_v29 }
0x13c5   :  { %3707 = vmatmul.msk.f32.gmra.mxu0 %vm1074_vm14, %v2696_v63 }
0x13c6   :  { %v2600_v31 = vpop.f32.mrf.mxu3 }
0x13c7   :  { %v2616_v14 = vmul.f32 %v4856_v56, %v2600_v31 }
0x13c9   :  { %v2632_v32 = vand.u32 2147483647, %v2616_v14  ;;  %v2624_v4 = vmax.f32 %v2616_v14, 0.0 }
0x13cb   :  { %v2640_v23 = vsub.f32 0.0, %v2632_v32 }
0x13cd   :  { %v2655_v33 = vmul.f32 1.442695, %v2640_v23  ;;  %v2994_v23 = vld [vmem:[#allocation2 + $0x188] sm:$0xff] }
0x13ce   :  { %3033 = vmatpush.msrb.mxu3 %v2994_v23 }
0x13cf   :  { %4079 = vpow2.f32 %v2655_v33  ;;  %v2739_v41 = vpop.f32.mrf.mxu0  ;;  %v2993_v33 = vld [vmem:[#allocation2 + $0x180] sm:$0xff] }
0x13d0   :  { %2771 = vrot.lane.b32.xlu1 %v2739_v41, %s4138_s26  ;;  %3034 = vmatpush.msrb.mxu3 %v2993_v33  ;;  %v2992_v41 = vld [vmem:[#allocation2 + $0x178] sm:$0xff] }
0x13d2   :  { %3035 = vmatpush.msrb.mxu3 %v2992_v41 }
0x13d5   :  { %v4080_v60 = vpop.eup %4079 }
0x13d6   :  { %v2664_v1 = vadd.f32 1.0, %v4080_v60  ;;  %v2991_v60 = vld [vmem:[#allocation2 + $0x170] sm:$0xff] }
0x13d7   :  { %3036 = vmatpush.msrb.mxu3 %v2991_v60 }
0x13d8   :  { %4081 = vlog2.f32 %v2664_v1 }
0x13de   :  { %v4082_v17 = vpop.eup %4081 }
0x13df   :  { %v2680_v7 = vmul.f32 0.6931472, %v4082_v17 }
0x13e0   :  { %v2742_v5 = vpop.f32.mrf.mxu0 }
0x13e1   :  { %v2688_v2 = vadd.f32 %v2680_v7, %v2624_v4  ;;  %2773 = vrot.lane.b32.xlu2 %v2742_v5, %s4138_s26 }
0x13e3   :  { %v2697_v21 = vmul.f32 %v4861_v52, %v2688_v2 }
0x13e5   :  { %3708 = vmatmul.msk.f32.gmra.mxu0 %vm1074_vm14, %v2697_v21 }
0x13e8   :  { %v2745_v56 = vpop.f32.mrf.mxu0 }
0x13e9   :  { %2775 = vrot.lane.b32.xlu1 %v2745_v56, %s4138_s26 }
0x13f1   :  { %3828 = vrot.lane.b32.xlu1 %v4739_v24, %s4143_s30 }
0x142a   :  { %v2748_v35 = vpop.f32.mrf.mxu0 }
0x142b   :  { %2777 = vrot.lane.b32.xlu2 %v2748_v35, %s4138_s26 }
0x1432   :  { %v2751_v53 = vpop.f32.mrf.mxu0 }
0x1433   :  { %2779 = vrot.lane.b32.xlu0 %v2751_v53, %s4138_s26 }
0x143a   :  { %v2754_v0 = vpop.f32.mrf.mxu0 }
0x143b   :  { %2781 = vrot.lane.b32.xlu2 %v2754_v0, %s4138_s26  ;;  %v2774_v10 = vpop.permute.xlu2 %2773 }
0x143c   :  { %v2796_v52 = vmul.f32 %v2774_v10, %v4758_v25 }
0x1442   :  { %v2772_v16 = vpop.permute.xlu1 %2771  ;;  %v2757_v27 = vpop.f32.mrf.mxu0 }
0x1443   :  { %v2795_v28 = vmul.f32 %v2772_v16, %v4753_v26  ;;  %2807 = vrot.lane.b32.xlu2 %v2796_v52, %s4139_s27  ;;  %2783 = vrot.lane.b32.xlu1 %v2757_v27, %s4138_s26  ;;  %v3858_v27 = vld [vmem:[#allocation2 + $0x213] ss:$0 sm:$0xff] }
0x1445   :  { %2805 = vrot.lane.b32.xlu0 %v2795_v28, %s4139_s27 }
0x144d   :  { %3833 = vrot.lane.b32.xlu0 %v4748_v20, %s4143_s30 }
0x145b   :  { %v2776_v24 = vpop.permute.xlu1 %2775 }
0x145c   :  { %v2797_v3 = vmul.f32 %v2776_v24, %v4764_v12 }
0x145e   :  { %2844 = vrot.lane.b32.xlu2 %v2797_v3, %s4139_s27 }
0x1462   :  { %v2760_v9 = vpop.f32.mrf.mxu0 }
0x1463   :  { %v3829_v25 = vpop.permute.xlu1 %3828  ;;  %2785 = vrot.lane.b32.xlu1 %v2760_v9, %s4138_s26 }
0x1464   :  { %v3830_v36 = vunpack.i.l.bf16 %v3829_v25  ;;  %v3831_v26 = vunpack.i.h.bf16 %v3829_v25 }
0x1466   :  { %2833 = vmatpush.msra.mxu1 %v3830_v36 }
0x1468   :  { %2834 = vmatpush.msra.mxu1 %v3831_v26 }
0x146b   :  { %3838 = vrot.lane.b32.xlu1 %v4792_v34, %s4143_s30 }
0x1473   :  { %3843 = vrot.lane.b32.xlu1 %v4775_v8, %s4143_s30 }
0x1485   :  { %v2778_v20 = vpop.permute.xlu2 %2777 }
0x1486   :  { %v2798_v19 = vmul.f32 %v2778_v20, %v4785_v48 }
0x1488   :  { %2846 = vrot.lane.b32.xlu0 %v2798_v19, %s4139_s27 }
0x1495   :  { %v2782_v12 = vpop.permute.xlu2 %2781 }
0x1496   :  { %v2800_v42 = vmul.f32 %v2782_v12, %v4797_v46 }
0x1498   :  { %2885 = vrot.lane.b32.xlu0 %v2800_v42, %s4139_s27 }
0x149d   :  { %v2808_v8 = vpop.permute.xlu2 %2807 }
0x14a5   :  { %v2780_v45 = vpop.permute.xlu0 %2779 }
0x14a6   :  { %v2799_v47 = vmul.f32 %v2780_v45, %v4767_v40 }
0x14a8   :  { %2883 = vrot.lane.b32.xlu2 %v2799_v47, %s4139_s27 }
0x14b5   :  { %v2784_v30 = vpop.permute.xlu1 %2783 }
0x14b6   :  { %v2801_v34 = vmul.f32 %v2784_v30, %v4780_v51 }
0x14b7   :  { %v2806_v43 = vpop.permute.xlu0 %2805 }
0x14b8   :  { %2922 = vrot.lane.b32.xlu2 %v2801_v34, %s4139_s27  ;;  %3709 = vmatmul.msk.f32.vlgmr.msra.gmra.mxu1 %vm364_vm5, %v2806_v43  ;;  %v2845_v38 = vpop.permute.xlu2 %2844 }
0x14bf   :  { %v3834_v48 = vpop.permute.xlu0 %3833 }
0x14c0   :  { %v3835_v54 = vunpack.i.l.bf16 %v3834_v48  ;;  %3710 = vmatmul.msk.f32.gmra.mxu1 %vm364_vm5, %v2808_v8  ;;  %v3836_v46 = vunpack.i.h.bf16 %v3834_v48  ;;  %v3000_v48 = vld [vmem:[#allocation2 + $0x1a0] sm:$0xff] }
0x14c2   :  { %2872 = vmatpush.msrb.mxu1 %v3835_v54  ;;  %v2999_v54 = vld [vmem:[#allocation2 + $0x198] sm:$0xff] }
0x14c4   :  { %2873 = vmatpush.msrb.mxu1 %v3836_v46  ;;  %v2998_v46 = vld [vmem:[#allocation2 + $0x190] sm:$0xff] }
0x14c8   :  { %3711 = vmatmul.msk.f32.vlgmr.msrb.gmra.mxu1 %vm364_vm5, %v2845_v38 }
0x14d5   :  { %v2786_v40 = vpop.permute.xlu1 %2785 }
0x14d6   :  { %v2802_v58 = vmul.f32 %v2786_v40, %v4804_v22 }
0x14d8   :  { %2924 = vrot.lane.b32.xlu0 %v2802_v58, %s4139_s27 }
0x14dd   :  { %v3839_v51 = vpop.permute.xlu1 %3838 }
0x14de   :  { %v3840_v44 = vunpack.i.l.bf16 %v3839_v51  ;;  %v3841_v6 = vunpack.i.h.bf16 %v3839_v51 }
0x14e0   :  { %2911 = vmatpush.msra.mxu1 %v3840_v44 }
0x14e2   :  { %2912 = vmatpush.msra.mxu1 %v3841_v6 }
0x14e5   :  { %v3844_v55 = vpop.permute.xlu1 %3843 }
0x14e6   :  { %v3845_v13 = vunpack.i.l.bf16 %v3844_v55  ;;  %v3846_v39 = vunpack.i.h.bf16 %v3844_v55 }
0x14e8   :  { %2950 = vmatpush.msrb.mxu1 %v3845_v13 }
0x14ea   :  { %2951 = vmatpush.msrb.mxu1 %v3846_v39 }
0x14fa   :  { %v2847_v57 = vpop.permute.xlu0 %2846 }
0x14fb   :  { %3712 = vmatmul.msk.f32.gmra.mxu1 %vm364_vm5, %v2847_v57  ;;  %v3859_v57 = vld [vmem:[#allocation2 + $0x214] ss:$0 sm:$0xff] }
0x1502   :  { %v2884_v50 = vpop.permute.xlu2 %2883 }
0x1503   :  { %3713 = vmatmul.msk.f32.vlgmr.msra.gmra.mxu1 %vm364_vm5, %v2884_v50 }
0x150a   :  { %v2886_v61 = vpop.permute.xlu0 %2885 }
0x150b   :  { %3714 = vmatmul.msk.f32.gmra.mxu1 %vm364_vm5, %v2886_v61  ;;  %v3860_v61 = vld [vmem:[#allocation2 + $0x215] ss:$0 sm:$0xff] }
0x1512   :  { %v2923_v22 = vpop.permute.xlu2 %2922 }
0x1513   :  { %3715 = vmatmul.msk.f32.vlgmr.msrb.gmra.mxu1 %vm364_vm5, %v2923_v22 }
0x1535   :  { %v2836_v62 = vpop.f32.mrf.mxu1 }
0x153d   :  { %v2839_v15 = vpop.f32.mrf.mxu1 }
0x1545   :  { %v2875_v18 = vpop.f32.mrf.mxu1 }
0x1546   :  { %2961 = vrot.lane.b32.xlu1 %v2875_v18, %s4133_s18 }
0x154a   :  { %v2925_v59 = vpop.permute.xlu0 %2924 }
0x154b   :  { %3716 = vmatmul.msk.f32.gmra.mxu1 %vm364_vm5, %v2925_v59 }
0x1578   :  { %v2878_v29 = vpop.f32.mrf.mxu1 }
0x1579   :  { %2963 = vrot.lane.b32.xlu1 %v2878_v29, %s4133_s18 }
0x1580   :  { %v2914_v63 = vpop.f32.mrf.mxu1 }
0x1581   :  { %2969 = vrot.lane.b32.xlu2 %v2914_v63, %s4144_s4 }
0x1588   :  { %v2917_v31 = vpop.f32.mrf.mxu1 }
0x1589   :  { %2971 = vrot.lane.b32.xlu2 %v2917_v31, %s4144_s4 }
0x1590   :  { %v2953_v14 = vpop.f32.mrf.mxu1 }
0x1591   :  { %2977 = vrot.lane.b32.xlu0 %v2953_v14, %s4145_s5 }
0x15b8   :  { %v2962_v1 = vpop.permute.xlu1 %2961 }
0x15b9   :  { %v2983_v4 = vsel %vm94_vm1, %v2836_v62, %v2962_v1 }
0x15c8   :  { %v2956_v32 = vpop.f32.mrf.mxu1 }
0x15c9   :  { %2979 = vrot.lane.b32.xlu0 %v2956_v32, %s4145_s5 }
0x15db   :  { %v2970_v17 = vpop.permute.xlu2 %2969 }
0x15dc   :  { %v2985_v7 = vsel %vm364_vm5, %v2983_v4, %v2970_v17  ;;  %v4959_v4 = vld [vmem:[#allocation2 + $0x216] ss:$0 sm:$0xff] }
0x15e3   :  { %v2972_v53 = vpop.permute.xlu2 %2971 }
0x15eb   :  { %v2964_v56 = vpop.permute.xlu1 %2963 }
0x15ec   :  { %v2984_v35 = vsel %vm94_vm1, %v2839_v15, %v2964_v56 }
0x15ed   :  { %v2986_v0 = vsel %vm364_vm5, %v2984_v35, %v2972_v53  ;;  %v3010_v35 = vld [vmem:[#allocation2 + $0x1e8] sm:$0xff] }
0x15ee   :  { %3229 = vmatpush.msrb.mxu0 %v3010_v35 }
0x1603   :  { %v2978_v5 = vpop.permute.xlu0 %2977 }
0x1604   :  { %v2987_v2 = vsel %vm909_vm8, %v2985_v7, %v2978_v5 }
0x1605   :  { %v2989_v21 = vadd.f32 %v2987_v2, %v4593_v11 }
0x1607   :  { %3717 = vmatmul.msk.f32.vlgmr.msrb.gmra.mxu3 %vm1396_vm9, %v2989_v21 }
0x163b   :  { %v2980_v10 = vpop.permute.xlu0 %2979 }
0x163c   :  { %v2988_v52 = vsel %vm909_vm8, %v2986_v0, %v2980_v10  ;;  %v3009_v10 = vld [vmem:[#allocation2 + $0x1e0] sm:$0xff] }
0x163d   :  { %v2990_v16 = vadd.f32 %v2988_v52, %v4597_v37  ;;  %3230 = vmatpush.msrb.mxu0 %v3009_v10 }
0x163f   :  { %3718 = vmatmul.msk.f32.gmra.mxu3 %vm1396_vm9, %v2990_v16 }
0x168a   :  { %v3038_v28 = vpop.f32.mrf.mxu3 }
0x168b   :  { %v3039_v24 = vadd.f32 %v3858_v27, %v3038_v28 }
0x168d   :  { %v3044_v3 = vadd.f32 %v3039_v24, %v4593_v11 }
0x168f   :  { %v3046_v9 = vsel %vm1396_vm9, %v3044_v3, 0.0 }
0x1690   :  { %3047 = vadd.xlane.f32.xlu1 %v3046_v9 }
0x16c2   :  { %v3041_v25 = vpop.f32.mrf.mxu3 }
0x16c3   :  { %v3042_v36 = vadd.f32 %v3858_v27, %v3041_v25  ;;  %v3008_v27 = vld [vmem:[#allocation2 + $0x1d8] sm:$0xff]  ;;  %v3006_v25 = vld [vmem:[#allocation2 + $0x1c8] sm:$0xff] }
0x16c4   :  { %3231 = vmatpush.msrb.mxu0 %v3008_v27 }
0x16c5   :  { %v3045_v26 = vadd.f32 %v3042_v36, %v4597_v37  ;;  %v3001_v37 = vld [vmem:[#allocation2 + $0x1a8] sm:$0xff] }
0x16c6   :  { %3115 = vmatpush.msra.mxu3 %v3001_v37 }
0x16c7   :  { %v3049_v20 = vsel %vm1396_vm9, %v3045_v26, 0.0 }
0x16c8   :  { %3050 = vadd.xlane.f32.xlu2 %v3049_v20  ;;  %3116 = vmatpush.msra.mxu3 %v3000_v48  ;;  %v3005_v20 = vld [vmem:[#allocation2 + $0x1c0] sm:$0xff] }
0x16ca   :  { %3117 = vmatpush.msra.mxu3 %v2999_v54 }
0x16cc   :  { %3118 = vmatpush.msra.mxu3 %v2998_v46 }
0x1703   :  { %v3048_v19 = vpop.xlane.xlu1 %3047 }
0x1704   :  { %v3052_v12 = vmul.f32 %v3048_v19, %v4547_v49 }
0x1706   :  { %v3054_v42 = vsub.f32 %v3044_v3, %v3052_v12  ;;  %v3007_v3 = vld [vmem:[#allocation2 + $0x1d0] sm:$0xff]  ;;  %v3004_v12 = vld [vmem:[#allocation2 + $0x1b8] sm:$0xff] }
0x1707   :  { %3232 = vmatpush.msrb.mxu0 %v3007_v3 }
0x1708   :  { %v3056_v45 = vmul.f32 %v3054_v42, %v3054_v42 }
0x1709   :  { %3233 = vmatpush.msrb.mxu0 %v3006_v25 }
0x170a   :  { %v3058_v47 = vsel %vm1396_vm9, %v3056_v45, 0.0  ;;  %v3003_v45 = vld [vmem:[#allocation2 + $0x1b0] sm:$0xff] }
0x170b   :  { %3059 = vadd.xlane.f32.xlu0 %v3058_v47  ;;  %3234 = vmatpush.msrb.mxu0 %v3005_v20 }
0x170d   :  { %3235 = vmatpush.msrb.mxu0 %v3004_v12 }
0x170f   :  { %3236 = vmatpush.msrb.mxu0 %v3003_v45 }
0x173b   :  { %v3051_v30 = vpop.xlane.xlu2 %3050 }
0x173c   :  { %v3053_v11 = vmul.f32 %v3051_v30, %v4547_v49 }
0x173e   :  { %v3055_v34 = vsub.f32 %v3045_v26, %v3053_v11 }
0x1740   :  { %v3057_v43 = vmul.f32 %v3055_v34, %v3055_v34 }
0x1742   :  { %v3061_v8 = vsel %vm1396_vm9, %v3057_v43, 0.0 }
0x1743   :  { %3062 = vadd.xlane.f32.xlu1 %v3061_v8 }
0x177e   :  { %v3060_v38 = vpop.xlane.xlu0 %3059 }
0x177f   :  { %v3064_v40 = vmul.f32 %v3060_v38, %v4547_v49 }
0x1781   :  { %v3066_v58 = vadd.f32 1e-05, %v3064_v40 }
0x1783   :  { %4083 = vrsqrt.f32 %v3066_v58  ;;  %vm3074_vm5 = vweird.f32 %v3066_v58 }
0x1789   :  { %v4084_v51 = vpop.eup %4083 }
0x178a   :  { %v3069_v44 = vmul.f32 %v4084_v51, %v3066_v58  ;;  %vm3075_vm1 = vweird.f32 %v4084_v51 }
0x178b   :  { %vm3076_vm8 = vmor %vm3074_vm5, %vm3075_vm1 }
0x178c   :  { %v3070_v6 = vmul.f32 %v4084_v51, %v3069_v44 }
0x178e   :  { %v3071_v55 = vmul.f32 0.5, %v3070_v6 }
0x1790   :  { %v3072_v13 = vsub.f32 1.5, %v3071_v55 }
0x1792   :  { %v3073_v39 = vmul.f32 %v4084_v51, %v3072_v13 }
0x1794   :  { %v3077_v50 = vsel %vm3076_vm8, %v4084_v51, %v3073_v39 }
0x1795   :  { %v3088_v22 = vmul.f32 %v3077_v50, %v3054_v42 }
0x1797   :  { %v3091_v62 = vmul.f32 %v3859_v57, %v3088_v22 }
0x1799   :  { %v4950_v15 = vadd.f32 %v3860_v61, %v3091_v62 }
0x179b   :  { %3719 = vmatmul.msk.f32.vlgmr.msra.gmra.mxu3 %vm1396_vm9, %v4950_v15 }
0x17b6   :  { %v3063_v18 = vpop.xlane.xlu1 %3062 }
0x17b7   :  { %v3065_v59 = vmul.f32 %v3063_v18, %v4547_v49 }
0x17b9   :  { %v3067_v29 = vadd.f32 1e-05, %v3065_v59 }
0x17bb   :  { %4085 = vrsqrt.f32 %v3067_v29  ;;  %vm3084_vm10 = vweird.f32 %v3067_v29 }
0x17c1   :  { %v4086_v63 = vpop.eup %4085 }
0x17c2   :  { %v3079_v31 = vmul.f32 %v4086_v63, %v3067_v29  ;;  %vm3085_vm14 = vweird.f32 %v4086_v63 }
0x17c3   :  { %vm3086_vm11 = vmor %vm3084_vm10, %vm3085_vm14 }
0x17c4   :  { %v3080_v14 = vmul.f32 %v4086_v63, %v3079_v31 }
0x17c6   :  { %v3081_v32 = vmul.f32 0.5, %v3080_v14 }
0x17c8   :  { %v3082_v23 = vsub.f32 1.5, %v3081_v32 }
0x17ca   :  { %v3083_v33 = vmul.f32 %v4086_v63, %v3082_v23 }
0x17cc   :  { %v3087_v41 = vsel %vm3086_vm11, %v4086_v63, %v3083_v33 }
0x17cd   :  { %v3089_v60 = vmul.f32 %v3087_v41, %v3055_v34 }
0x17cf   :  { %v3092_v1 = vmul.f32 %v3859_v57, %v3089_v60 }
0x17d1   :  { %v4955_v17 = vadd.f32 %v3860_v61, %v3092_v1 }
0x17d3   :  { %3720 = vmatmul.msk.f32.gmra.mxu3 %vm1396_vm9, %v4955_v17 }
0x181e   :  { %v3120_v7 = vpop.f32.mrf.mxu3 }
0x181f   :  { %v3121_v5 = vadd.f32 %v4959_v4, %v3120_v7 }
0x1821   :  { %v3128_v2 = vmul.f32 0.70710677, %v3121_v5  ;;  %v3126_v22 = vmul.f32 0.5, %v3121_v5 }
0x1823   :  { %v3130_v21 = vmul.f32 %v3128_v2, %v3128_v2 }
0x1825   :  { %v3131_v56 = vmin.f32 %v3130_v21, 16.0 }
0x1827   :  { %v3132_v53 = vmul.f32 2.1237322e-06, %v3131_v56  ;;  %v3143_v0 = vmul.f32 3.8918573e-05, %v3131_v56 }
0x1829   :  { %v3133_v52 = vadd.f32 0.00028619796, %v3132_v53  ;;  %v3144_v16 = vadd.f32 0.001143296, %v3143_v0 }
0x182b   :  { %v3134_v28 = vmul.f32 %v3133_v52, %v3131_v56  ;;  %v3145_v24 = vmul.f32 %v3144_v16, %v3131_v56 }
0x182d   :  { %v3146_v9 = vadd.f32 0.014752088, %v3145_v24  ;;  %v3135_v36 = vadd.f32 0.0036580483, %v3134_v28 }
0x182f   :  { %v3147_v26 = vmul.f32 %v3146_v9, %v3131_v56  ;;  %v3136_v42 = vmul.f32 %v3135_v36, %v3131_v56 }
0x1831   :  { %v3148_v19 = vadd.f32 0.112945676, %v3147_v26  ;;  %v3137_v11 = vadd.f32 0.05243302, %v3136_v42 }
0x1833   :  { %v3149_v47 = vmul.f32 %v3148_v19, %v3131_v56  ;;  %v3138_v8 = vmul.f32 %v3137_v11, %v3131_v56 }
0x1835   :  { %v3150_v30 = vadd.f32 0.4994258, %v3149_v47  ;;  %v3139_v37 = vadd.f32 0.18741608, %v3138_v8  ;;  %v3862_v8 = vld [vmem:[#allocation2 + $0x217] ss:$0 sm:$0xff] }
0x1837   :  { %v3151_v34 = vmul.f32 %v3150_v30, %v3131_v56  ;;  %v3140_v54 = vmul.f32 %v3139_v37, %v3131_v56 }
0x1839   :  { %v3152_v43 = vadd.f32 1.0, %v3151_v34  ;;  %v3141_v58 = vadd.f32 1.1283791, %v3140_v54 }
0x183b   :  { %4087 = vrcp.f32 %v3152_v43  ;;  %v3164_v40 = vand.u32 2147483648, %v3152_v43  ;;  %v3162_v44 = vand.u32 2147483647, %v3152_v43  ;;  %vm3158_vm15 = vweird.f32 %v3152_v43 }
0x183c   :  { %v3142_v13 = vmul.f32 %v3141_v58, %v3128_v2 }
0x183d   :  { %v3165_v55 = vor.u32 1.1754944e-38, %v3164_v40  ;;  %vm3163_vm6 = vcmp.eq.f32.partialorder %v3162_v44, 8.507059e+37 }
0x1841   :  { %v4088_v48 = vpop.eup %4087 }
0x1842   :  { %v3154_v46 = vmul.f32 %v4088_v48, %v3152_v43  ;;  %vm3159_vm12 = vweird.f32 %v4088_v48 }
0x1843   :  { %vm3160_vm0 = vmor %vm3158_vm15, %vm3159_vm12 }
0x1844   :  { %v3155_v38 = vsub.f32 1.0, %v3154_v46 }
0x1846   :  { %v3156_v51 = vmul.f32 %v4088_v48, %v3155_v38 }
0x1848   :  { %v3157_v6 = vadd.f32 %v4088_v48, %v3156_v51 }
0x184a   :  { %v3161_v39 = vsel %vm3160_vm0, %v4088_v48, %v3157_v6 }
0x184b   :  { %v3166_v57 = vsel %vm3163_vm6, %v3165_v55, %v3161_v39 }
0x184c   :  { %v3167_v50 = vmul.f32 %v3166_v57, %v3142_v13 }
0x184e   :  { %v3721_v61 = vclamps-f32 %v3167_v50, 1.0 }
0x1850   :  { %v3210_v62 = vadd.f32 1.0, %v3721_v61 }
0x1852   :  { %v3212_v18 = vmul.f32 %v3210_v62, %v3126_v22  ;;  %v3298_v62 = vld [vmem:[%s5083_s2 + $0x10] sm:$0xff] }
0x1854   :  { %3723 = vmatmul.msk.f32.vlgmr.msrb.gmra.mxu0 %vm1604_vm13, %v3212_v18  ;;  %v3297_v18 = vld [vmem:[%s5083_s2 + $0x8] sm:$0xff] }
0x1856   :  { %v3123_v59 = vpop.f32.mrf.mxu3 }
0x1857   :  { %v3124_v29 = vadd.f32 %v4959_v4, %v3123_v59  ;;  %v3296_v59 = vld [vmem:[%s5083_s2] sm:$0xff] }
0x1859   :  { %v3129_v63 = vmul.f32 0.70710677, %v3124_v29  ;;  %v3127_v11 = vmul.f32 0.5, %v3124_v29 }
0x185b   :  { %v3170_v31 = vmul.f32 %v3129_v63, %v3129_v63 }
0x185d   :  { %v3171_v14 = vmin.f32 %v3170_v31, 16.0 }
0x185f   :  { %v3172_v32 = vmul.f32 2.1237322e-06, %v3171_v14  ;;  %v3183_v23 = vmul.f32 3.8918573e-05, %v3171_v14 }
0x1861   :  { %v3173_v33 = vadd.f32 0.00028619796, %v3172_v32  ;;  %v3184_v41 = vadd.f32 0.001143296, %v3183_v23 }
0x1863   :  { %v3174_v60 = vmul.f32 %v3173_v33, %v3171_v14  ;;  %v3185_v1 = vmul.f32 %v3184_v41, %v3171_v14 }
0x1865   :  { %v3186_v7 = vadd.f32 0.014752088, %v3185_v1  ;;  %v3175_v2 = vadd.f32 0.0036580483, %v3174_v60  ;;  %v3863_v1 = vld [vmem:[#allocation2 + $0x218] ss:$0 sm:$0xff] }
0x1867   :  { %v3187_v21 = vmul.f32 %v3186_v7, %v3171_v14  ;;  %v3176_v56 = vmul.f32 %v3175_v2, %v3171_v14  ;;  %v3864_v2 = vld [vmem:[#allocation2 + $0x219] ss:$0 sm:$0xff] }
0x1869   :  { %v3188_v5 = vadd.f32 0.112945676, %v3187_v21  ;;  %v3177_v0 = vadd.f32 0.05243302, %v3176_v56 }
0x186b   :  { %v3189_v35 = vmul.f32 %v3188_v5, %v3171_v14  ;;  %v3178_v4 = vmul.f32 %v3177_v0, %v3171_v14 }
0x186d   :  { %v3190_v53 = vadd.f32 0.4994258, %v3189_v35  ;;  %v3179_v16 = vadd.f32 0.18741608, %v3178_v4 }
0x186f   :  { %v3191_v10 = vmul.f32 %v3190_v53, %v3171_v14  ;;  %v3180_v28 = vmul.f32 %v3179_v16, %v3171_v14 }
0x1871   :  { %v3192_v52 = vadd.f32 1.0, %v3191_v10  ;;  %v3181_v25 = vadd.f32 1.1283791, %v3180_v28 }
0x1873   :  { %4089 = vrcp.f32 %v3192_v52  ;;  %v3204_v9 = vand.u32 2147483648, %v3192_v52  ;;  %v3202_v26 = vand.u32 2147483647, %v3192_v52  ;;  %vm3198_vm3 = vweird.f32 %v3192_v52 }
0x1874   :  { %v3182_v12 = vmul.f32 %v3181_v25, %v3129_v63 }
0x1875   :  { %v3205_v19 = vor.u32 1.1754944e-38, %v3204_v9  ;;  %vm3203_vm7 = vcmp.eq.f32.partialorder %v3202_v26, 8.507059e+37 }
0x1879   :  { %v4090_v27 = vpop.eup %4089 }
0x187a   :  { %v3194_v24 = vmul.f32 %v4090_v27, %v3192_v52  ;;  %vm3199_vm2 = vweird.f32 %v4090_v27 }
0x187b   :  { %vm3200_vm4 = vmor %vm3198_vm3, %vm3199_vm2 }
0x187c   :  { %v3195_v3 = vsub.f32 1.0, %v3194_v24 }
0x187e   :  { %v3196_v36 = vmul.f32 %v4090_v27, %v3195_v3 }
0x1880   :  { %v3197_v20 = vadd.f32 %v4090_v27, %v3196_v36  ;;  %v3865_v36 = vld [vmem:[%s5083_s2 + $0xa0] ss:$0 sm:$0xff] }
0x1882   :  { %v3201_v42 = vsel %vm3200_vm4, %v4090_v27, %v3197_v20 }
0x1883   :  { %v3206_v45 = vsel %vm3203_vm7, %v3205_v19, %v3201_v42 }
0x1884   :  { %v3207_v47 = vmul.f32 %v3206_v45, %v3182_v12 }
0x1886   :  { %v3722_v30 = vclamps-f32 %v3207_v47, 1.0 }
0x1888   :  { %v3211_v34 = vadd.f32 1.0, %v3722_v30 }
0x188a   :  { %v3213_v43 = vmul.f32 %v3211_v34, %v3127_v11 }
0x188c   :  { %3724 = vmatmul.msk.f32.gmra.mxu0 %vm1604_vm13, %v3213_v43 }
0x18d1   :  { %v3238_v37 = vpop.f32.mrf.mxu0 }
0x18d2   :  { %v3239_v48 = vadd.f32 %v3862_v8, %v3238_v37 }
0x18d4   :  { %v3244_v54 = vadd.f32 %v3239_v48, %v4950_v15 }
0x18d6   :  { %v3246_v46 = vsel %vm1396_vm9, %v3244_v54, 0.0 }
0x18d7   :  { %3247 = vadd.xlane.f32.xlu2 %v3246_v46 }
0x1909   :  { %v3241_v38 = vpop.f32.mrf.mxu0 }
0x190a   :  { %v3242_v40 = vadd.f32 %v3862_v8, %v3241_v38 }
0x190c   :  { %v3245_v58 = vadd.f32 %v3242_v40, %v4955_v17  ;;  %v3299_v17 = vld [vmem:[%s5083_s2 + $0x18] sm:$0xff] }
0x190d   :  { %3339 = vmatpush.msra.mxu1 %v3299_v17 }
0x190e   :  { %v3249_v51 = vsel %vm1396_vm9, %v3245_v58, 0.0 }
0x190f   :  { %3250 = vadd.xlane.f32.xlu0 %v3249_v51  ;;  %3340 = vmatpush.msra.mxu1 %v3298_v62 }
0x1911   :  { %3341 = vmatpush.msra.mxu1 %v3297_v18 }
0x1913   :  { %3342 = vmatpush.msra.mxu1 %v3296_v59 }
0x194a   :  { %v3248_v44 = vpop.xlane.xlu2 %3247 }
0x194b   :  { %v3252_v6 = vmul.f32 %v3248_v44, %v4547_v49 }
0x194d   :  { %v3254_v55 = vsub.f32 %v3244_v54, %v3252_v6 }
0x194f   :  { %v3256_v13 = vmul.f32 %v3254_v55, %v3254_v55 }
0x1951   :  { %v3258_v39 = vsel %vm1396_vm9, %v3256_v13, 0.0 }
0x1952   :  { %3259 = vadd.xlane.f32.xlu1 %v3258_v39 }
0x1982   :  { %v3251_v57 = vpop.xlane.xlu0 %3250 }
0x1983   :  { %v3253_v15 = vmul.f32 %v3251_v57, %v4547_v49 }
0x1985   :  { %v3255_v50 = vsub.f32 %v3245_v58, %v3253_v15 }
0x1987   :  { %v3257_v61 = vmul.f32 %v3255_v50, %v3255_v50 }
0x1989   :  { %v3261_v22 = vsel %vm1396_vm9, %v3257_v61, 0.0 }
0x198a   :  { %3262 = vadd.xlane.f32.xlu2 %v3261_v22 }
0x19c5   :  { %v3260_v29 = vpop.xlane.xlu1 %3259 }
0x19c6   :  { %v3264_v63 = vmul.f32 %v3260_v29, %v4547_v49 }
0x19c8   :  { %v3266_v31 = vadd.f32 1e-05, %v3264_v63 }
0x19ca   :  { %4091 = vrsqrt.f32 %v3266_v31  ;;  %vm3274_vm1 = vweird.f32 %v3266_v31 }
0x19d0   :  { %v4092_v14 = vpop.eup %4091 }
0x19d1   :  { %v3269_v32 = vmul.f32 %v4092_v14, %v3266_v31  ;;  %vm3275_vm13 = vweird.f32 %v4092_v14 }
0x19d2   :  { %vm3276_vm5 = vmor %vm3274_vm1, %vm3275_vm13 }
0x19d3   :  { %v3270_v23 = vmul.f32 %v4092_v14, %v3269_v32 }
0x19d5   :  { %v3271_v33 = vmul.f32 0.5, %v3270_v23 }
0x19d7   :  { %v3272_v41 = vsub.f32 1.5, %v3271_v33 }
0x19d9   :  { %v3273_v60 = vmul.f32 %v4092_v14, %v3272_v41 }
0x19db   :  { %v3277_v7 = vsel %vm3276_vm5, %v4092_v14, %v3273_v60 }
0x19dc   :  { %v3288_v21 = vmul.f32 %v3277_v7, %v3254_v55 }
0x19de   :  { %v3291_v5 = vmul.f32 %v3863_v1, %v3288_v21 }
0x19e0   :  { %v3294_v56 = vadd.f32 %v3864_v2, %v3291_v5 }
0x19e2   :  { %3725 = vmatmul.msk.f32.vlgmr.msra.gmra.mxu1 %vm1396_vm9, %v3294_v56 }
0x19fd   :  { %v3263_v35 = vpop.xlane.xlu2 %3262 }
0x19fe   :  { %v3265_v53 = vmul.f32 %v3263_v35, %v4547_v49 }
0x1a00   :  { %v3267_v0 = vadd.f32 1e-05, %v3265_v53 }
0x1a02   :  { %4093 = vrsqrt.f32 %v3267_v0  ;;  %vm3284_vm14 = vweird.f32 %v3267_v0 }
0x1a08   :  { %v4094_v10 = vpop.eup %4093 }
0x1a09   :  { %v3279_v52 = vmul.f32 %v4094_v10, %v3267_v0  ;;  %vm3285_vm8 = vweird.f32 %v4094_v10 }
0x1a0a   :  { %vm3286_vm10 = vmor %vm3284_vm14, %vm3285_vm8 }
0x1a0b   :  { %v3280_v4 = vmul.f32 %v4094_v10, %v3279_v52 }
0x1a0d   :  { %v3281_v16 = vmul.f32 0.5, %v3280_v4 }
0x1a0f   :  { %v3282_v27 = vsub.f32 1.5, %v3281_v16 }
0x1a11   :  { %v3283_v28 = vmul.f32 %v4094_v10, %v3282_v27 }
0x1a13   :  { %v3287_v24 = vsel %vm3286_vm10, %v4094_v10, %v3283_v28 }
0x1a14   :  { %v3289_v3 = vmul.f32 %v3287_v24, %v3255_v50 }
0x1a16   :  { %v3292_v9 = vmul.f32 %v3863_v1, %v3289_v3 }
0x1a18   :  { %v3295_v25 = vadd.f32 %v3864_v2, %v3292_v9 }
0x1a1a   :  { %3726 = vmatmul.msk.f32.gmra.mxu1 %vm1396_vm9, %v3295_v25 }
0x1a5f   :  { %v3344_v26 = vpop.f32.mrf.mxu1 }
0x1a60   :  { %v3345_v20 = vadd.f32 %v3865_v36, %v3344_v26 }
0x1a62   :  { %v3352_v19 = vmul.f32 0.70710677, %v3345_v20  ;;  %v3350_v32 = vmul.f32 0.5, %v3345_v20 }
0x1a64   :  { %v3354_v12 = vmul.f32 %v3352_v19, %v3352_v19 }
0x1a66   :  { %v3355_v42 = vmin.f32 %v3354_v12, 16.0 }
0x1a68   :  { %v3356_v45 = vmul.f32 2.1237322e-06, %v3355_v42  ;;  %v3367_v47 = vmul.f32 3.8918573e-05, %v3355_v42 }
0x1a6a   :  { %v3357_v30 = vadd.f32 0.00028619796, %v3356_v45  ;;  %v3368_v11 = vadd.f32 0.001143296, %v3367_v47 }
0x1a6c   :  { %v3358_v34 = vmul.f32 %v3357_v30, %v3355_v42  ;;  %v3369_v43 = vmul.f32 %v3368_v11, %v3355_v42 }
0x1a6e   :  { %v3370_v8 = vadd.f32 0.014752088, %v3369_v43  ;;  %v3359_v37 = vadd.f32 0.0036580483, %v3358_v34 }
0x1a70   :  { %v3371_v48 = vmul.f32 %v3370_v8, %v3355_v42  ;;  %v3360_v46 = vmul.f32 %v3359_v37, %v3355_v42 }
0x1a72   :  { %v3372_v54 = vadd.f32 0.112945676, %v3371_v48  ;;  %v3361_v58 = vadd.f32 0.05243302, %v3360_v46 }
0x1a74   :  { %v3373_v38 = vmul.f32 %v3372_v54, %v3355_v42  ;;  %v3362_v6 = vmul.f32 %v3361_v58, %v3355_v42 }
0x1a76   :  { %v3374_v40 = vadd.f32 0.4994258, %v3373_v38  ;;  %v3363_v55 = vadd.f32 0.18741608, %v3362_v6 }
0x1a78   :  { %v3375_v51 = vmul.f32 %v3374_v40, %v3355_v42  ;;  %v3364_v39 = vmul.f32 %v3363_v55, %v3355_v42 }
0x1a7a   :  { %v3376_v44 = vadd.f32 1.0, %v3375_v51  ;;  %v3365_v61 = vadd.f32 1.1283791, %v3364_v39 }
0x1a7c   :  { %4095 = vrcp.f32 %v3376_v44  ;;  %v3388_v50 = vand.u32 2147483648, %v3376_v44  ;;  %v3386_v17 = vand.u32 2147483647, %v3376_v44  ;;  %vm3382_vm12 = vweird.f32 %v3376_v44 }
0x1a7d   :  { %v3366_v59 = vmul.f32 %v3365_v61, %v3352_v19  ;;  %v3316_v61 = vld [vmem:[%s5083_s2 + $0x88] sm:$0xff] }
0x1a7e   :  { %v3389_v18 = vor.u32 1.1754944e-38, %v3388_v50  ;;  %vm3387_vm0 = vcmp.eq.f32.partialorder %v3386_v17, 8.507059e+37  ;;  %v3317_v50 = vld [vmem:[%s5083_s2 + $0x90] sm:$0xff]  ;;  %v3314_v17 = vld [vmem:[%s5083_s2 + $0x78] sm:$0xff] }
0x1a82   :  { %v4096_v13 = vpop.eup %4095 }
0x1a83   :  { %v3378_v57 = vmul.f32 %v4096_v13, %v3376_v44  ;;  %vm3383_vm11 = vweird.f32 %v4096_v13 }
0x1a84   :  { %vm3384_vm15 = vmor %vm3382_vm12, %vm3383_vm11 }
0x1a85   :  { %v3379_v15 = vsub.f32 1.0, %v3378_v57 }
0x1a87   :  { %v3380_v22 = vmul.f32 %v4096_v13, %v3379_v15  ;;  %v3318_v15 = vld [vmem:[%s5083_s2 + $0x98] sm:$0xff] }
0x1a88   :  { %3729 = vmatpush.xpose.msk.msra.mxu2 %vm1396_vm9, %v3318_v15 }
0x1a89   :  { %v3381_v62 = vadd.f32 %v4096_v13, %v3380_v22  ;;  %v3315_v22 = vld [vmem:[%s5083_s2 + $0x80] sm:$0xff] }
0x1a8b   :  { %v3385_v29 = vsel %vm3384_vm15, %v4096_v13, %v3381_v62  ;;  %v3313_v62 = vld [vmem:[%s5083_s2 + $0x70] sm:$0xff] }
0x1a8c   :  { %v3390_v63 = vsel %vm3387_vm0, %v3389_v18, %v3385_v29  ;;  %3730 = vmatpush.xpose.msk.msra.mxu2 %vm1396_vm9, %v3317_v50  ;;  %v3312_v18 = vld [vmem:[%s5083_s2 + $0x68] sm:$0xff] }
0x1a8d   :  { %v3391_v31 = vmul.f32 %v3390_v63, %v3366_v59  ;;  %v3311_v63 = vld [vmem:[%s5083_s2 + $0x60] sm:$0xff] }
0x1a8f   :  { %v3727_v14 = vclamps-f32 %v3391_v31, 1.0 }
0x1a90   :  { %3731 = vmatpush.xpose.msk.msra.mxu2 %vm1396_vm9, %v3316_v61 }
0x1a91   :  { %v3434_v23 = vadd.f32 1.0, %v3727_v14 }
0x1a93   :  { %v3436_v33 = vmul.f32 %v3434_v23, %v3350_v32  ;;  %v3310_v32 = vld [vmem:[%s5083_s2 + $0x58] sm:$0xff] }
0x1a94   :  { %3732 = vmatpush.xpose.msk.msra.mxu2 %vm1396_vm9, %v3315_v22 }
0x1a95   :  { %v3438_v41 = vsel %vm1396_vm9, %v3436_v33, 0.0 }
0x1a96   :  { %3439 = vadd.xlane.f32.xlu0 %v3438_v41  ;;  %v3308_v41 = vld [vmem:[%s5083_s2 + $0x48] sm:$0xff] }
0x1a97   :  { %v3347_v60 = vpop.f32.mrf.mxu1 }
0x1a98   :  { %v3348_v1 = vadd.f32 %v3865_v36, %v3347_v60  ;;  %3733 = vmatpush.xpose.msk.msra.mxu2 %vm1396_vm9, %v3314_v17  ;;  %v3307_v60 = vld [vmem:[%s5083_s2 + $0x40] sm:$0xff] }
0x1a9a   :  { %v3353_v7 = vmul.f32 0.70710677, %v3348_v1  ;;  %v3351_v40 = vmul.f32 0.5, %v3348_v1  ;;  %v3306_v1 = vld [vmem:[%s5083_s2 + $0x38] sm:$0xff] }
0x1a9c   :  { %v3394_v2 = vmul.f32 %v3353_v7, %v3353_v7  ;;  %3734 = vmatpush.xpose.msk.msra.mxu2 %vm1396_vm9, %v3313_v62 }
0x1a9e   :  { %v3395_v21 = vmin.f32 %v3394_v2, 16.0  ;;  %v3304_v2 = vld [vmem:[%s5083_s2 + $0x28] sm:$0xff] }
0x1aa0   :  { %v3396_v5 = vmul.f32 2.1237322e-06, %v3395_v21  ;;  %v3407_v56 = vmul.f32 3.8918573e-05, %v3395_v21  ;;  %3735 = vmatpush.xpose.msk.msra.mxu2 %vm1396_vm9, %v3312_v18 }
0x1aa2   :  { %v3397_v35 = vadd.f32 0.00028619796, %v3396_v5  ;;  %v3408_v53 = vadd.f32 0.001143296, %v3407_v56 }
0x1aa4   :  { %v3398_v0 = vmul.f32 %v3397_v35, %v3395_v21  ;;  %v3409_v10 = vmul.f32 %v3408_v53, %v3395_v21  ;;  %3736 = vmatpush.xpose.msk.msra.mxu2 %vm1396_vm9, %v3311_v63 }
0x1aa6   :  { %v3410_v52 = vadd.f32 0.014752088, %v3409_v10  ;;  %v3399_v4 = vadd.f32 0.0036580483, %v3398_v0 }
0x1aa8   :  { %v3411_v16 = vmul.f32 %v3410_v52, %v3395_v21  ;;  %v3400_v28 = vmul.f32 %v3399_v4, %v3395_v21  ;;  %3737 = vmatpush.xpose.msk.msra.mxu2 %vm1396_vm9, %v3310_v32 }
0x1aaa   :  { %v3412_v27 = vadd.f32 0.112945676, %v3411_v16  ;;  %v3401_v9 = vadd.f32 0.05243302, %v3400_v28 }
0x1aac   :  { %v3413_v24 = vmul.f32 %v3412_v27, %v3395_v21  ;;  %v3402_v36 = vmul.f32 %v3401_v9, %v3395_v21  ;;  %v3866_v27 = vld [vmem:[%s5083_s2 + $0xa1] ss:$0 sm:$0xff] }
0x1aae   :  { %v3414_v3 = vadd.f32 0.4994258, %v3413_v24  ;;  %v3403_v20 = vadd.f32 0.18741608, %v3402_v36  ;;  %v3867_v24 = vld [vmem:[%s5083_s2 + $0xa2] ss:$0 sm:$0xff] }
0x1ab0   :  { %v3415_v25 = vmul.f32 %v3414_v3, %v3395_v21  ;;  %v3404_v12 = vmul.f32 %v3403_v20, %v3395_v21  ;;  %v3303_v21 = vld [vmem:[%s5083_s2 + $0x20] sm:$0xff] }
0x1ab2   :  { %v3416_v26 = vadd.f32 1.0, %v3415_v25  ;;  %v3405_v30 = vadd.f32 1.1283791, %v3404_v12 }
0x1ab4   :  { %4097 = vrcp.f32 %v3416_v26  ;;  %v3428_v47 = vand.u32 2147483648, %v3416_v26  ;;  %v3426_v34 = vand.u32 2147483647, %v3416_v26  ;;  %vm3422_vm2 = vweird.f32 %v3416_v26 }
0x1ab5   :  { %v3406_v37 = vmul.f32 %v3405_v30, %v3353_v7  ;;  %v3305_v7 = vld [vmem:[%s5083_s2 + $0x30] sm:$0xff] }
0x1ab6   :  { %v3429_v8 = vor.u32 1.1754944e-38, %v3428_v47  ;;  %vm3427_vm4 = vcmp.eq.f32.partialorder %v3426_v34, 8.507059e+37 }
0x1aba   :  { %v4098_v19 = vpop.eup %4097 }
0x1abb   :  { %v3418_v42 = vmul.f32 %v4098_v19, %v3416_v26  ;;  %vm3423_vm6 = vweird.f32 %v4098_v19 }
0x1abc   :  { %vm3424_vm3 = vmor %vm3422_vm2, %vm3423_vm6 }
0x1abd   :  { %v3419_v45 = vsub.f32 1.0, %v3418_v42 }
0x1abf   :  { %v3420_v11 = vmul.f32 %v4098_v19, %v3419_v45 }
0x1ac1   :  { %v3421_v43 = vadd.f32 %v4098_v19, %v3420_v11 }
0x1ac3   :  { %v3425_v48 = vsel %vm3424_vm3, %v4098_v19, %v3421_v43 }
0x1ac4   :  { %v3430_v54 = vsel %vm3427_vm4, %v3429_v8, %v3425_v48 }
0x1ac5   :  { %v3431_v46 = vmul.f32 %v3430_v54, %v3406_v37 }
0x1ac7   :  { %v3728_v38 = vclamps-f32 %v3431_v46, 1.0 }
0x1ac9   :  { %v3435_v58 = vadd.f32 1.0, %v3728_v38 }
0x1acb   :  { %v3437_v51 = vmul.f32 %v3435_v58, %v3351_v40 }
0x1acd   :  { %v3441_v44 = vsel %vm1396_vm9, %v3437_v51, 0.0 }
0x1ace   :  { %3442 = vadd.xlane.f32.xlu1 %v3441_v44 }
0x1b09   :  { %v3440_v6 = vpop.xlane.xlu0 %3439 }
0x1b0a   :  { %v3444_v55 = vmul.f32 %v3440_v6, %v4547_v49 }
0x1b0c   :  { %v3446_v13 = vsub.f32 %v3436_v33, %v3444_v55  ;;  %v3309_v33 = vld [vmem:[%s5083_s2 + $0x50] sm:$0xff] }
0x1b0d   :  { %3738 = vmatpush.xpose.msk.msra.mxu2 %vm1396_vm9, %v3309_v33 }
0x1b0e   :  { %v3448_v39 = vmul.f32 %v3446_v13, %v3446_v13 }
0x1b10   :  { %v3450_v57 = vsel %vm1396_vm9, %v3448_v39, 0.0 }
0x1b11   :  { %3451 = vadd.xlane.f32.xlu2 %v3450_v57  ;;  %3739 = vmatpush.xpose.msk.msra.mxu2 %vm1396_vm9, %v3308_v41 }
0x1b15   :  { %3740 = vmatpush.xpose.msk.msra.mxu2 %vm1396_vm9, %v3307_v60 }
0x1b19   :  { %3741 = vmatpush.xpose.msk.msra.mxu2 %vm1396_vm9, %v3306_v1 }
0x1b1d   :  { %3742 = vmatpush.xpose.msk.msra.mxu2 %vm1396_vm9, %v3305_v7 }
0x1b21   :  { %3743 = vmatpush.xpose.msk.msra.mxu2 %vm1396_vm9, %v3304_v2 }
0x1b25   :  { %3744 = vmatpush.xpose.msk.msra.mxu2 %vm1396_vm9, %v3303_v21 }
0x1b41   :  { %v3443_v59 = vpop.xlane.xlu1 %3442 }
0x1b42   :  { %v3445_v29 = vmul.f32 %v3443_v59, %v4547_v49 }
0x1b44   :  { %v3447_v31 = vsub.f32 %v3437_v51, %v3445_v29 }
0x1b46   :  { %v3449_v14 = vmul.f32 %v3447_v31, %v3447_v31 }
0x1b48   :  { %v3453_v23 = vsel %vm1396_vm9, %v3449_v14, 0.0 }
0x1b49   :  { %3454 = vadd.xlane.f32.xlu0 %v3453_v23 }
0x1b84   :  { %v3452_v5 = vpop.xlane.xlu2 %3451 }
0x1b85   :  { %v3456_v56 = vmul.f32 %v3452_v5, %v4547_v49 }
0x1b87   :  { %v3458_v35 = vadd.f32 1e-05, %v3456_v56 }
0x1b89   :  { %4099 = vrsqrt.f32 %v3458_v35  ;;  %vm3466_vm13 = vweird.f32 %v3458_v35 }
0x1b8f   :  { %v4100_v53 = vpop.eup %4099 }
0x1b90   :  { %v3461_v0 = vmul.f32 %v4100_v53, %v3458_v35  ;;  %vm3467_vm7 = vweird.f32 %v4100_v53 }
0x1b91   :  { %vm3468_vm1 = vmor %vm3466_vm13, %vm3467_vm7 }
0x1b92   :  { %v3462_v10 = vmul.f32 %v4100_v53, %v3461_v0 }
0x1b94   :  { %v3463_v52 = vmul.f32 0.5, %v3462_v10 }
0x1b96   :  { %v3464_v4 = vsub.f32 1.5, %v3463_v52 }
0x1b98   :  { %v3465_v16 = vmul.f32 %v4100_v53, %v3464_v4 }
0x1b9a   :  { %v3469_v28 = vsel %vm3468_vm1, %v4100_v53, %v3465_v16 }
0x1b9b   :  { %v3480_v3 = vmul.f32 %v3469_v28, %v3446_v13 }
0x1b9d   :  { %v3483_v9 = vmul.f32 %v3866_v27, %v3480_v3 }
0x1b9f   :  { %v3486_v25 = vadd.f32 %v3867_v24, %v3483_v9 }
0x1ba1   :  { %3745 = vmatmul.msk.f32.vlgmr.msra.gmra.mxu2 %vm1396_vm9, %v3486_v25 }
0x1bbc   :  { %v3455_v26 = vpop.xlane.xlu0 %3454 }
0x1bbd   :  { %v3457_v36 = vmul.f32 %v3455_v26, %v4547_v49  ;;  %v3868_v49 = vld [vmem:[%s5083_s2 + $0xa3] ss:$0 sm:$0xff] }
0x1bbf   :  { %v3459_v20 = vadd.f32 1e-05, %v3457_v36 }
0x1bc1   :  { %4101 = vrsqrt.f32 %v3459_v20  ;;  %vm3476_vm8 = vweird.f32 %v3459_v20 }
0x1bc7   :  { %v4102_v19 = vpop.eup %4101 }
0x1bc8   :  { %v3471_v12 = vmul.f32 %v4102_v19, %v3459_v20  ;;  %vm3477_vm5 = vweird.f32 %v4102_v19 }
0x1bc9   :  { %vm3478_vm14 = vmor %vm3476_vm8, %vm3477_vm5 }
0x1bca   :  { %v3472_v42 = vmul.f32 %v4102_v19, %v3471_v12 }
0x1bcc   :  { %v3473_v45 = vmul.f32 0.5, %v3472_v42 }
0x1bce   :  { %v3474_v47 = vsub.f32 1.5, %v3473_v45 }
0x1bd0   :  { %v3475_v30 = vmul.f32 %v4102_v19, %v3474_v47 }
0x1bd2   :  { %v3479_v11 = vsel %vm3478_vm14, %v4102_v19, %v3475_v30 }
0x1bd3   :  { %v3481_v34 = vmul.f32 %v3479_v11, %v3447_v31 }
0x1bd5   :  { %v3484_v43 = vmul.f32 %v3866_v27, %v3481_v34 }
0x1bd7   :  { %v3487_v8 = vadd.f32 %v3867_v24, %v3484_v43 }
0x1bd9   :  { %3746 = vmatmul.msk.f32.gmra.mxu2 %vm1396_vm9, %v3487_v8 }
0x1c24   :  { %v3560_v37 = vpop.f32.mrf.mxu2 }
0x1c25   :  { %v3561_v48 = vadd.f32 %v3868_v49, %v3560_v37 }
0x1c27   :  { %3566 = vst [vmem:[%s5084_s3] sm:$0xff] %v3561_v48 }
0x1c5c   :  { %v3563_v54 = vpop.f32.mrf.mxu2 }
0x1c5d   :  { %v3564_v46 = vadd.f32 %v3868_v49, %v3563_v54 }
0x1c5f   :  { %3567 = vst [vmem:[%s5084_s3 + $0x8] sm:$0xff] %v3564_v46 }
0x1c60   :  { %3572 = vsyncpa [#allocation3], 1 }

</bundles_post_ra>
